<compile_context>
chip_gen: v5e
topology: v5e:2x2
jax: 0.10.0
libtpu: 0.0.40
codegen_flags: <defaults>
</compile_context>

<pallas_src>
import functools

import jax
import jax.numpy as jnp
from jax.experimental import pallas as pl
from jax.experimental.pallas import tpu as pltpu

_LANE = 128
_SUBLANE = 8


def _round_up(v, m):
    return (v + m - 1) // m * m


# ---------------------------------------------------------------------------
# Fused Pallas kernel: all branches + k-max pool + FC in one program.
# ---------------------------------------------------------------------------
def _fused_kernel(*refs, branch_cfg, nb, compute_dtype):
    """refs = [per branch: xw, w1m, b1, w2m, b2, fcw] ..., fc_b, out.

    Per branch (fs, H2, K1):
      xw  : (nb*H2, fs*K1)  one row per conv2 output (n, t); lanes hold the fs conv1
                            windows back-to-back (r-major, then embed dim), so each
                            conv1 im2col row is a contiguous static lane slice.
      w1m : (K1, Cp)        conv1 weight, out-channels zero-padded to 128 lanes.
      b1  : (1, Cp)
      w2m : (fs*Cp, C2p)    conv2 weight merged over its fs kernel rows (single matmul).
      b2  : (1, C2p)
      fcw : (2, C2p, Dp)    final-FC weight slice per k-max-pool slot.
    """
    out_ref = refs[-1]
    fcb_ref = refs[-2]
    acc = None

    for i, (fs, H2, K1) in enumerate(branch_cfg):
        xw_ref, w1m_ref, b1_ref, w2m_ref, b2_ref, fcw_ref = refs[6 * i: 6 * i + 6]
        rows = nb * H2

        # conv1 (+bias+relu) once per kernel-row offset r; pieces are lane-concatenated
        # (each piece is exactly 128 lanes) so conv2 becomes ONE K = fs*Cp matmul.
        pieces = []
        for r in range(fs):
            a_r = xw_ref[:, r * K1:(r + 1) * K1]                    # (rows, K1)
            h1 = jnp.dot(a_r, w1m_ref[...], preferred_element_type=jnp.float32)
            h1 = jnp.maximum(h1 + b1_ref[...], 0.0)                 # relu(conv1), f32
            pieces.append(h1.astype(compute_dtype))
        lhs2 = jnp.concatenate(pieces, axis=-1)                     # (rows, fs*Cp)

        h2 = jnp.dot(lhs2, w2m_ref[...], preferred_element_type=jnp.float32)
        h2 = jnp.maximum(h2 + b2_ref[...], 0.0)                     # relu(conv2): (rows, C2p)
        # rows are ordered (n_local, t); split the sublane dim so every time step is a
        # contiguous (nb, C2p) slab (VMEM-local relayout, lane dim untouched).
        h2 = h2.reshape(nb, H2, h2.shape[-1])

        # Order-preserving k-max pool (k=2) over time.  Running top-2 with a single
        # boolean "best1 came earlier" flag; ties keep the earlier element, matching
        # torch.topk -> sort(indices) -> gather.  Requires H2 >= 2 (asserted in wrapper).
        best1 = h2[:, 0, :]                                         # (nb, C2p)
        best2 = jnp.full_like(best1, -jnp.inf)
        keep1 = best1 > best2                                       # all True initially
        for t in range(1, H2):
            v = h2[:, t, :]
            gt1 = v > best1
            gt2 = v > best2
            best2 = jnp.where(gt1, best1, jnp.where(gt2, v, best2))
            keep1 = (~gt1) & (gt2 | keep1)
            best1 = jnp.where(gt1, v, best1)
        first = jnp.where(keep1, best1, best2)                      # earlier of the top-2
        second = jnp.where(keep1, best2, best1)                     # later of the top-2

        # Final Linear folded in: fcw[j] is the (C2p, Dp) slice for pool slot j.
        contrib = (jnp.dot(first, fcw_ref[0], preferred_element_type=jnp.float32)
                   + jnp.dot(second, fcw_ref[1], preferred_element_type=jnp.float32))
        acc = contrib if acc is None else acc + contrib

    out_ref[...] = (acc + fcb_ref[...]).astype(out_ref.dtype)


# ---------------------------------------------------------------------------
# One-time parameter re-layout + 128-lane zero padding (hoisted off the fwd path).
# ---------------------------------------------------------------------------
def prepare_params(params, filter_size, compute_dtype=jnp.bfloat16):
    C = params["w1_0"].shape[0]
    dim = params["w1_0"].shape[3]
    out_dim = params["fc_w"].shape[0]
    Cp = _round_up(C, _LANE)
    C2p = _round_up(2 * C, _LANE)
    Dp = _round_up(out_dim, _LANE)

    prep = {"fc_b": jnp.zeros((1, Dp), jnp.float32)
                      .at[0, :out_dim].set(params["fc_b"].astype(jnp.float32))}
    col = 0
    for i, fs in enumerate(filter_size):
        K1 = fs * dim
        w1 = params[f"w1_{i}"].astype(jnp.float32)                  # (C, 1, fs, dim)
        w1m = jnp.transpose(w1[:, 0], (1, 2, 0)).reshape(K1, C)     # (K1, C)
        prep[f"w1m_{i}"] = (jnp.zeros((K1, Cp), jnp.float32)
                            .at[:, :C].set(w1m).astype(compute_dtype))
        prep[f"b1_{i}"] = (jnp.zeros((1, Cp), jnp.float32)
                           .at[0, :C].set(params[f"b1_{i}"].astype(jnp.float32)))

        w2 = params[f"w2_{i}"].astype(jnp.float32)                  # (2C, C, fs, 1)
        w2m = jnp.transpose(w2[:, :, :, 0], (2, 1, 0))              # (fs, C, 2C)
        w2m_pad = jnp.zeros((fs, Cp, C2p), jnp.float32).at[:, :C, :2 * C].set(w2m)
        prep[f"w2m_{i}"] = w2m_pad.reshape(fs * Cp, C2p).astype(compute_dtype)
        prep[f"b2_{i}"] = (jnp.zeros((1, C2p), jnp.float32)
                           .at[0, :2 * C].set(params[f"b2_{i}"].astype(jnp.float32)))

        # fc weight block for this branch, re-indexed as [pool slot j, channel, out]
        # (PyTorch flatten order (channel, k) is folded into this permutation), padded.
        blk = params["fc_w"][:, col: col + 4 * C].astype(jnp.float32)   # (out_dim, 4C)
        fcw = blk.reshape(out_dim, 2 * C, 2).transpose(2, 1, 0)          # (2, 2C, out_dim)
        prep[f"fcw_{i}"] = (jnp.zeros((2, C2p, Dp), jnp.float32)
                            .at[:, :2 * C, :out_dim].set(fcw))
        col += 4 * C
    return prep


# ---------------------------------------------------------------------------
# Forward: contiguous (transpose-free) im2col glue + one fused pallas_call.
# ---------------------------------------------------------------------------
def my_text_cnn_forward(prep, x, filter_size, *, out_dim, batch_block=8,
                        compute_dtype=jnp.bfloat16):
    N, _, H, dim = x.shape
    nb = batch_block
    assert nb >= _SUBLANE and nb % _SUBLANE == 0, "batch_block must be a multiple of 8"
    G = pl.cdiv(N, nb)
    N_pad = G * nb
    if N_pad != N:                                  # pad batch instead of one huge step
        x = jnp.pad(x, ((0, N_pad - N), (0, 0), (0, 0), (0, 0)))

    Dp = prep["fc_b"].shape[1]
    esize = jnp.dtype(compute_dtype).itemsize
    inputs, in_specs, branch_cfg = [], [], []
    vmem_bytes = 2 * nb * Dp * 4                    # double-buffered output block

    for i, fs in enumerate(filter_size):
        H1 = (H - fs) // fs + 1
        H2 = (H1 - fs) // fs + 1
        assert H2 >= 2, f"k_max_pool(k=2) needs >= 2 rows after conv2 (fs={fs}, H2={H2})"
        K1 = fs * dim
        K2 = fs * K1                                # conv2 receptive field per output row
        Cp = prep[f"w1m_{i}"].shape[1]
        C2p = prep[f"w2m_{i}"].shape[1]
        rows = nb * H2

        # Pure contiguous slice+reshape (NO transpose): one row per conv2 output (n, t)
        # holding its whole receptive field (fs*fs input rows x dim); fused by jit.
        xw = (x[:, 0, :H2 * fs * fs, :]
              .reshape(N_pad, H2, K2)
              .reshape(G, rows, K2)
              .astype(compute_dtype))

        inputs += [xw, prep[f"w1m_{i}"], prep[f"b1_{i}"], prep[f"w2m_{i}"],
                   prep[f"b2_{i}"], prep[f"fcw_{i}"]]
        in_specs += [
            pl.BlockSpec((None, rows, K2), lambda g: (g, 0, 0)),
            pl.BlockSpec((K1, Cp), lambda g: (0, 0)),
            pl.BlockSpec((1, Cp), lambda g: (0, 0)),
            pl.BlockSpec((fs * Cp, C2p), lambda g: (0, 0)),
            pl.BlockSpec((1, C2p), lambda g: (0, 0)),
            pl.BlockSpec((2, C2p, Dp), lambda g: (0, 0, 0)),
        ]
        branch_cfg.append((fs, H2, K1))

        # Rough per-step VMEM budget (double-buffered xw + resident weights + temporaries).
        vmem_bytes += 2 * rows * _round_up(K2, _LANE) * esize
        vmem_bytes += 2 * (K1 * Cp + fs * Cp * C2p) * esize
        vmem_bytes += 2 * (Cp + C2p) * 4 + 2 * 2 * C2p * Dp * 4
        vmem_bytes += (fs + 2) * rows * max(Cp, C2p) * 4

    inputs.append(prep["fc_b"])
    in_specs.append(pl.BlockSpec((1, Dp), lambda g: (0, 0)))

    # Scoped VMEM default is only 16/32 MiB (v5e / v6e,v7x) — raise it explicitly, but
    # stay under the 64 MiB physical budget of a v7x TensorCore.
    vmem_limit = int(min(64 * 2 ** 20, max(32 * 2 ** 20, 2 * vmem_bytes)))

    out = pl.pallas_call(
        functools.partial(_fused_kernel, branch_cfg=tuple(branch_cfg), nb=nb,
                          compute_dtype=compute_dtype),
        grid=(G,),
        in_specs=in_specs,
        out_specs=pl.BlockSpec((nb, Dp), lambda g: (g, 0)),       # lane-dense store
        out_shape=jax.ShapeDtypeStruct((N_pad, Dp), jnp.float32),
        compiler_params=pltpu.CompilerParams(
            dimension_semantics=("parallel",),                    # batch across TCs
            vmem_limit_bytes=vmem_limit),
    )(*inputs)
    return out[:N, :out_dim]


# ---------------------------------------------------------------------------
# Pure-JAX reference (lax.conv + top_k), used to validate the fused kernel.
# ---------------------------------------------------------------------------
def reference_forward(params, x, filter_size):
    N = x.shape[0]
    outs = []
    for i, fs in enumerate(filter_size):
        w1, b1 = params[f"w1_{i}"], params[f"b1_{i}"]
        w2, b2 = params[f"w2_{i}"], params[f"b2_{i}"]
        y = jax.lax.conv_general_dilated(
            x, w1, window_strides=(fs, fs), padding="VALID",
            dimension_numbers=("NCHW", "OIHW", "NCHW"))
        y = jax.nn.relu(y + b1[None, :, None, None])
        y = jax.lax.conv_general_dilated(
            y, w2, window_strides=(fs, fs), padding="VALID",
            dimension_numbers=("NCHW", "OIHW", "NCHW"))
        y = jax.nn.relu(y + b2[None, :, None, None])
        # k_max_pool(dim=2, k=2): top-2 values kept in original order
        yh = jnp.moveaxis(y, 2, -1)                               # (N, 2C, 1, H2)
        _, idxs = jax.lax.top_k(yh, 2)
        idxs = jnp.sort(idxs, axis=-1)
        pooled = jnp.moveaxis(jnp.take_along_axis(yh, idxs, axis=-1), -1, 2)
        outs.append(pooled)                                       # (N, 2C, 2, 1)
    cat = jnp.concatenate(outs, axis=1).reshape(N, -1)
    return cat @ params["fc_w"].T + params["fc_b"]


def make_params(key, dim, n_filter, filter_size, out_dim):
    params = {}
    keys = jax.random.split(key, 4 * len(filter_size) + 2)
    k = 0
    for i, fs in enumerate(filter_size):
        params[f"w1_{i}"] = 0.2 * jax.random.normal(keys[k], (n_filter, 1, fs, dim), jnp.float32); k += 1
        params[f"b1_{i}"] = 0.1 * jax.random.normal(keys[k], (n_filter,), jnp.float32); k += 1
        params[f"w2_{i}"] = 0.2 * jax.random.normal(keys[k], (2 * n_filter, n_filter, fs, 1), jnp.float32); k += 1
        params[f"b2_{i}"] = 0.1 * jax.random.normal(keys[k], (2 * n_filter,), jnp.float32); k += 1
    in_features = len(filter_size) * (2 * n_filter) * 2
    params["fc_w"] = 0.2 * jax.random.normal(keys[k], (out_dim, in_features), jnp.float32); k += 1
    params["fc_b"] = 0.1 * jax.random.normal(keys[k], (out_dim,), jnp.float32)
    return params


if __name__ == "__main__":
    # Small shapes: batch=2, seq_len=24, embed dim=32, n_filter=8, filters (2,3), out_dim=4
    N, H, dim = 2, 24, 32
    n_filter, filter_size, out_dim = 8, (2, 3), 4

    key = jax.random.PRNGKey(0)
    kp, kx = jax.random.split(key)
    params = make_params(kp, dim, n_filter, filter_size, out_dim)
    x = jax.random.normal(kx, (N, 1, H, dim), jnp.float32)

    ref = jax.block_until_ready(reference_forward(params, x, filter_size))

    # 1) f32 MXU-input path: tight correctness gate.
    prep32 = prepare_params(params, filter_size, compute_dtype=jnp.float32)
    fwd32 = jax.jit(functools.partial(my_text_cnn_forward, filter_size=filter_size,
                                      out_dim=out_dim, compute_dtype=jnp.float32))
    out32 = jax.block_until_ready(fwd32(prep32, x))
    assert out32.shape == (N, out_dim), out32.shape
    assert jnp.allclose(out32, ref, rtol=2e-2, atol=2e-2), (out32, ref)

    # 2) bf16 MXU-input path (v6e/v7x fast path, f32 accumulate + f32 epilogue).
    prep16 = prepare_params(params, filter_size, compute_dtype=jnp.bfloat16)
    fwd16 = jax.jit(functools.partial(my_text_cnn_forward, filter_size=filter_size,
                                      out_dim=out_dim, compute_dtype=jnp.bfloat16))
    out16 = jax.block_until_ready(fwd16(prep16, x))
    assert out16.shape == (N, out_dim), out16.shape
    assert jnp.allclose(out16, ref, rtol=1e-1, atol=1e-1), (out16, ref)

    print("KERNEL_OK")
</pallas_src>

<mosaic_0001>
module attributes {stable_mosaic.version = 11 : i64} {
  func.func @_fused_kernel(%arg0: i32, %arg1: memref<1x48x128xf32, #tpu.memory_space<vmem>>, %arg2: memref<64x128xf32, #tpu.memory_space<vmem>>, %arg3: memref<1x128xf32, #tpu.memory_space<vmem>>, %arg4: memref<256x128xf32, #tpu.memory_space<vmem>>, %arg5: memref<1x128xf32, #tpu.memory_space<vmem>>, %arg6: memref<2x128x128xf32, #tpu.memory_space<vmem>>, %arg7: memref<1x16x288xf32, #tpu.memory_space<vmem>>, %arg8: memref<96x128xf32, #tpu.memory_space<vmem>>, %arg9: memref<1x128xf32, #tpu.memory_space<vmem>>, %arg10: memref<384x128xf32, #tpu.memory_space<vmem>>, %arg11: memref<1x128xf32, #tpu.memory_space<vmem>>, %arg12: memref<2x128x128xf32, #tpu.memory_space<vmem>>, %arg13: memref<1x128xf32, #tpu.memory_space<vmem>>, %arg14: memref<8x128xf32, #tpu.memory_space<vmem>>) attributes {dimension_semantics = [#tpu.dimension_semantics<parallel>], iteration_bounds = array<i64: 1>, scalar_prefetch = 0 : i64, scratch_operands = 0 : i64, tpu.core_type = #tpu.core_type<tc>, window_params = [{transform_indices = @transform_0, window_bounds = array<i64: 1, 48, 128>}, {pipeline_mode = #tpu.pipeline_mode<synchronous>, transform_indices = @transform_1, window_bounds = array<i64: 64, 128>}, {pipeline_mode = #tpu.pipeline_mode<synchronous>, transform_indices = @transform_2, window_bounds = array<i64: 1, 128>}, {pipeline_mode = #tpu.pipeline_mode<synchronous>, transform_indices = @transform_3, window_bounds = array<i64: 256, 128>}, {pipeline_mode = #tpu.pipeline_mode<synchronous>, transform_indices = @transform_4, window_bounds = array<i64: 1, 128>}, {pipeline_mode = #tpu.pipeline_mode<synchronous>, transform_indices = @transform_5, window_bounds = array<i64: 2, 128, 128>}, {transform_indices = @transform_6, window_bounds = array<i64: 1, 16, 288>}, {pipeline_mode = #tpu.pipeline_mode<synchronous>, transform_indices = @transform_7, window_bounds = array<i64: 96, 128>}, {pipeline_mode = #tpu.pipeline_mode<synchronous>, transform_indices = @transform_8, window_bounds = array<i64: 1, 128>}, {pipeline_mode = #tpu.pipeline_mode<synchronous>, transform_indices = @transform_9, window_bounds = array<i64: 384, 128>}, {pipeline_mode = #tpu.pipeline_mode<synchronous>, transform_indices = @transform_10, window_bounds = array<i64: 1, 128>}, {pipeline_mode = #tpu.pipeline_mode<synchronous>, transform_indices = @transform_11, window_bounds = array<i64: 2, 128, 128>}, {pipeline_mode = #tpu.pipeline_mode<synchronous>, transform_indices = @transform_12, window_bounds = array<i64: 1, 128>}, {transform_indices = @transform_13, window_bounds = array<i64: 8, 128>}]} {
    %c0 = arith.constant 0 : index
    %c0_0 = arith.constant 0 : index
    %c0_1 = arith.constant 0 : index
    %0 = vector.load %arg1[%c0, %c0_0, %c0_1] : memref<1x48x128xf32, #tpu.memory_space<vmem>>, vector<1x48x64xf32>
    %1 = vector.shape_cast %0 : vector<1x48x64xf32> to vector<48x64xf32>
    %c0_2 = arith.constant 0 : index
    %c0_3 = arith.constant 0 : index
    %2 = vector.load %arg2[%c0_2, %c0_3] : memref<64x128xf32, #tpu.memory_space<vmem>>, vector<64x128xf32>
    %cst = arith.constant dense<0.000000e+00> : vector<48x128xf32>
    %3 = tpu.matmul %1, %2, %cst {dimension_numbers = #tpu.dot_dimension_numbers<[1], [0], [0], [1], [0, 0, 1, 1], [], []>} : vector<48x64xf32>, vector<64x128xf32>, vector<48x128xf32> -> vector<48x128xf32>
    %c0_4 = arith.constant 0 : index
    %c0_5 = arith.constant 0 : index
    %4 = vector.load %arg3[%c0_4, %c0_5] : memref<1x128xf32, #tpu.memory_space<vmem>>, vector<1x128xf32>
    %5 = vector.broadcast %4 : vector<1x128xf32> to vector<48x128xf32>
    %6 = arith.addf %3, %5 : vector<48x128xf32>
    %cst_6 = arith.constant 0.000000e+00 : f32
    %7 = vector.broadcast %cst_6 : f32 to vector<48x128xf32>
    %8 = arith.maximumf %6, %7 : vector<48x128xf32>
    %c0_7 = arith.constant 0 : index
    %c0_8 = arith.constant 0 : index
    %c64 = arith.constant 64 : index
    %9 = vector.load %arg1[%c0_7, %c0_8, %c64] : memref<1x48x128xf32, #tpu.memory_space<vmem>>, vector<1x48x64xf32>
    %10 = vector.shape_cast %9 : vector<1x48x64xf32> to vector<48x64xf32>
    %c0_9 = arith.constant 0 : index
    %c0_10 = arith.constant 0 : index
    %11 = vector.load %arg2[%c0_9, %c0_10] : memref<64x128xf32, #tpu.memory_space<vmem>>, vector<64x128xf32>
    %cst_11 = arith.constant dense<0.000000e+00> : vector<48x128xf32>
    %12 = tpu.matmul %10, %11, %cst_11 {dimension_numbers = #tpu.dot_dimension_numbers<[1], [0], [0], [1], [0, 0, 1, 1], [], []>} : vector<48x64xf32>, vector<64x128xf32>, vector<48x128xf32> -> vector<48x128xf32>
    %c0_12 = arith.constant 0 : index
    %c0_13 = arith.constant 0 : index
    %13 = vector.load %arg3[%c0_12, %c0_13] : memref<1x128xf32, #tpu.memory_space<vmem>>, vector<1x128xf32>
    %14 = vector.broadcast %13 : vector<1x128xf32> to vector<48x128xf32>
    %15 = arith.addf %12, %14 : vector<48x128xf32>
    %cst_14 = arith.constant 0.000000e+00 : f32
    %16 = vector.broadcast %cst_14 : f32 to vector<48x128xf32>
    %17 = arith.maximumf %15, %16 : vector<48x128xf32>
    %18 = tpu.concatenate %8, %17 in 1 : vector<48x128xf32>, vector<48x128xf32> -> vector<48x256xf32>
    %c0_15 = arith.constant 0 : index
    %c0_16 = arith.constant 0 : index
    %19 = vector.load %arg4[%c0_15, %c0_16] : memref<256x128xf32, #tpu.memory_space<vmem>>, vector<256x128xf32>
    %cst_17 = arith.constant dense<0.000000e+00> : vector<48x128xf32>
    %20 = tpu.matmul %18, %19, %cst_17 {dimension_numbers = #tpu.dot_dimension_numbers<[1], [0], [0], [1], [0, 0, 1, 1], [], []>} : vector<48x256xf32>, vector<256x128xf32>, vector<48x128xf32> -> vector<48x128xf32>
    %c0_18 = arith.constant 0 : index
    %c0_19 = arith.constant 0 : index
    %21 = vector.load %arg5[%c0_18, %c0_19] : memref<1x128xf32, #tpu.memory_space<vmem>>, vector<1x128xf32>
    %22 = vector.broadcast %21 : vector<1x128xf32> to vector<48x128xf32>
    %23 = arith.addf %20, %22 : vector<48x128xf32>
    %cst_20 = arith.constant 0.000000e+00 : f32
    %24 = vector.broadcast %cst_20 : f32 to vector<48x128xf32>
    %25 = arith.maximumf %23, %24 : vector<48x128xf32>
    %26 = vector.shape_cast %25 : vector<48x128xf32> to vector<8x6x128xf32>
    %27 = vector.extract_strided_slice %26 {offsets = [0, 0, 0], sizes = [8, 1, 128], strides = [1, 1, 1]} : vector<8x6x128xf32> to vector<8x1x128xf32>
    %28 = vector.shape_cast %27 : vector<8x1x128xf32> to vector<8x128xf32>
    %cst_21 = arith.constant 0xFF800000 : f32
    %29 = vector.broadcast %cst_21 : f32 to vector<8x128xf32>
    %30 = arith.cmpf ogt, %28, %29 : vector<8x128xf32>
    %31 = vector.extract_strided_slice %26 {offsets = [0, 1, 0], sizes = [8, 1, 128], strides = [1, 1, 1]} : vector<8x6x128xf32> to vector<8x1x128xf32>
    %32 = vector.shape_cast %31 : vector<8x1x128xf32> to vector<8x128xf32>
    %33 = arith.cmpf ogt, %32, %28 : vector<8x128xf32>
    %34 = arith.cmpf ogt, %32, %29 : vector<8x128xf32>
    %35 = arith.select %34, %32, %29 : vector<8x128xi1>, vector<8x128xf32>
    %36 = arith.select %33, %28, %35 : vector<8x128xi1>, vector<8x128xf32>
    %cst_22 = arith.constant dense<true> : vector<8x128xi1>
    %37 = arith.xori %33, %cst_22 : vector<8x128xi1>
    %38 = arith.ori %34, %30 : vector<8x128xi1>
    %39 = arith.andi %37, %38 : vector<8x128xi1>
    %40 = arith.select %33, %32, %28 : vector<8x128xi1>, vector<8x128xf32>
    %41 = vector.extract_strided_slice %26 {offsets = [0, 2, 0], sizes = [8, 1, 128], strides = [1, 1, 1]} : vector<8x6x128xf32> to vector<8x1x128xf32>
    %42 = vector.shape_cast %41 : vector<8x1x128xf32> to vector<8x128xf32>
    %43 = arith.cmpf ogt, %42, %40 : vector<8x128xf32>
    %44 = arith.cmpf ogt, %42, %36 : vector<8x128xf32>
    %45 = arith.select %44, %42, %36 : vector<8x128xi1>, vector<8x128xf32>
    %46 = arith.select %43, %40, %45 : vector<8x128xi1>, vector<8x128xf32>
    %cst_23 = arith.constant dense<true> : vector<8x128xi1>
    %47 = arith.xori %43, %cst_23 : vector<8x128xi1>
    %48 = arith.ori %44, %39 : vector<8x128xi1>
    %49 = arith.andi %47, %48 : vector<8x128xi1>
    %50 = arith.select %43, %42, %40 : vector<8x128xi1>, vector<8x128xf32>
    %51 = vector.extract_strided_slice %26 {offsets = [0, 3, 0], sizes = [8, 1, 128], strides = [1, 1, 1]} : vector<8x6x128xf32> to vector<8x1x128xf32>
    %52 = vector.shape_cast %51 : vector<8x1x128xf32> to vector<8x128xf32>
    %53 = arith.cmpf ogt, %52, %50 : vector<8x128xf32>
    %54 = arith.cmpf ogt, %52, %46 : vector<8x128xf32>
    %55 = arith.select %54, %52, %46 : vector<8x128xi1>, vector<8x128xf32>
    %56 = arith.select %53, %50, %55 : vector<8x128xi1>, vector<8x128xf32>
    %cst_24 = arith.constant dense<true> : vector<8x128xi1>
    %57 = arith.xori %53, %cst_24 : vector<8x128xi1>
    %58 = arith.ori %54, %49 : vector<8x128xi1>
    %59 = arith.andi %57, %58 : vector<8x128xi1>
    %60 = arith.select %53, %52, %50 : vector<8x128xi1>, vector<8x128xf32>
    %61 = vector.extract_strided_slice %26 {offsets = [0, 4, 0], sizes = [8, 1, 128], strides = [1, 1, 1]} : vector<8x6x128xf32> to vector<8x1x128xf32>
    %62 = vector.shape_cast %61 : vector<8x1x128xf32> to vector<8x128xf32>
    %63 = arith.cmpf ogt, %62, %60 : vector<8x128xf32>
    %64 = arith.cmpf ogt, %62, %56 : vector<8x128xf32>
    %65 = arith.select %64, %62, %56 : vector<8x128xi1>, vector<8x128xf32>
    %66 = arith.select %63, %60, %65 : vector<8x128xi1>, vector<8x128xf32>
    %cst_25 = arith.constant dense<true> : vector<8x128xi1>
    %67 = arith.xori %63, %cst_25 : vector<8x128xi1>
    %68 = arith.ori %64, %59 : vector<8x128xi1>
    %69 = arith.andi %67, %68 : vector<8x128xi1>
    %70 = arith.select %63, %62, %60 : vector<8x128xi1>, vector<8x128xf32>
    %71 = vector.extract_strided_slice %26 {offsets = [0, 5, 0], sizes = [8, 1, 128], strides = [1, 1, 1]} : vector<8x6x128xf32> to vector<8x1x128xf32>
    %72 = vector.shape_cast %71 : vector<8x1x128xf32> to vector<8x128xf32>
    %73 = arith.cmpf ogt, %72, %70 : vector<8x128xf32>
    %74 = arith.cmpf ogt, %72, %66 : vector<8x128xf32>
    %75 = arith.select %74, %72, %66 : vector<8x128xi1>, vector<8x128xf32>
    %76 = arith.select %73, %70, %75 : vector<8x128xi1>, vector<8x128xf32>
    %cst_26 = arith.constant dense<true> : vector<8x128xi1>
    %77 = arith.xori %73, %cst_26 : vector<8x128xi1>
    %78 = arith.ori %74, %69 : vector<8x128xi1>
    %79 = arith.andi %77, %78 : vector<8x128xi1>
    %80 = arith.select %73, %72, %70 : vector<8x128xi1>, vector<8x128xf32>
    %81 = arith.select %79, %80, %76 : vector<8x128xi1>, vector<8x128xf32>
    %82 = arith.select %79, %76, %80 : vector<8x128xi1>, vector<8x128xf32>
    %c0_27 = arith.constant 0 : index
    %c0_28 = arith.constant 0 : index
    %c0_29 = arith.constant 0 : index
    %83 = vector.load %arg6[%c0_27, %c0_28, %c0_29] : memref<2x128x128xf32, #tpu.memory_space<vmem>>, vector<1x128x128xf32>
    %84 = vector.shape_cast %83 : vector<1x128x128xf32> to vector<128x128xf32>
    %cst_30 = arith.constant dense<0.000000e+00> : vector<8x128xf32>
    %85 = tpu.matmul %81, %84, %cst_30 {dimension_numbers = #tpu.dot_dimension_numbers<[1], [0], [0], [1], [0, 0, 1, 1], [], []>} : vector<8x128xf32>, vector<128x128xf32>, vector<8x128xf32> -> vector<8x128xf32>
    %c1 = arith.constant 1 : index
    %c0_31 = arith.constant 0 : index
    %c0_32 = arith.constant 0 : index
    %86 = vector.load %arg6[%c1, %c0_31, %c0_32] : memref<2x128x128xf32, #tpu.memory_space<vmem>>, vector<1x128x128xf32>
    %87 = vector.shape_cast %86 : vector<1x128x128xf32> to vector<128x128xf32>
    %cst_33 = arith.constant dense<0.000000e+00> : vector<8x128xf32>
    %88 = tpu.matmul %82, %87, %cst_33 {dimension_numbers = #tpu.dot_dimension_numbers<[1], [0], [0], [1], [0, 0, 1, 1], [], []>} : vector<8x128xf32>, vector<128x128xf32>, vector<8x128xf32> -> vector<8x128xf32>
    %89 = arith.addf %85, %88 : vector<8x128xf32>
    %c0_34 = arith.constant 0 : index
    %c0_35 = arith.constant 0 : index
    %c0_36 = arith.constant 0 : index
    %90 = vector.load %arg7[%c0_34, %c0_35, %c0_36] : memref<1x16x288xf32, #tpu.memory_space<vmem>>, vector<1x16x96xf32>
    %91 = vector.shape_cast %90 : vector<1x16x96xf32> to vector<16x96xf32>
    %c0_37 = arith.constant 0 : index
    %c0_38 = arith.constant 0 : index
    %92 = vector.load %arg8[%c0_37, %c0_38] : memref<96x128xf32, #tpu.memory_space<vmem>>, vector<96x128xf32>
    %cst_39 = arith.constant dense<0.000000e+00> : vector<16x128xf32>
    %93 = tpu.matmul %91, %92, %cst_39 {dimension_numbers = #tpu.dot_dimension_numbers<[1], [0], [0], [1], [0, 0, 1, 1], [], []>} : vector<16x96xf32>, vector<96x128xf32>, vector<16x128xf32> -> vector<16x128xf32>
    %c0_40 = arith.constant 0 : index
    %c0_41 = arith.constant 0 : index
    %94 = vector.load %arg9[%c0_40, %c0_41] : memref<1x128xf32, #tpu.memory_space<vmem>>, vector<1x128xf32>
    %95 = vector.broadcast %94 : vector<1x128xf32> to vector<16x128xf32>
    %96 = arith.addf %93, %95 : vector<16x128xf32>
    %cst_42 = arith.constant 0.000000e+00 : f32
    %97 = vector.broadcast %cst_42 : f32 to vector<16x128xf32>
    %98 = arith.maximumf %96, %97 : vector<16x128xf32>
    %c0_43 = arith.constant 0 : index
    %c0_44 = arith.constant 0 : index
    %c96 = arith.constant 96 : index
    %99 = vector.load %arg7[%c0_43, %c0_44, %c96] : memref<1x16x288xf32, #tpu.memory_space<vmem>>, vector<1x16x96xf32>
    %100 = vector.shape_cast %99 : vector<1x16x96xf32> to vector<16x96xf32>
    %c0_45 = arith.constant 0 : index
    %c0_46 = arith.constant 0 : index
    %101 = vector.load %arg8[%c0_45, %c0_46] : memref<96x128xf32, #tpu.memory_space<vmem>>, vector<96x128xf32>
    %cst_47 = arith.constant dense<0.000000e+00> : vector<16x128xf32>
    %102 = tpu.matmul %100, %101, %cst_47 {dimension_numbers = #tpu.dot_dimension_numbers<[1], [0], [0], [1], [0, 0, 1, 1], [], []>} : vector<16x96xf32>, vector<96x128xf32>, vector<16x128xf32> -> vector<16x128xf32>
    %c0_48 = arith.constant 0 : index
    %c0_49 = arith.constant 0 : index
    %103 = vector.load %arg9[%c0_48, %c0_49] : memref<1x128xf32, #tpu.memory_space<vmem>>, vector<1x128xf32>
    %104 = vector.broadcast %103 : vector<1x128xf32> to vector<16x128xf32>
    %105 = arith.addf %102, %104 : vector<16x128xf32>
    %cst_50 = arith.constant 0.000000e+00 : f32
    %106 = vector.broadcast %cst_50 : f32 to vector<16x128xf32>
    %107 = arith.maximumf %105, %106 : vector<16x128xf32>
    %c0_51 = arith.constant 0 : index
    %c0_52 = arith.constant 0 : index
    %c192 = arith.constant 192 : index
    %108 = vector.load %arg7[%c0_51, %c0_52, %c192] : memref<1x16x288xf32, #tpu.memory_space<vmem>>, vector<1x16x96xf32>
    %109 = vector.shape_cast %108 : vector<1x16x96xf32> to vector<16x96xf32>
    %c0_53 = arith.constant 0 : index
    %c0_54 = arith.constant 0 : index
    %110 = vector.load %arg8[%c0_53, %c0_54] : memref<96x128xf32, #tpu.memory_space<vmem>>, vector<96x128xf32>
    %cst_55 = arith.constant dense<0.000000e+00> : vector<16x128xf32>
    %111 = tpu.matmul %109, %110, %cst_55 {dimension_numbers = #tpu.dot_dimension_numbers<[1], [0], [0], [1], [0, 0, 1, 1], [], []>} : vector<16x96xf32>, vector<96x128xf32>, vector<16x128xf32> -> vector<16x128xf32>
    %c0_56 = arith.constant 0 : index
    %c0_57 = arith.constant 0 : index
    %112 = vector.load %arg9[%c0_56, %c0_57] : memref<1x128xf32, #tpu.memory_space<vmem>>, vector<1x128xf32>
    %113 = vector.broadcast %112 : vector<1x128xf32> to vector<16x128xf32>
    %114 = arith.addf %111, %113 : vector<16x128xf32>
    %cst_58 = arith.constant 0.000000e+00 : f32
    %115 = vector.broadcast %cst_58 : f32 to vector<16x128xf32>
    %116 = arith.maximumf %114, %115 : vector<16x128xf32>
    %117 = tpu.concatenate %98, %107, %116 in 1 : vector<16x128xf32>, vector<16x128xf32>, vector<16x128xf32> -> vector<16x384xf32>
    %c0_59 = arith.constant 0 : index
    %c0_60 = arith.constant 0 : index
    %118 = vector.load %arg10[%c0_59, %c0_60] : memref<384x128xf32, #tpu.memory_space<vmem>>, vector<384x128xf32>
    %cst_61 = arith.constant dense<0.000000e+00> : vector<16x128xf32>
    %119 = tpu.matmul %117, %118, %cst_61 {dimension_numbers = #tpu.dot_dimension_numbers<[1], [0], [0], [1], [0, 0, 1, 1], [], []>} : vector<16x384xf32>, vector<384x128xf32>, vector<16x128xf32> -> vector<16x128xf32>
    %c0_62 = arith.constant 0 : index
    %c0_63 = arith.constant 0 : index
    %120 = vector.load %arg11[%c0_62, %c0_63] : memref<1x128xf32, #tpu.memory_space<vmem>>, vector<1x128xf32>
    %121 = vector.broadcast %120 : vector<1x128xf32> to vector<16x128xf32>
    %122 = arith.addf %119, %121 : vector<16x128xf32>
    %cst_64 = arith.constant 0.000000e+00 : f32
    %123 = vector.broadcast %cst_64 : f32 to vector<16x128xf32>
    %124 = arith.maximumf %122, %123 : vector<16x128xf32>
    %125 = vector.shape_cast %124 : vector<16x128xf32> to vector<8x2x128xf32>
    %126 = vector.extract_strided_slice %125 {offsets = [0, 0, 0], sizes = [8, 1, 128], strides = [1, 1, 1]} : vector<8x2x128xf32> to vector<8x1x128xf32>
    %127 = vector.shape_cast %126 : vector<8x1x128xf32> to vector<8x128xf32>
    %cst_65 = arith.constant 0xFF800000 : f32
    %128 = vector.broadcast %cst_65 : f32 to vector<8x128xf32>
    %129 = arith.cmpf ogt, %127, %128 : vector<8x128xf32>
    %130 = vector.extract_strided_slice %125 {offsets = [0, 1, 0], sizes = [8, 1, 128], strides = [1, 1, 1]} : vector<8x2x128xf32> to vector<8x1x128xf32>
    %131 = vector.shape_cast %130 : vector<8x1x128xf32> to vector<8x128xf32>
    %132 = arith.cmpf ogt, %131, %127 : vector<8x128xf32>
    %133 = arith.cmpf ogt, %131, %128 : vector<8x128xf32>
    %134 = arith.select %133, %131, %128 : vector<8x128xi1>, vector<8x128xf32>
    %135 = arith.select %132, %127, %134 : vector<8x128xi1>, vector<8x128xf32>
    %cst_66 = arith.constant dense<true> : vector<8x128xi1>
    %136 = arith.xori %132, %cst_66 : vector<8x128xi1>
    %137 = arith.ori %133, %129 : vector<8x128xi1>
    %138 = arith.andi %136, %137 : vector<8x128xi1>
    %139 = arith.select %132, %131, %127 : vector<8x128xi1>, vector<8x128xf32>
    %140 = arith.select %138, %139, %135 : vector<8x128xi1>, vector<8x128xf32>
    %141 = arith.select %138, %135, %139 : vector<8x128xi1>, vector<8x128xf32>
    %c0_67 = arith.constant 0 : index
    %c0_68 = arith.constant 0 : index
    %c0_69 = arith.constant 0 : index
    %142 = vector.load %arg12[%c0_67, %c0_68, %c0_69] : memref<2x128x128xf32, #tpu.memory_space<vmem>>, vector<1x128x128xf32>
    %143 = vector.shape_cast %142 : vector<1x128x128xf32> to vector<128x128xf32>
    %cst_70 = arith.constant dense<0.000000e+00> : vector<8x128xf32>
    %144 = tpu.matmul %140, %143, %cst_70 {dimension_numbers = #tpu.dot_dimension_numbers<[1], [0], [0], [1], [0, 0, 1, 1], [], []>} : vector<8x128xf32>, vector<128x128xf32>, vector<8x128xf32> -> vector<8x128xf32>
    %c1_71 = arith.constant 1 : index
    %c0_72 = arith.constant 0 : index
    %c0_73 = arith.constant 0 : index
    %145 = vector.load %arg12[%c1_71, %c0_72, %c0_73] : memref<2x128x128xf32, #tpu.memory_space<vmem>>, vector<1x128x128xf32>
    %146 = vector.shape_cast %145 : vector<1x128x128xf32> to vector<128x128xf32>
    %cst_74 = arith.constant dense<0.000000e+00> : vector<8x128xf32>
    %147 = tpu.matmul %141, %146, %cst_74 {dimension_numbers = #tpu.dot_dimension_numbers<[1], [0], [0], [1], [0, 0, 1, 1], [], []>} : vector<8x128xf32>, vector<128x128xf32>, vector<8x128xf32> -> vector<8x128xf32>
    %148 = arith.addf %144, %147 : vector<8x128xf32>
    %149 = arith.addf %89, %148 : vector<8x128xf32>
    %c0_75 = arith.constant 0 : index
    %c0_76 = arith.constant 0 : index
    %150 = vector.load %arg13[%c0_75, %c0_76] : memref<1x128xf32, #tpu.memory_space<vmem>>, vector<1x128xf32>
    %151 = vector.broadcast %150 : vector<1x128xf32> to vector<8x128xf32>
    %152 = arith.addf %149, %151 : vector<8x128xf32>
    %c0_77 = arith.constant 0 : index
    %c0_78 = arith.constant 0 : index
    %153 = vector.load %arg14[%c0_77, %c0_78] : memref<8x128xf32, #tpu.memory_space<vmem>>, vector<8x128xf32>
    tpu.vector_store %arg14[%c0_77, %c0_78], %152 {strides = array<i32>} : memref<8x128xf32, #tpu.memory_space<vmem>>, vector<8x128xf32>,
    return
  }
  func.func @transform_0(%arg0: i32) -> (i32, i32, i32) {
    %c0_i32 = arith.constant 0 : i32
    %c0_i32_0 = arith.constant 0 : i32
    %c0_i32_1 = arith.constant 0 : i32
    return %arg0, %c0_i32, %c0_i32_0 : i32, i32, i32
  }
  func.func @transform_1(%arg0: i32) -> (i32, i32) {
    %c0_i32 = arith.constant 0 : i32
    %c0_i32_0 = arith.constant 0 : i32
    %c0_i32_1 = arith.constant 0 : i32
    return %c0_i32, %c0_i32_0 : i32, i32
  }
  func.func @transform_2(%arg0: i32) -> (i32, i32) {
    %c0_i32 = arith.constant 0 : i32
    %c0_i32_0 = arith.constant 0 : i32
    %c0_i32_1 = arith.constant 0 : i32
    return %c0_i32, %c0_i32_0 : i32, i32
  }
  func.func @transform_3(%arg0: i32) -> (i32, i32) {
    %c0_i32 = arith.constant 0 : i32
    %c0_i32_0 = arith.constant 0 : i32
    %c0_i32_1 = arith.constant 0 : i32
    return %c0_i32, %c0_i32_0 : i32, i32
  }
  func.func @transform_4(%arg0: i32) -> (i32, i32) {
    %c0_i32 = arith.constant 0 : i32
    %c0_i32_0 = arith.constant 0 : i32
    %c0_i32_1 = arith.constant 0 : i32
    return %c0_i32, %c0_i32_0 : i32, i32
  }
  func.func @transform_5(%arg0: i32) -> (i32, i32, i32) {
    %c0_i32 = arith.constant 0 : i32
    %c0_i32_0 = arith.constant 0 : i32
    %c0_i32_1 = arith.constant 0 : i32
    %c0_i32_2 = arith.constant 0 : i32
    return %c0_i32, %c0_i32_0, %c0_i32_1 : i32, i32, i32
  }
  func.func @transform_6(%arg0: i32) -> (i32, i32, i32) {
    %c0_i32 = arith.constant 0 : i32
    %c0_i32_0 = arith.constant 0 : i32
    %c0_i32_1 = arith.constant 0 : i32
    return %arg0, %c0_i32, %c0_i32_0 : i32, i32, i32
  }
  func.func @transform_7(%arg0: i32) -> (i32, i32) {
    %c0_i32 = arith.constant 0 : i32
    %c0_i32_0 = arith.constant 0 : i32
    %c0_i32_1 = arith.constant 0 : i32
    return %c0_i32, %c0_i32_0 : i32, i32
  }
  func.func @transform_8(%arg0: i32) -> (i32, i32) {
    %c0_i32 = arith.constant 0 : i32
    %c0_i32_0 = arith.constant 0 : i32
    %c0_i32_1 = arith.constant 0 : i32
    return %c0_i32, %c0_i32_0 : i32, i32
  }
  func.func @transform_9(%arg0: i32) -> (i32, i32) {
    %c0_i32 = arith.constant 0 : i32
    %c0_i32_0 = arith.constant 0 : i32
    %c0_i32_1 = arith.constant 0 : i32
    return %c0_i32, %c0_i32_0 : i32, i32
  }
  func.func @transform_10(%arg0: i32) -> (i32, i32) {
    %c0_i32 = arith.constant 0 : i32
    %c0_i32_0 = arith.constant 0 : i32
    %c0_i32_1 = arith.constant 0 : i32
    return %c0_i32, %c0_i32_0 : i32, i32
  }
  func.func @transform_11(%arg0: i32) -> (i32, i32, i32) {
    %c0_i32 = arith.constant 0 : i32
    %c0_i32_0 = arith.constant 0 : i32
    %c0_i32_1 = arith.constant 0 : i32
    %c0_i32_2 = arith.constant 0 : i32
    return %c0_i32, %c0_i32_0, %c0_i32_1 : i32, i32, i32
  }
  func.func @transform_12(%arg0: i32) -> (i32, i32) {
    %c0_i32 = arith.constant 0 : i32
    %c0_i32_0 = arith.constant 0 : i32
    %c0_i32_1 = arith.constant 0 : i32
    return %c0_i32, %c0_i32_0 : i32, i32
  }
  func.func @transform_13(%arg0: i32) -> (i32, i32) {
    %c0_i32 = arith.constant 0 : i32
    %c0_i32_0 = arith.constant 0 : i32
    return %arg0, %c0_i32 : i32, i32
  }
}

</mosaic_0001>

<bundles_post_ra>
// kernel: squeeze.2
= control target key start
LH: loop header
LB: loop body
LE: loop exit
PB: predicated region body
PF: predicated region fallthrough
CT: control target
= control target key end

     0   :  { %s199_s10 = smov 96   ;;  %s200_s25 = smov 64   ;;  %vm3_vm0 = vcmask 261120   ;;  %vm34_vm1 = vcmask 1048320   ;;  %vm75_vm2 = vcmask 785920   ;;  %vm116_vm3 = vcmask 523520   ;;  %s374_s0 = inlined_call_operand.vmem [shape: f32[8,1,24,32], index: 0, kind: input, shape index: {}]   ;;  %s375_s1 = inlined_call_operand.vmem [shape: f32[1,48,128], index: 1, kind: output, shape index: {}]  }
   0x1   :  { %v166_v0 = vld [vmem:[%s374_s0 + $0x23] ss:$4 sm:$0xff]   ;;  %v175_v6 = vld [vmem:[%s374_s0 + $0x82] ss:$4 sm:$0xff]   ;;  %v186_v12 = vld [vmem:[%s374_s0 + $0x81] ss:$4 sm:$0xff]  }
   0x2   :  { %v163_v1 = vld [vmem:[%s374_s0 + $0x3] ss:$4 sm:$0xff]   ;;  %45 = vrot.lane.b32.xlu1 %v166_v0, %s199_s10  ;;  %v174_v7 = vld [vmem:[%s374_s0 + $0x2] ss:$4 sm:$0xff]   ;;  %v185_v13 = vld [vmem:[%s374_s0 + $0x1] ss:$4 sm:$0xff]  }
   0x3   :  { %32 = vrot.lane.b32.xlu0 %v163_v1, %s199_s10  ;;  %v170_v2 = vld [vmem:[%s374_s0 + $0x43] ss:$4 sm:$0xff]   ;;  %v177_v8 = vld [vmem:[%s374_s0 + $0x22] ss:$4 sm:$0xff]   ;;  %v188_v14 = vld [vmem:[%s374_s0 + $0x21] ss:$4 sm:$0xff]  }
   0x4   :  { %59 = vrot.lane.b32.xlu2 %v170_v2, %s199_s10  ;;  %v168_v3 = vld [vmem:[%s374_s0 + $0xa3] ss:$4 sm:$0xff]   ;;  %v181_v9 = vld [vmem:[%s374_s0 + $0x42] ss:$4 sm:$0xff]   ;;  %s201_s9 = smov 32  }
   0x5   :  { %v164_v4 = vld [vmem:[%s374_s0 + $0x83] ss:$4 sm:$0xff]   ;;  %v179_v10 = vld [vmem:[%s374_s0 + $0xa2] ss:$4 sm:$0xff]   ;;  %v192_v15 = vld [vmem:[%s374_s0 + $0x41] ss:$4 sm:$0xff]  }
   0x6   :  { %v172_v5 = vld [vmem:[%s374_s0 + $0x63] ss:$4 sm:$0xff]   ;;  %v183_v11 = vld [vmem:[%s374_s0 + $0x62] ss:$4 sm:$0xff]   ;;  %v190_v16 = vld [vmem:[%s374_s0 + $0xa1] ss:$4 sm:$0xff]  }
   0x7   :  { %v194_v17 = vld [vmem:[%s374_s0 + $0x61] ss:$4 sm:$0xff]   ;;  %v155_v18 = vld [vmem:[%s374_s0 + $0x40] ss:$4 sm:$0xff]  }
   0x8   :  { %156 = vst.msk [vmem:[%s375_s1 + $0x10] sm:$0xff] %vm3_vm0, %v155_v18   ;;  %v153_v19 = vld [vmem:[%s374_s0 + $0x20] ss:$4 sm:$0xff]  }
   0x9   :  { %v2_v20 = vld [vmem:[%s374_s0] ss:$4 sm:$0xff]   ;;  %154 = vst.msk [vmem:[%s375_s1 + $0x8] sm:$0xff] %vm3_vm0, %v153_v19  }
   0xa   :  { %52 = vrot.lane.b32.xlu1 %v168_v3, %s199_s10  ;;  %4 = vst.msk [vmem:[%s375_s1] sm:$0xff] %vm3_vm0, %v2_v20   ;;  %v157_v21 = vld [vmem:[%s374_s0 + $0x60] ss:$4 sm:$0xff]  }
   0xb   :  { %38 = vrot.lane.b32.xlu0 %v164_v4, %s199_s10  ;;  %158 = vst.msk [vmem:[%s375_s1 + $0x18] sm:$0xff] %vm3_vm0, %v157_v21   ;;  %v161_v22 = vld [vmem:[%s374_s0 + $0xa0] ss:$4 sm:$0xff]  }
   0xc   :  { %66 = vrot.lane.b32.xlu2 %v172_v5, %s199_s10  ;;  %v159_v23 = vld [vmem:[%s374_s0 + $0x80] ss:$4 sm:$0xff]   ;;  %162 = vst.msk [vmem:[%s375_s1 + $0x28] sm:$0xff] %vm3_vm0, %v161_v22  }
   0xd   :  { %160 = vst.msk [vmem:[%s375_s1 + $0x20] sm:$0xff] %vm3_vm0, %v159_v23  }
  0x12   :  { %79 = vrot.lane.b32.xlu1 %v175_v6, %s200_s25 }
  0x13   :  { %73 = vrot.lane.b32.xlu0 %v174_v7, %s200_s25 }
  0x14   :  { %86 = vrot.lane.b32.xlu2 %v177_v8, %s200_s25 }
  0x1a   :  { %100 = vrot.lane.b32.xlu1 %v181_v9, %s200_s25 }
  0x1b   :  { %93 = vrot.lane.b32.xlu0 %v179_v10, %s200_s25 }
  0x1c   :  { %107 = vrot.lane.b32.xlu2 %v183_v11, %s200_s25 }
  0x22   :  { %120 = vrot.lane.b32.xlu1 %v186_v12, %s201_s9 }
  0x23   :  { %114 = vrot.lane.b32.xlu0 %v185_v13, %s201_s9 }
  0x24   :  { %127 = vrot.lane.b32.xlu2 %v188_v14, %s201_s9 }
  0x2a   :  { %141 = vrot.lane.b32.xlu1 %v192_v15, %s201_s9 }
  0x2b   :  { %134 = vrot.lane.b32.xlu0 %v190_v16, %s201_s9 }
  0x2c   :  { %148 = vrot.lane.b32.xlu2 %v194_v17, %s201_s9 }
  0x5e   :  { %v60_v24 = vpop.permute.xlu2 %59  }
  0x5f   :  { %171 = vst.msk [vmem:[%s375_s1 + $0x10] sm:$0xff] %vm34_vm1, %v60_v24  }
  0x66   :  { %v67_v25 = vpop.permute.xlu2 %66  }
  0x67   :  { %173 = vst.msk [vmem:[%s375_s1 + $0x18] sm:$0xff] %vm34_vm1, %v67_v25  }
  0x6e   :  { %v87_v26 = vpop.permute.xlu2 %86  }
  0x74   :  { %v46_v27 = vpop.permute.xlu1 %45  }
  0x75   :  { %v33_v28 = vpop.permute.xlu0 %32   ;;  %167 = vst.msk [vmem:[%s375_s1 + $0x8] sm:$0xff] %vm34_vm1, %v46_v27  }
  0x76   :  { %35 = vst.msk [vmem:[%s375_s1] sm:$0xff] %vm34_vm1, %v33_v28   ;;  %v108_v29 = vpop.permute.xlu2 %107  }
  0x77   :  { %178 = vst.msk [vmem:[%s375_s1 + $0x8] sm:$0xff] %vm75_vm2, %v87_v26  }
  0x78   :  { %184 = vst.msk [vmem:[%s375_s1 + $0x18] sm:$0xff] %vm75_vm2, %v108_v29  }
  0x7c   :  { %v53_v30 = vpop.permute.xlu1 %52  }
  0x7d   :  { %v39_v31 = vpop.permute.xlu0 %38   ;;  %169 = vst.msk [vmem:[%s375_s1 + $0x28] sm:$0xff] %vm34_vm1, %v53_v30  }
  0x7e   :  { %165 = vst.msk [vmem:[%s375_s1 + $0x20] sm:$0xff] %vm34_vm1, %v39_v31   ;;  %v128_v32 = vpop.permute.xlu2 %127  }
  0x7f   :  { %189 = vst.msk [vmem:[%s375_s1 + $0x8] sm:$0xff] %vm116_vm3, %v128_v32  }
  0x84   :  { %v80_v33 = vpop.permute.xlu1 %79  }
  0x85   :  { %v74_v34 = vpop.permute.xlu0 %73   ;;  %176 = vst.msk [vmem:[%s375_s1 + $0x20] sm:$0xff] %vm75_vm2, %v80_v33  }
  0x86   :  { %76 = vst.msk [vmem:[%s375_s1] sm:$0xff] %vm75_vm2, %v74_v34   ;;  %v149_v35 = vpop.permute.xlu2 %148  }
  0x87   :  { %195 = vst.msk [vmem:[%s375_s1 + $0x18] sm:$0xff] %vm116_vm3, %v149_v35  }
  0x8c   :  { %v101_v36 = vpop.permute.xlu1 %100  }
  0x8d   :  { %v94_v37 = vpop.permute.xlu0 %93   ;;  %182 = vst.msk [vmem:[%s375_s1 + $0x10] sm:$0xff] %vm75_vm2, %v101_v36  }
  0x8e   :  { %180 = vst.msk [vmem:[%s375_s1 + $0x28] sm:$0xff] %vm75_vm2, %v94_v37  }
  0x94   :  { %v121_v38 = vpop.permute.xlu1 %120  }
  0x95   :  { %v115_v39 = vpop.permute.xlu0 %114   ;;  %187 = vst.msk [vmem:[%s375_s1 + $0x20] sm:$0xff] %vm116_vm3, %v121_v38  }
  0x96   :  { %117 = vst.msk [vmem:[%s375_s1] sm:$0xff] %vm116_vm3, %v115_v39  }
  0x9c   :  { %v142_v40 = vpop.permute.xlu1 %141  }
  0x9d   :  { %v135_v41 = vpop.permute.xlu0 %134   ;;  %193 = vst.msk [vmem:[%s375_s1 + $0x10] sm:$0xff] %vm116_vm3, %v142_v40  }
  0x9e   :  { %191 = vst.msk [vmem:[%s375_s1 + $0x28] sm:$0xff] %vm116_vm3, %v135_v41  }

// kernel: squeeze.3
= control target key start
LH: loop header
LB: loop body
LE: loop exit
PB: predicated region body
PF: predicated region fallthrough
CT: control target
= control target key end

     0   :  { %vm86_vm0 = vcmask 1043458   ;;  %s126_s6 = smov 3  ;;  %vm91_vm1 = vcmask 1045508   ;;  %vm96_vm2 = vcmask 1047558   ;;  %s129_s9 = smov 12  ;;  %vm3_vm3 = vcmask 261120   ;;  %s800_s0 = inlined_call_operand.vmem [shape: f32[8,1,18,32], index: 0, kind: input, shape index: {}]   ;;  %s801_s1 = inlined_call_operand.vmem [shape: f32[1,16,288], index: 1, kind: output, shape index: {}]  }
   0x1   :  { %v392_v0 = vld [vmem:[%s800_s0 + $0x7] ss:$9 sm:%s126_s6]   ;;  %s134_s10 = smov 48  ;;  %v393_v1 = vld [vmem:[%s800_s0 + $0xd] ss:$9 sm:%s129_s9]   ;;  %s139_s15 = smov 192 }
   0x2   :  { %v394_v2 = vld [vmem:[%s800_s0 + $0x13] ss:$9 sm:%s134_s10]   ;;  %s81_s16 = smov 3  ;;  %v132_v3 = vsel %vm86_vm0, %v393_v1, %v392_v0  ;;  %v395_v4 = vld [vmem:[%s800_s0 + $0x19] ss:$9 sm:%s139_s15]   ;;  %s84_s21 = smov 12 }
   0x3   :  { %v383_v5 = vld [vmem:[%s800_s0 + $0x3] ss:$9 sm:%s81_s16]   ;;  %s89_s22 = smov 48  ;;  %v137_v6 = vsel %vm91_vm1, %v394_v2, %v132_v3  ;;  %v384_v7 = vld [vmem:[%s800_s0 + $0x9] ss:$9 sm:%s84_s21]   ;;  %s94_s27 = smov 192 }
   0x4   :  { %v385_v8 = vld [vmem:[%s800_s0 + $0xf] ss:$9 sm:%s89_s22]   ;;  %s149_s28 = smov 3  ;;  %v142_v9 = vsel %vm96_vm2, %v395_v4, %v137_v6  ;;  %v87_v10 = vsel %vm86_vm0, %v384_v7, %v383_v5  ;;  %v386_v11 = vld [vmem:[%s800_s0 + $0x15] ss:$9 sm:%s94_s27]   ;;  %s152_s4 = smov 12 }
   0x5   :  { %v397_v12 = vld [vmem:[%s800_s0 + $0x63] ss:$9 sm:%s149_s28]   ;;  %s157_s5 = smov 48  ;;  %s443_s6 = smov 96   ;;  %v92_v13 = vsel %vm91_vm1, %v385_v8, %v87_v10  ;;  %v398_v14 = vld [vmem:[%s800_s0 + $0x69] ss:$9 sm:%s152_s4]  }
   0x6   :  { %143 = vrot.lane.b32.xlu1 %v142_v9, %s443_s6  ;;  %s162_s9 = smov 192  ;;  %s103_s10 = smov 3  ;;  %v97_v15 = vsel %vm96_vm2, %v386_v11, %v92_v13  ;;  %v155_v16 = vsel %vm86_vm0, %v398_v14, %v397_v12  ;;  %v399_v17 = vld [vmem:[%s800_s0 + $0x6f] ss:$9 sm:%s157_s5]   ;;  %vm100_vm4 = vcmask 1048320   ;;  %vm191_vm5 = vcmask 785920  }
   0x7   :  { %v400_v18 = vld [vmem:[%s800_s0 + $0x75] ss:$9 sm:%s162_s9]   ;;  %s106_s15 = smov 12  ;;  %s111_s16 = smov 48  ;;  %98 = vrot.lane.b32.xlu0 %v97_v15, %s443_s6  ;;  %v160_v19 = vsel %vm91_vm1, %v399_v17, %v155_v16  ;;  %vm282_vm6 = vcmask 523520  }
   0x8   :  { %v387_v20 = vld [vmem:[%s800_s0 + $0x67] ss:$9 sm:%s103_s10]   ;;  %s116_s19 = smov 192  ;;  %v388_v21 = vld [vmem:[%s800_s0 + $0x6d] ss:$9 sm:%s106_s15]   ;;  %s240_s24 = smov 3  ;;  %v165_v26 = vsel %vm96_vm2, %v400_v18, %v160_v19 }
   0x9   :  { %v389_v22 = vld [vmem:[%s800_s0 + $0x73] ss:$9 sm:%s111_s16]   ;;  %s243_s25 = smov 12  ;;  %v109_v23 = vsel %vm86_vm0, %v388_v21, %v387_v20  ;;  %v390_v24 = vld [vmem:[%s800_s0 + $0x79] ss:$9 sm:%s116_s19]   ;;  %s248_s30 = smov 48 }
   0xa   :  { %v416_v25 = vld [vmem:[%s800_s0 + $0x62] ss:$9 sm:%s240_s24]   ;;  %s253_s2 = smov 192  ;;  %v114_v27 = vsel %vm91_vm1, %v389_v22, %v109_v23  ;;  %v417_v28 = vld [vmem:[%s800_s0 + $0x68] ss:$9 sm:%s243_s25]   ;;  %s217_s5 = smov 3 }
   0xb   :  { %s220_s7 = smov 12  ;;  %v411_v29 = vld [vmem:[%s800_s0 + $0x6] ss:$9 sm:%s217_s5]   ;;  %s225_s10 = smov 48  ;;  %v119_v30 = vsel %vm96_vm2, %v390_v24, %v114_v27  ;;  %v246_v31 = vsel %vm86_vm0, %v417_v28, %v416_v25  ;;  %v418_v32 = vld [vmem:[%s800_s0 + $0x6e] ss:$9 sm:%s248_s30]  }
   0xc   :  { %s230_s11 = smov 192  ;;  %v412_v33 = vld [vmem:[%s800_s0 + $0xc] ss:$9 sm:%s220_s7]   ;;  %s172_s16 = smov 3  ;;  %v419_v34 = vld [vmem:[%s800_s0 + $0x74] ss:$9 sm:%s253_s2]   ;;  %v251_v39 = vsel %vm91_vm1, %v418_v32, %v246_v31 }
   0xd   :  { %s175_s17 = smov 12  ;;  %v413_v35 = vld [vmem:[%s800_s0 + $0x12] ss:$9 sm:%s225_s10]   ;;  %s180_s22 = smov 48  ;;  %v223_v36 = vsel %vm86_vm0, %v412_v33, %v411_v29  ;;  %v402_v37 = vld [vmem:[%s800_s0 + $0x2] ss:$9 sm:%s172_s16]   ;;  %v256_v49 = vsel %vm96_vm2, %v419_v34, %v251_v39 }
   0xe   :  { %166 = vrot.lane.b32.xlu1 %v165_v26, %s443_s6  ;;  %s185_s23 = smov 192  ;;  %v403_v38 = vld [vmem:[%s800_s0 + $0x8] ss:$9 sm:%s175_s17]   ;;  %s308_s28 = smov 3  ;;  %v228_v45 = vsel %vm91_vm1, %v413_v35, %v223_v36 }
   0xf   :  { %120 = vrot.lane.b32.xlu0 %v119_v30, %s443_s6  ;;  %v178_v40 = vsel %vm86_vm0, %v403_v38, %v402_v37  ;;  %v404_v41 = vld [vmem:[%s800_s0 + $0xe] ss:$9 sm:%s180_s22]   ;;  %s311_s30 = smov 12  ;;  %s316_s7 = smov 48 }
  0x10   :  { %v414_v42 = vld [vmem:[%s800_s0 + $0x18] ss:$9 sm:%s230_s11]   ;;  %v183_v43 = vsel %vm91_vm1, %v404_v41, %v178_v40  ;;  %s285_s8 = smov 3  ;;  %s288_s13 = smov 12  ;;  %v432_v54 = vld [vmem:[%s800_s0 + $0x11] ss:$9 sm:%s316_s7]  }
  0x11   :  { %v405_v44 = vld [vmem:[%s800_s0 + $0x14] ss:$9 sm:%s185_s23]   ;;  %v430_v47 = vld [vmem:[%s800_s0 + $0x5] ss:$9 sm:%s308_s28]   ;;  %s293_s14 = smov 48  ;;  %s444_s15 = smov 64   ;;  %v233_v52 = vsel %vm96_vm2, %v414_v42, %v228_v45 }
  0x12   :  { %v188_v46 = vsel %vm96_vm2, %v405_v44, %v183_v43  ;;  %v431_v48 = vld [vmem:[%s800_s0 + $0xb] ss:$9 sm:%s311_s30]   ;;  %s321_s16 = smov 192  ;;  %s194_s17 = smov 3  ;;  %v425_v50 = vld [vmem:[%s800_s0 + $0x65] ss:$9 sm:%s285_s8]  }
  0x13   :  { %189 = vrot.lane.b32.xlu2 %v188_v46, %s444_s15  ;;  %v426_v51 = vld [vmem:[%s800_s0 + $0x6b] ss:$9 sm:%s288_s13]   ;;  %s197_s22 = smov 12  ;;  %s202_s23 = smov 48  ;;  %v314_v53 = vsel %vm86_vm0, %v431_v48, %v430_v47 }
  0x14   :  { %v427_v55 = vld [vmem:[%s800_s0 + $0x71] ss:$9 sm:%s293_s14]   ;;  %s207_s28 = smov 192  ;;  %v433_v56 = vld [vmem:[%s800_s0 + $0x17] ss:$9 sm:%s321_s16]   ;;  %s263_s3 = smov 3  ;;  %v291_v58 = vsel %vm86_vm0, %v426_v51, %v425_v50  ;;  %v319_v61 = vsel %vm91_vm1, %v432_v54, %v314_v53 }
  0x15   :  { %v406_v57 = vld [vmem:[%s800_s0 + $0x66] ss:$9 sm:%s194_s17]   ;;  %s266_s4 = smov 12  ;;  %s298_s5 = smov 192  ;;  %v407_v59 = vld [vmem:[%s800_s0 + $0x6c] ss:$9 sm:%s197_s22]   ;;  %v296_v3 = vsel %vm91_vm1, %v427_v55, %v291_v58  ;;  %v324_v8 = vsel %vm96_vm2, %v433_v56, %v319_v61 }
  0x16   :  { %257 = vrot.lane.b32.xlu1 %v256_v49, %s444_s15  ;;  %v408_v60 = vld [vmem:[%s800_s0 + $0x72] ss:$9 sm:%s202_s23]   ;;  %s271_s11 = smov 48  ;;  %v200_v62 = vsel %vm86_vm0, %v407_v59, %v406_v57  ;;  %s276_s23 = smov 192 }
  0x17   :  { %234 = vrot.lane.b32.xlu0 %v233_v52, %s444_s15  ;;  %v409_v63 = vld [vmem:[%s800_s0 + $0x78] ss:$9 sm:%s207_s28]   ;;  %v205_v0 = vsel %vm91_vm1, %v408_v60, %v200_v62  ;;  %s334_s24 = smov 12  ;;  %s445_s27 = smov 32  }
  0x18   :  { %v421_v1 = vld [vmem:[%s800_s0 + $0x1] ss:$9 sm:%s263_s3]   ;;  %v422_v2 = vld [vmem:[%s800_s0 + $0x7] ss:$9 sm:%s266_s4]   ;;  %v210_v5 = vsel %vm96_vm2, %v409_v63, %v205_v0  ;;  %s339_s2 = smov 48 }
  0x19   :  { %v428_v4 = vld [vmem:[%s800_s0 + $0x77] ss:$9 sm:%s298_s5]   ;;  %v269_v6 = vsel %vm86_vm0, %v422_v2, %v421_v1  ;;  %v436_v13 = vld [vmem:[%s800_s0 + $0x67] ss:$9 sm:%s334_s24]   ;;  %s344_s5 = smov 192 }
  0x1a   :  { %v423_v7 = vld [vmem:[%s800_s0 + $0xd] ss:$9 sm:%s271_s11]   ;;  %v301_v9 = vsel %vm96_vm2, %v428_v4, %v296_v3  ;;  %v424_v11 = vld [vmem:[%s800_s0 + $0x13] ss:$9 sm:%s276_s23]  }
  0x1b   :  { %211 = vrot.lane.b32.xlu2 %v210_v5, %s444_s15  ;;  %s331_s15 = smov 3  ;;  %v274_v10 = vsel %vm91_vm1, %v423_v7, %v269_v6  ;;  %v437_v16 = vld [vmem:[%s800_s0 + $0x6d] ss:$9 sm:%s339_s2]   ;;  %v371_v22 = vld [vmem:[%s800_s0 + $0x78] ss:$4 sm:$0x7]  }
  0x1c   :  { %v435_v12 = vld [vmem:[%s800_s0 + $0x61] ss:$9 sm:%s331_s15]   ;;  %v279_v14 = vsel %vm96_vm2, %v424_v11, %v274_v10  ;;  %v369_v21 = vld [vmem:[%s800_s0 + $0x69] ss:$4 sm:$0x7]  }
  0x1d   :  { %v337_v15 = vsel %vm86_vm0, %v436_v13, %v435_v12  ;;  %v438_v18 = vld [vmem:[%s800_s0 + $0x73] ss:$9 sm:%s344_s5]   ;;  %370 = vst.msk [vmem:[%s801_s1 + $0x19] ss:$8 sm:$0x7] %vm3_vm3, %v369_v21  }
  0x1e   :  { %325 = vrot.lane.b32.xlu1 %v324_v8, %s445_s27  ;;  %v342_v17 = vsel %vm91_vm1, %v437_v16, %v337_v15  ;;  %v367_v20 = vld [vmem:[%s800_s0 + $0x60] ss:$4 sm:$0x7]   ;;  %372 = vst.msk [vmem:[%s801_s1 + $0x1a] ss:$8 sm:$0x7] %vm3_vm3, %v371_v22  }
  0x1f   :  { %302 = vrot.lane.b32.xlu0 %v301_v9, %s445_s27  ;;  %v347_v19 = vsel %vm96_vm2, %v438_v18, %v342_v17  ;;  %368 = vst.msk [vmem:[%s801_s1 + $0x18] ss:$8 sm:$0x7] %vm3_vm3, %v367_v20   ;;  %v373_v23 = vld [vmem:[%s800_s0 + $0x81] ss:$4 sm:$0x7]  }
  0x20   :  { %374 = vst.msk [vmem:[%s801_s1 + $0x1b] ss:$8 sm:$0x7] %vm3_vm3, %v373_v23   ;;  %v375_v24 = vld [vmem:[%s800_s0 + $0x90] ss:$4 sm:$0x7]  }
  0x21   :  { %v2_v25 = vld [vmem:[%s800_s0] ss:$4 sm:$0x7]   ;;  %376 = vst.msk [vmem:[%s801_s1 + $0x1c] ss:$8 sm:$0x7] %vm3_vm3, %v375_v24  }
  0x22   :  { %v377_v26 = vld [vmem:[%s800_s0 + $0x99] ss:$4 sm:$0x7]   ;;  %v379_v27 = vld [vmem:[%s800_s0 + $0xa8] ss:$4 sm:$0x7]  }
  0x23   :  { %280 = vrot.lane.b32.xlu2 %v279_v14, %s445_s27  ;;  %378 = vst.msk [vmem:[%s801_s1 + $0x1d] ss:$8 sm:$0x7] %vm3_vm3, %v377_v26   ;;  %v381_v28 = vld [vmem:[%s800_s0 + $0xb1] ss:$4 sm:$0x7]  }
  0x24   :  { %380 = vst.msk [vmem:[%s801_s1 + $0x1e] ss:$8 sm:$0x7] %vm3_vm3, %v379_v27   ;;  %v353_v29 = vld [vmem:[%s800_s0 + $0x9] ss:$4 sm:$0x7]  }
  0x25   :  { %382 = vst.msk [vmem:[%s801_s1 + $0x1f] ss:$8 sm:$0x7] %vm3_vm3, %v381_v28   ;;  %v355_v30 = vld [vmem:[%s800_s0 + $0x18] ss:$4 sm:$0x7]  }
  0x26   :  { %4 = vst.msk [vmem:[%s801_s1] ss:$8 sm:$0x7] %vm3_vm3, %v2_v25   ;;  %v357_v31 = vld [vmem:[%s800_s0 + $0x21] ss:$4 sm:$0x7]  }
  0x27   :  { %354 = vst.msk [vmem:[%s801_s1 + $0x1] ss:$8 sm:$0x7] %vm3_vm3, %v353_v29   ;;  %v359_v32 = vld [vmem:[%s800_s0 + $0x30] ss:$4 sm:$0x7]  }
  0x28   :  { %356 = vst.msk [vmem:[%s801_s1 + $0x2] ss:$8 sm:$0x7] %vm3_vm3, %v355_v30   ;;  %v361_v33 = vld [vmem:[%s800_s0 + $0x39] ss:$4 sm:$0x7]  }
  0x29   :  { %358 = vst.msk [vmem:[%s801_s1 + $0x3] ss:$8 sm:$0x7] %vm3_vm3, %v357_v31   ;;  %v363_v34 = vld [vmem:[%s800_s0 + $0x48] ss:$4 sm:$0x7]  }
  0x2a   :  { %360 = vst.msk [vmem:[%s801_s1 + $0x4] ss:$8 sm:$0x7] %vm3_vm3, %v359_v32   ;;  %v365_v35 = vld [vmem:[%s800_s0 + $0x51] ss:$4 sm:$0x7]  }
  0x2b   :  { %348 = vrot.lane.b32.xlu2 %v347_v19, %s445_s27  ;;  %362 = vst.msk [vmem:[%s801_s1 + $0x5] ss:$8 sm:$0x7] %vm3_vm3, %v361_v33  }
  0x2c   :  { %364 = vst.msk [vmem:[%s801_s1 + $0x6] ss:$8 sm:$0x7] %vm3_vm3, %v363_v34  }
  0x2d   :  { %366 = vst.msk [vmem:[%s801_s1 + $0x7] ss:$8 sm:$0x7] %vm3_vm3, %v365_v35  }
  0x6d   :  { %v190_v36 = vpop.permute.xlu2 %189  }
  0x75   :  { %v212_v37 = vpop.permute.xlu2 %211  }
  0x78   :  { %v144_v38 = vpop.permute.xlu1 %143  }
  0x79   :  { %396 = vst.msk [vmem:[%s801_s1 + $0x8] sm:$0xff] %vm100_vm4, %v144_v38   ;;  %v99_v39 = vpop.permute.xlu0 %98  }
  0x7a   :  { %101 = vst.msk [vmem:[%s801_s1] sm:$0xff] %vm100_vm4, %v99_v39  }
  0x7b   :  { %192 = vst.msk [vmem:[%s801_s1] sm:$0xff] %vm191_vm5, %v190_v36  }
  0x7d   :  { %v281_v40 = vpop.permute.xlu2 %280  }
  0x7e   :  { %283 = vst.msk [vmem:[%s801_s1] sm:$0xff] %vm282_vm6, %v281_v40  }
  0x80   :  { %v167_v41 = vpop.permute.xlu1 %166  }
  0x81   :  { %401 = vst.msk [vmem:[%s801_s1 + $0x18] sm:$0xff] %vm100_vm4, %v167_v41   ;;  %v121_v42 = vpop.permute.xlu0 %120  }
  0x82   :  { %391 = vst.msk [vmem:[%s801_s1 + $0x20] sm:$0xff] %vm100_vm4, %v121_v42  }
  0x83   :  { %410 = vst.msk [vmem:[%s801_s1 + $0x20] sm:$0xff] %vm191_vm5, %v212_v37  }
  0x85   :  { %v349_v43 = vpop.permute.xlu2 %348  }
  0x88   :  { %v258_v44 = vpop.permute.xlu1 %257  }
  0x89   :  { %420 = vst.msk [vmem:[%s801_s1 + $0x18] sm:$0xff] %vm191_vm5, %v258_v44   ;;  %v235_v45 = vpop.permute.xlu0 %234  }
  0x8a   :  { %439 = vst.msk [vmem:[%s801_s1 + $0x18] sm:$0xff] %vm282_vm6, %v349_v43  }
  0x8b   :  { %415 = vst.msk [vmem:[%s801_s1 + $0x8] sm:$0xff] %vm191_vm5, %v235_v45  }
  0x90   :  { %v326_v46 = vpop.permute.xlu1 %325  }
  0x91   :  { %434 = vst.msk [vmem:[%s801_s1 + $0x8] sm:$0xff] %vm282_vm6, %v326_v46   ;;  %v303_v47 = vpop.permute.xlu0 %302  }
  0x92   :  { %429 = vst.msk [vmem:[%s801_s1 + $0x20] sm:$0xff] %vm282_vm6, %v303_v47  }

// kernel: my_text_cnn_forward.1
= control target key start
LH: loop header
LB: loop body
LE: loop exit
PB: predicated region body
PF: predicated region fallthrough
CT: control target
= control target key end

     0   :  { %18 = vsyncpa [#allocation3], 0  ;;  %s5067_s0 = inlined_call_operand.vmem [shape: f32[1,48,128], index: 0, kind: input, shape index: {}]   ;;  %s5068_s1 = inlined_call_operand.hbm [shape: f32[64,128], index: 1, kind: input, shape index: {}]   ;;  %s5069_s2 = inlined_call_operand.vmem [shape: f32[1,128], index: 2, kind: input, shape index: {}]   ;;  %s5070_s3 = inlined_call_operand.vmem [shape: f32[256,128], index: 3, kind: input, shape index: {}]   ;;  %s5071_s4 = inlined_call_operand.vmem [shape: f32[1,128], index: 4, kind: input, shape index: {}]   ;;  %s5072_s5 = inlined_call_operand.vmem [shape: f32[2,128,128], index: 5, kind: input, shape index: {}]   ;;  %s5073_s6 = inlined_call_operand.vmem [shape: f32[1,16,288], index: 6, kind: input, shape index: {}]   ;;  %s5074_s7 = inlined_call_operand.hbm [shape: f32[96,128], index: 7, kind: input, shape index: {}]   ;;  %s5075_s8 = inlined_call_operand.vmem [shape: f32[1,128], index: 8, kind: input, shape index: {}]   ;;  %s5076_s9 = inlined_call_operand.vmem [shape: f32[384,128], index: 9, kind: input, shape index: {}]   ;;  %s5077_s10 = inlined_call_operand.vmem [shape: f32[1,128], index: 10, kind: input, shape index: {}]   ;;  %s5078_s11 = inlined_call_operand.hbm [shape: f32[2,128,128], index: 11, kind: input, shape index: {}]   ;;  %s5079_s12 = inlined_call_operand.vmem [shape: f32[1,128], index: 12, kind: input, shape index: {}]   ;;  %s5080_s13 = inlined_call_operand.vmem [shape: f32[8,128], index: 13, kind: output, shape index: {}]  }
   0x1   :  { %19 = vsyncpa [#allocation5], 0  ;;  %s49_s27 = sshll.u32 %s5074_s7, 4  ;;  %s1904_s28 = smov [#allocation4]   ;;  %s50_s27 = int_to_ptr.hbm [resolvable:$true] %s49_s27 }
   0x2   :  { %s51_s29 = sshll.u32 %s1904_s28, 4  ;;  %s26_s15 = sshll.u32 %s5068_s1, 4  ;;  %s52_s29 = int_to_ptr.vmem [resolvable:$true] %s51_s29  ;;  %s27_s15 = int_to_ptr.hbm [resolvable:$true] %s26_s15 }
   0x3   :  { %s1905_s16 = smov 128   ;;  %s1906_s17 = smov 8  }
   0x4   :  { %57 = dma.hbm_to_vmem [thread:$0]  %s50_s27, 1536, %s52_s29, [#allocation5], %s1905_s16, %s1905_s16, %s1906_s17  }
   0x5   :  { %s1907_s18 = smov [#allocation2]   ;;  %s68_s22 = sshll.u32 %s5078_s11, 4  ;;  %s69_s22 = int_to_ptr.hbm [resolvable:$true] %s68_s22 }
   0x6   :  { %s28_s19 = sshll.u32 %s1907_s18, 4  ;;  %s1908_s7 = smov [#allocation6]   ;;  %s29_s19 = int_to_ptr.vmem [resolvable:$true] %s28_s19 }
   0x7   :  { %34 = dma.hbm_to_vmem [thread:$0]  %s27_s15, 1024, %s29_s19, [#allocation3], %s1905_s16, %s1905_s16, %s1906_s17  }
   0x8   :  { %s70_s23 = sshll.u32 %s1908_s7, 4  ;;  %s71_s23 = int_to_ptr.vmem [resolvable:$true] %s70_s23 }
   0x9   :  { %76 = dma.hbm_to_vmem [thread:$0]  %s69_s22, 4096, %s71_s23, [#allocation5], %s1905_s16, %s1905_s16, %s1906_s17  }
   0xa   :  { %1900 = dma.done.wait [#allocation3], 1024  }
   0xb   :  { %1901 = vsyncadd [#allocation3], 4294966272 }
   0xc   :  { %1902 = dma.done.wait [#allocation5], 5632  }
   0xd   :  { %1903 = vsyncadd [#allocation5], 4294961664  ;;  %v91_v0 = vld [vmem:[%s5067_s0] sm:$0xff]  ;;  %v93_v1 = vld [vmem:[%s5067_s0 + $0x10] sm:$0xff]  ;;  %s1909_s11 = smov 64   ;;  %vm5081_vm0 = vcmask 523264  }
   0xe   :  { %169 = vrot.lane.b32.xlu0 %v91_v0, %s1909_s11  ;;  %173 = vrot.lane.b32.xlu1 %v93_v1, %s1909_s11  ;;  %v95_v2 = vld [vmem:[%s5067_s0 + $0x20] sm:$0xff]  ;;  %v104_v3 = vld [vmem:[#allocation2 + $0x38] sm:$0xff]  ;;  %v103_v4 = vld [vmem:[#allocation2 + $0x30] sm:$0xff]  ;;  %s1910_s1 = smov 32   ;;  %vm5082_vm5 = vcmask 261120   ;;  %vm5083_vm10 = vcmask 785408  }
   0xf   :  { %177 = vrot.lane.b32.xlu2 %v95_v2, %s1909_s11  ;;  %136 = vmatpush.msra.mxu0 %v104_v3  ;;  %v102_v5 = vld [vmem:[#allocation2 + $0x28] sm:$0xff]  ;;  %v101_v6 = vld [vmem:[#allocation2 + $0x20] sm:$0xff]  ;;  %v94_v8 = vld [vmem:[%s5067_s0 + $0x18] sm:$0xff]  ;;  %vm5095_vm14 = vmmov 1  }
  0x10   :  { %201 = vmatpush.msra.mxu1 %v104_v3  ;;  %v92_v7 = vld [vmem:[%s5067_s0 + $0x8] sm:$0xff]  ;;  %v100_v10 = vld [vmem:[#allocation2 + $0x18] sm:$0xff]  ;;  %v99_v11 = vld [vmem:[#allocation2 + $0x10] sm:$0xff] }
  0x11   :  { %137 = vmatpush.msra.mxu0 %v103_v4  ;;  %v96_v9 = vld [vmem:[%s5067_s0 + $0x28] sm:$0xff]  ;;  %v97_v13 = vld [vmem:[#allocation2] sm:$0xff]  ;;  %v249_v16 = vld [vmem:[%s5070_s3 + $0x78] sm:$0xff] }
  0x12   :  { %202 = vmatpush.msra.mxu1 %v103_v4  ;;  %v98_v12 = vld [vmem:[#allocation2 + $0x8] sm:$0xff]  ;;  %v248_v17 = vld [vmem:[%s5070_s3 + $0x70] sm:$0xff]  ;;  %v265_v18 = vld [vmem:[%s5070_s3 + $0xf8] sm:$0xff]  ;;  %270 = vmatpush.msra.mxu2 %v249_v16 }
  0x13   :  { %138 = vmatpush.msra.mxu0 %v102_v5  ;;  %305 = vmatpush.msra.mxu3 %v265_v18  ;;  %v264_v19 = vld [vmem:[%s5070_s3 + $0xf0] sm:$0xff]  ;;  %v247_v20 = vld [vmem:[%s5070_s3 + $0x68] sm:$0xff]  ;;  %v246_v23 = vld [vmem:[%s5070_s3 + $0x60] sm:$0xff] }
  0x14   :  { %203 = vmatpush.msra.mxu1 %v102_v5  ;;  %v263_v21 = vld [vmem:[%s5070_s3 + $0xe8] sm:$0xff]  ;;  %271 = vmatpush.msra.mxu2 %v248_v17  ;;  %v262_v24 = vld [vmem:[%s5070_s3 + $0xe0] sm:$0xff]  ;;  %v245_v25 = vld [vmem:[%s5070_s3 + $0x58] sm:$0xff] }
  0x15   :  { %139 = vmatpush.msra.mxu0 %v101_v6  ;;  %306 = vmatpush.msra.mxu3 %v264_v19  ;;  %v261_v26 = vld [vmem:[%s5070_s3 + $0xd8] sm:$0xff]  ;;  %v244_v27 = vld [vmem:[%s5070_s3 + $0x50] sm:$0xff]  ;;  %v243_v29 = vld [vmem:[%s5070_s3 + $0x48] sm:$0xff] }
  0x16   :  { %171 = vrot.lane.b32.xlu0 %v92_v7, %s1909_s11  ;;  %175 = vrot.lane.b32.xlu1 %v94_v8, %s1909_s11  ;;  %v260_v28 = vld [vmem:[%s5070_s3 + $0xd0] sm:$0xff]  ;;  %v259_v30 = vld [vmem:[%s5070_s3 + $0xc8] sm:$0xff] }
  0x17   :  { %179 = vrot.lane.b32.xlu2 %v96_v9, %s1909_s11  ;;  %140 = vmatpush.msra.mxu0 %v100_v10  ;;  %v242_v31 = vld [vmem:[%s5070_s3 + $0x40] sm:$0xff]  ;;  %v241_v34 = vld [vmem:[%s5070_s3 + $0x38] sm:$0xff]  ;;  %v240_v36 = vld [vmem:[%s5070_s3 + $0x30] sm:$0xff] }
  0x18   :  { %204 = vmatpush.msra.mxu1 %v101_v6  ;;  %272 = vmatpush.msra.mxu2 %v247_v20  ;;  %v258_v32 = vld [vmem:[%s5070_s3 + $0xc0] sm:$0xff]  ;;  %v257_v35 = vld [vmem:[%s5070_s3 + $0xb8] sm:$0xff]  ;;  %v256_v37 = vld [vmem:[%s5070_s3 + $0xb0] sm:$0xff] }
  0x19   :  { %141 = vmatpush.msra.mxu0 %v99_v11  ;;  %307 = vmatpush.msra.mxu3 %v263_v21  ;;  %v239_v38 = vld [vmem:[%s5070_s3 + $0x28] sm:$0xff]  ;;  %v238_v41 = vld [vmem:[%s5070_s3 + $0x20] sm:$0xff]  ;;  %v237_v43 = vld [vmem:[%s5070_s3 + $0x18] sm:$0xff] }
  0x1a   :  { %205 = vmatpush.msra.mxu1 %v100_v10  ;;  %273 = vmatpush.msra.mxu2 %v246_v23  ;;  %v255_v39 = vld [vmem:[%s5070_s3 + $0xa8] sm:$0xff]  ;;  %v254_v42 = vld [vmem:[%s5070_s3 + $0xa0] sm:$0xff]  ;;  %v253_v44 = vld [vmem:[%s5070_s3 + $0x98] sm:$0xff] }
  0x1b   :  { %142 = vmatpush.msra.mxu0 %v98_v12  ;;  %308 = vmatpush.msra.mxu3 %v262_v24  ;;  %v236_v45 = vld [vmem:[%s5070_s3 + $0x10] sm:$0xff]  ;;  %v2112_v47 = vld [vmem:[%s5069_s2] ss:$0 sm:$0xff]  ;;  %v235_v51 = vld [vmem:[%s5070_s3 + $0x8] sm:$0xff] }
  0x1c   :  { %206 = vmatpush.msra.mxu1 %v99_v11  ;;  %274 = vmatpush.msra.mxu2 %v245_v25  ;;  %v252_v52 = vld [vmem:[%s5070_s3 + $0x90] sm:$0xff]  ;;  %v234_v53 = vld [vmem:[%s5070_s3] sm:$0xff]  ;;  %v251_v54 = vld [vmem:[%s5070_s3 + $0x88] sm:$0xff] }
  0x1d   :  { %143 = vmatpush.msra.mxu0 %v97_v13  ;;  %309 = vmatpush.msra.mxu3 %v261_v26  ;;  %v250_v55 = vld [vmem:[%s5070_s3 + $0x80] sm:$0xff]  ;;  %v1327_v20 = vld [vmem:[%s5073_s6 + $0x10] sm:$0xff]  ;;  %v1329_v24 = vld [vmem:[%s5073_s6 + $0x28] sm:$0xff] }
  0x1e   :  { %207 = vmatpush.msra.mxu1 %v98_v12  ;;  %1764 = vmatmul.msk.f32.vlgmr.msra.gmra.mxu0 %vm5081_vm0, %v91_v0  ;;  %v1281_v19 = vld [vmem:[%s5073_s6 + $0x20] sm:$0xff] }
  0x1f   :  { %275 = vmatpush.msra.mxu2 %v244_v27  ;;  %310 = vmatpush.msra.mxu3 %v260_v28 }
  0x20   :  { %208 = vmatpush.msra.mxu1 %v97_v13  ;;  %v1279_v13 = vld [vmem:[%s5073_s6 + $0x8] sm:$0xff] }
  0x21   :  { %276 = vmatpush.msra.mxu2 %v243_v29  ;;  %311 = vmatpush.msra.mxu3 %v259_v30 }
  0x22   :  { %1288 = vrot.lane.b32.xlu1 %v1279_v13, %s1910_s1 }
  0x23   :  { %277 = vmatpush.msra.mxu2 %v242_v31  ;;  %312 = vmatpush.msra.mxu3 %v258_v32 }
  0x25   :  { %278 = vmatpush.msra.mxu2 %v241_v34  ;;  %313 = vmatpush.msra.mxu3 %v257_v35 }
  0x26   :  { %1765 = vmatmul.msk.f32.gmra.mxu0 %vm5081_vm0, %v92_v7 }
  0x27   :  { %279 = vmatpush.msra.mxu2 %v240_v36  ;;  %314 = vmatpush.msra.mxu3 %v256_v37  ;;  %v1807_v37 = vld [vmem:[%s5072_s5 + $0xf8] sm:$0xff] }
  0x28   :  { %1164 = vmatpush.msrb.mxu0 %v1807_v37 }
  0x29   :  { %280 = vmatpush.msra.mxu2 %v239_v38  ;;  %315 = vmatpush.msra.mxu3 %v255_v39  ;;  %v2175_v38 = vld [vmem:[#allocation4 + $0x58] sm:$0xff]  ;;  %v1806_v39 = vld [vmem:[%s5072_s5 + $0xf0] sm:$0xff] }
  0x2a   :  { %1334 = vrot.lane.b32.xlu1 %v1279_v13, %s1909_s11  ;;  %1165 = vmatpush.msrb.mxu0 %v1806_v39  ;;  %v1111_v13 = vld [vmem:[%s5072_s5 + $0x58] sm:$0xff] }
  0x2b   :  { %281 = vmatpush.msra.mxu2 %v238_v41  ;;  %316 = vmatpush.msra.mxu3 %v254_v42 }
  0x2d   :  { %282 = vmatpush.msra.mxu2 %v237_v43  ;;  %317 = vmatpush.msra.mxu3 %v253_v44  ;;  %v1805_v44 = vld [vmem:[%s5072_s5 + $0xe8] sm:$0xff] }
  0x2e   :  { %1766 = vmatmul.msk.f32.gmra.mxu0 %vm5081_vm0, %v93_v1 }
  0x2f   :  { %283 = vmatpush.msra.mxu2 %v236_v45  ;;  %318 = vmatpush.msra.mxu3 %v252_v52  ;;  %v2205_v52 = vld [vmem:[#allocation4 + $0x40] sm:$0xff] }
  0x30   :  { %1166 = vmatpush.msrb.mxu0 %v1805_v44  ;;  %v2335_v44 = vld [vmem:[#allocation4] sm:$0xff] }
  0x31   :  { %284 = vmatpush.msra.mxu2 %v235_v51  ;;  %319 = vmatpush.msra.mxu3 %v251_v54  ;;  %v1802_v51 = vld [vmem:[%s5072_s5 + $0xd0] sm:$0xff]  ;;  %v2208_v54 = vld [vmem:[#allocation4 + $0x38] sm:$0xff] }
  0x32   :  { %1340 = vrot.lane.b32.xlu1 %v1329_v24, %s1909_s11 }
  0x33   :  { %285 = vmatpush.msra.mxu2 %v234_v53  ;;  %320 = vmatpush.msra.mxu3 %v250_v55  ;;  %v1115_v55 = vld [vmem:[%s5072_s5 + $0x78] sm:$0xff] }
  0x34   :  { %1208 = vmatpush.msrb.mxu1 %v1115_v55 }
  0x35   :  { %1305 = vmatpush.msrb.mxu3 %v2175_v38  ;;  %1257 = vmatpush.msrb.mxu2 %v2175_v38 }
  0x36   :  { %1767 = vmatmul.msk.f32.gmra.mxu0 %vm5081_vm0, %v94_v8 }
  0x3e   :  { %1768 = vmatmul.msk.f32.gmra.mxu0 %vm5081_vm0, %v95_v2 }
  0x46   :  { %1769 = vmatmul.msk.f32.gmra.mxu0 %vm5081_vm0, %v96_v9 }
  0x69   :  { %v178_v40 = vpop.permute.xlu2 %177 }
  0x71   :  { %v180_v46 = vpop.permute.xlu2 %179 }
  0x80   :  { %v170_v14 = vpop.permute.xlu0 %169  ;;  %v174_v22 = vpop.permute.xlu1 %173 }
  0x81   :  { %1770 = vmatmul.msk.f32.vlgmr.msra.gmra.mxu1 %vm5081_vm0, %v170_v14  ;;  %v2143_v14 = vld [vmem:[%s5073_s6] sm:$0xff] }
  0x82   :  { %1286 = vrot.lane.b32.xlu0 %v2143_v14, %s1910_s1 }
  0x88   :  { %v172_v15 = vpop.permute.xlu0 %171  ;;  %v176_v33 = vpop.permute.xlu1 %175 }
  0x89   :  { %1771 = vmatmul.msk.f32.gmra.mxu1 %vm5081_vm0, %v172_v15  ;;  %v1280_v15 = vld [vmem:[%s5073_s6 + $0x18] sm:$0xff] }
  0x8a   :  { %1290 = vrot.lane.b32.xlu2 %v1280_v15, %s1910_s1  ;;  %1292 = vrot.lane.b32.xlu0 %v1281_v19, %s1910_s1 }
  0x91   :  { %1772 = vmatmul.msk.f32.gmra.mxu1 %vm5081_vm0, %v174_v22 }
  0x92   :  { %1336 = vrot.lane.b32.xlu2 %v1327_v20, %s1909_s11  ;;  %1338 = vrot.lane.b32.xlu0 %v1281_v19, %s1909_s11  ;;  %v1110_v19 = vld [vmem:[%s5072_s5 + $0x50] sm:$0xff] }
  0x99   :  { %1773 = vmatmul.msk.f32.gmra.mxu1 %vm5081_vm0, %v176_v33  ;;  %v2169_v33 = vld [vmem:[%s5071_s4] ss:$0 sm:$0xff] }
  0x9b   :  { %v145_v48 = vpop.f32.mrf.mxu0 }
  0x9c   :  { %v146_v49 = vadd.f32 %v2112_v47, %v145_v48 }
  0x9e   :  { %v163_v50 = vmax.f32 %v146_v49, 0.0  ;;  %v2195_v49 = vld [vmem:[#allocation4 + $0x48] sm:$0xff] }
  0xa0   :  { %286 = vmatmul.f32.vlgmr.msra.gmra.mxu2 %v163_v50  ;;  %v1803_v50 = vld [vmem:[%s5072_s5 + $0xd8] sm:$0xff] }
  0xa1   :  { %1774 = vmatmul.msk.f32.gmra.mxu1 %vm5081_vm0, %v178_v40  ;;  %v2181_v40 = vld [vmem:[#allocation4 + $0x50] sm:$0xff] }
  0xa2   :  { %1306 = vmatpush.msrb.mxu3 %v2181_v40  ;;  %1258 = vmatpush.msrb.mxu2 %v2181_v40 }
  0xa3   :  { %v148_v56 = vpop.f32.mrf.mxu0 }
  0xa4   :  { %v149_v57 = vadd.f32 %v2112_v47, %v148_v56  ;;  %1307 = vmatpush.msrb.mxu3 %v2195_v49  ;;  %1259 = vmatpush.msrb.mxu2 %v2195_v49 }
  0xa6   :  { %v164_v58 = vmax.f32 %v149_v57, 0.0  ;;  %1308 = vmatpush.msrb.mxu3 %v2205_v52  ;;  %v1801_v57 = vld [vmem:[%s5072_s5 + $0xc8] sm:$0xff]  ;;  %1260 = vmatpush.msrb.mxu2 %v2205_v52 }
  0xa8   :  { %289 = vmatmul.f32.gmra.mxu2 %v164_v58  ;;  %v1114_v58 = vld [vmem:[%s5072_s5 + $0x70] sm:$0xff]  ;;  %1309 = vmatpush.msrb.mxu3 %v2208_v54 }
  0xa9   :  { %1775 = vmatmul.msk.f32.gmra.mxu1 %vm5081_vm0, %v180_v46  ;;  %1261 = vmatpush.msrb.mxu2 %v2208_v54 }
  0xaa   :  { %1209 = vmatpush.msrb.mxu1 %v1114_v58 }
  0xab   :  { %v151_v59 = vpop.f32.mrf.mxu0 }
  0xac   :  { %v152_v60 = vadd.f32 %v2112_v47, %v151_v59 }
  0xae   :  { %v165_v61 = vmax.f32 %v152_v60, 0.0  ;;  %v2227_v60 = vld [vmem:[#allocation4 + $0x30] sm:$0xff] }
  0xaf   :  { %1310 = vmatpush.msrb.mxu3 %v2227_v60  ;;  %1262 = vmatpush.msrb.mxu2 %v2227_v60 }
  0xb0   :  { %292 = vmatmul.f32.gmra.mxu2 %v165_v61 }
  0xb3   :  { %v154_v62 = vpop.f32.mrf.mxu0 }
  0xb4   :  { %v155_v63 = vadd.f32 %v2112_v47, %v154_v62  ;;  %v1800_v62 = vld [vmem:[%s5072_s5 + $0xc0] sm:$0xff] }
  0xb6   :  { %v166_v0 = vmax.f32 %v155_v63, 0.0  ;;  %v1113_v63 = vld [vmem:[%s5072_s5 + $0x68] sm:$0xff] }
  0xb7   :  { %1210 = vmatpush.msrb.mxu1 %v1113_v63 }
  0xb8   :  { %295 = vmatmul.f32.gmra.mxu2 %v166_v0 }
  0xbb   :  { %v157_v1 = vpop.f32.mrf.mxu0 }
  0xbc   :  { %v158_v2 = vadd.f32 %v2112_v47, %v157_v1  ;;  %v2237_v1 = vld [vmem:[#allocation4 + $0x28] sm:$0xff] }
  0xbd   :  { %1311 = vmatpush.msrb.mxu3 %v2237_v1  ;;  %1263 = vmatpush.msrb.mxu2 %v2237_v1 }
  0xbe   :  { %v167_v4 = vmax.f32 %v158_v2, 0.0 }
  0xc0   :  { %298 = vmatmul.f32.gmra.mxu2 %v167_v4  ;;  %v1799_v4 = vld [vmem:[%s5072_s5 + $0xb8] sm:$0xff] }
  0xc3   :  { %v160_v7 = vpop.f32.mrf.mxu0 }
  0xc4   :  { %v161_v8 = vadd.f32 %v2112_v47, %v160_v7  ;;  %v2255_v7 = vld [vmem:[#allocation4 + $0x20] sm:$0xff] }
  0xc5   :  { %1312 = vmatpush.msrb.mxu3 %v2255_v7  ;;  %1264 = vmatpush.msrb.mxu2 %v2255_v7 }
  0xc6   :  { %v168_v10 = vmax.f32 %v161_v8, 0.0 }
  0xc8   :  { %301 = vmatmul.f32.gmra.mxu2 %v168_v10 }
  0xf4   :  { %v1287_v37 = vpop.permute.xlu0 %1286 }
  0xfe   :  { %v210_v3 = vpop.f32.mrf.mxu1 }
  0xff   :  { %v211_v5 = vadd.f32 %v2112_v47, %v210_v3 }
 0x101   :  { %v228_v6 = vmax.f32 %v211_v5, 0.0  ;;  %v1112_v5 = vld [vmem:[%s5072_s5 + $0x60] sm:$0xff] }
 0x102   :  { %1211 = vmatpush.msrb.mxu1 %v1112_v5 }
 0x103   :  { %321 = vmatmul.f32.vlgmr.msra.gmra.mxu3 %v228_v6 }
 0x104   :  { %1212 = vmatpush.msrb.mxu1 %v1111_v13 }
 0x106   :  { %v213_v9 = vpop.f32.mrf.mxu1  ;;  %1213 = vmatpush.msrb.mxu1 %v1110_v19  ;;  %v1792_v19 = vld [vmem:[%s5072_s5 + $0x80] sm:$0xff] }
 0x107   :  { %v214_v11 = vadd.f32 %v2112_v47, %v213_v9  ;;  %v5114_v9 = vmov 0  }
 0x109   :  { %v229_v12 = vmax.f32 %v214_v11, 0.0 }
 0x10b   :  { %324 = vmatmul.f32.gmra.mxu3 %v229_v12  ;;  %v1798_v12 = vld [vmem:[%s5072_s5 + $0xb0] sm:$0xff] }
 0x10e   :  { %v216_v16 = vpop.f32.mrf.mxu1 }
 0x10f   :  { %v217_v17 = vadd.f32 %v2112_v47, %v216_v16 }
 0x111   :  { %v230_v18 = vmax.f32 %v217_v17, 0.0  ;;  %v2278_v17 = vld [vmem:[#allocation4 + $0x18] sm:$0xff] }
 0x112   :  { %1313 = vmatpush.msrb.mxu3 %v2278_v17  ;;  %1265 = vmatpush.msrb.mxu2 %v2278_v17 }
 0x113   :  { %327 = vmatmul.f32.gmra.mxu3 %v230_v18  ;;  %v1797_v18 = vld [vmem:[%s5072_s5 + $0xa8] sm:$0xff] }
 0x116   :  { %v219_v21 = vpop.f32.mrf.mxu1 }
 0x117   :  { %v220_v22 = vadd.f32 %v2112_v47, %v219_v21 }
 0x119   :  { %v231_v23 = vmax.f32 %v220_v22, 0.0  ;;  %v2291_v22 = vld [vmem:[#allocation4 + $0x10] sm:$0xff] }
 0x11a   :  { %1314 = vmatpush.msrb.mxu3 %v2291_v22  ;;  %1266 = vmatpush.msrb.mxu2 %v2291_v22 }
 0x11b   :  { %330 = vmatmul.f32.gmra.mxu3 %v231_v23 }
 0x11e   :  { %v222_v25 = vpop.f32.mrf.mxu1 }
 0x11f   :  { %v223_v26 = vadd.f32 %v2112_v47, %v222_v25 }
 0x121   :  { %v232_v27 = vmax.f32 %v223_v26, 0.0 }
 0x123   :  { %333 = vmatmul.f32.gmra.mxu3 %v232_v27  ;;  %v287_v31 = vpop.f32.mrf.mxu2  ;;  %v1796_v27 = vld [vmem:[%s5072_s5 + $0xa0] sm:$0xff] }
 0x124   :  { %v288_v36 = vadd.f32 %v2169_v33, %v287_v31 }
 0x126   :  { %v225_v28 = vpop.f32.mrf.mxu1 }
 0x127   :  { %v226_v29 = vadd.f32 %v2112_v47, %v225_v28  ;;  %v1804_v47 = vld [vmem:[%s5072_s5 + $0xe0] sm:$0xff]  ;;  %v1109_v28 = vld [vmem:[%s5072_s5 + $0x48] sm:$0xff] }
 0x128   :  { %1167 = vmatpush.msrb.mxu0 %v1804_v47  ;;  %1214 = vmatpush.msrb.mxu1 %v1109_v28  ;;  %v1104_v28 = vld [vmem:[%s5072_s5 + $0x20] sm:$0xff] }
 0x129   :  { %v233_v30 = vmax.f32 %v226_v29, 0.0 }
 0x12a   :  { %1168 = vmatpush.msrb.mxu0 %v1803_v50 }
 0x12b   :  { %336 = vmatmul.f32.gmra.mxu3 %v233_v30  ;;  %v290_v32 = vpop.f32.mrf.mxu2 }
 0x12c   :  { %v291_v42 = vadd.f32 %v2169_v33, %v290_v32  ;;  %1169 = vmatpush.msrb.mxu0 %v1802_v51  ;;  %v2315_v32 = vld [vmem:[#allocation4 + $0x8] sm:$0xff]  ;;  %v1794_v51 = vld [vmem:[%s5072_s5 + $0x90] sm:$0xff] }
 0x12d   :  { %1315 = vmatpush.msrb.mxu3 %v2315_v32  ;;  %1267 = vmatpush.msrb.mxu2 %v2315_v32 }
 0x12e   :  { %1170 = vmatpush.msrb.mxu0 %v1801_v57 }
 0x12f   :  { %1316 = vmatpush.msrb.mxu3 %v2335_v44  ;;  %1268 = vmatpush.msrb.mxu2 %v2335_v44 }
 0x130   :  { %1171 = vmatpush.msrb.mxu0 %v1800_v62  ;;  %1808 = vmatmul.msk.f32.vlgmr.msrb.gmra.mxu2 %vm5083_vm10, %v2143_v14 }
 0x132   :  { %1172 = vmatpush.msrb.mxu0 %v1799_v4 }
 0x133   :  { %v293_v34 = vpop.f32.mrf.mxu2 }
 0x134   :  { %v294_v53 = vadd.f32 %v2169_v33, %v293_v34  ;;  %1173 = vmatpush.msrb.mxu0 %v1798_v12  ;;  %v1795_v34 = vld [vmem:[%s5072_s5 + $0x98] sm:$0xff] }
 0x136   :  { %1174 = vmatpush.msrb.mxu0 %v1797_v18 }
 0x138   :  { %1175 = vmatpush.msrb.mxu0 %v1796_v27 }
 0x13a   :  { %1176 = vmatpush.msrb.mxu0 %v1795_v34 }
 0x13b   :  { %v296_v45 = vpop.f32.mrf.mxu2 }
 0x13c   :  { %v297_v16 = vadd.f32 %v2169_v33, %v296_v45  ;;  %1177 = vmatpush.msrb.mxu0 %v1794_v51 }
 0x143   :  { %v299_v6 = vpop.f32.mrf.mxu2 }
 0x144   :  { %v300_v31 = vadd.f32 %v2169_v33, %v299_v6 }
 0x14b   :  { %v302_v55 = vpop.f32.mrf.mxu2 }
 0x14c   :  { %v303_v18 = vadd.f32 %v2169_v33, %v302_v55 }
 0x186   :  { %v322_v35 = vpop.f32.mrf.mxu3 }
 0x187   :  { %v323_v41 = vadd.f32 %v322_v35, %v288_v36  ;;  %v1108_v35 = vld [vmem:[%s5072_s5 + $0x40] sm:$0xff]  ;;  %v1289_v36 = vpop.permute.xlu1 %1288 }
 0x188   :  { %1215 = vmatpush.msrb.mxu1 %v1108_v35  ;;  %v1295_v57 = vsel %vm5082_vm5, %v1287_v37, %v1289_v36  ;;  %v1103_v35 = vld [vmem:[%s5072_s5 + $0x18] sm:$0xff] }
 0x189   :  { %v2190_v46 = vmax.f32 %v323_v41, 0.0  ;;  %1810 = vmatmul.msk.f32.vlgmr.msrb.gmra.mxu3 %vm5083_vm10, %v1295_v57 }
 0x18b   :  { %v2214_v56 = vrot.slane %v2190_v46, 7  ;;  %vm388_vm1 = vcmp.gt.f32.partialorder %v2190_v46, -inf  ;;  %v2240_v2 = vrot.slane %v2190_v46, 6  ;;  %v2343_v47 = vrot.slane %v2190_v46, 2 }
 0x18c   :  { %v420_v3 = vsel %vm388_vm1, %v2190_v46, -inf  ;;  %v444_v10 = vsel %vm388_vm1, 1, %v5114_v9  ;;  %v2369_v62 = vrot.slane %v2190_v46, 4 }
 0x18d   :  { %vm412_vm2 = vcmp.gt.f32.partialorder %v2190_v46, %v2214_v56  ;;  %v2289_v20 = vrot.slane %v2240_v2, 7  ;;  %v452_v21 = vrot.slane %v444_v10, 7  ;;  %vm389_vm3 = vcmp.gt.f32.partialorder %v2240_v2, -inf }
 0x18e   :  { %v325_v43 = vpop.f32.mrf.mxu3  ;;  %v428_v15 = vsel %vm412_vm2, %v2214_v56, %v420_v3  ;;  %v484_v24 = vsel %vm412_vm2, %v2190_v46, %v2214_v56  ;;  %v421_v39 = vsel %vm389_vm3, %v2240_v2, -inf  ;;  %v445_v41 = vsel %vm389_vm3, 1, %v5114_v9  ;;  %v1106_v3 = vld [vmem:[%s5072_s5 + $0x30] sm:$0xff]  ;;  %vm2429_vm15 = vmxor %vm412_vm2, %vm5095_vm14 }
 0x18f   :  { %v326_v48 = vadd.f32 %v325_v43, %v291_v42  ;;  %v540_v25 = vrot.slane %v428_v15, 7  ;;  %vm413_vm6 = vcmp.gt.f32.partialorder %v2240_v2, %v2289_v20  ;;  %v500_v42 = vrot.slane %v484_v24, 7 }
 0x190   :  { %vm2345_vm8 = vcmp.ne.s32.totalorder %v452_v21, 0  ;;  %v429_v58 = vsel %vm413_vm6, %v2289_v20, %v421_v39  ;;  %v453_v5 = vrot.slane %v445_v41, 7  ;;  %v485_v13 = vsel %vm413_vm6, %v2240_v2, %v2289_v20  ;;  %v1105_v21 = vld [vmem:[%s5072_s5 + $0x28] sm:$0xff]  ;;  %vm2462_vm10 = vmxor %vm413_vm6, %vm5095_vm14 }
 0x191   :  { %v2225_v59 = vmax.f32 %v326_v48, 0.0  ;;  %v2349_v50 = vrot.slane %v540_v25, 2  ;;  %v2386_v6 = vrot.slane %v500_v42, 2  ;;  %vm2403_vm11 = vmor %vm388_vm1, %vm2345_vm8  ;;  %v542_v25 = vrot.slane %v429_v58, 7  ;;  %v1101_v2 = vld [vmem:[%s5072_s5 + $0x8] sm:$0xff] }
 0x192   :  { %vm2437_vm8 = vcmp.ne.s32.totalorder %v453_v5, 0  ;;  %v502_v34 = vrot.slane %v485_v13, 7  ;;  %vm476_vm2 = vmand %vm2429_vm15, %vm2403_vm11  ;;  %v5209_v48 = vmov 0 }
 0x193   :  { %v2258_v8 = vrot.slane %v2225_v59, 4  ;;  %vm5085_vm12 = vcmp.gt.f32.partialorder %v2343_v47, %v2349_v50  ;;  %v2448_v56 = vrot.slane %v2225_v59, 2  ;;  %vm5091_vm5 = vcmp.gt.f32.partialorder %v2343_v47, %v2386_v6 }
 0x194   :  { %v2469_v41 = vrot.slane %v542_v25, 2  ;;  %v2504_v55 = vrot.slane %v2225_v59, 6 }
 0x195   :  { %v2295_v23 = vrot.slane %v2258_v8, 7  ;;  %vm5087_vm4 = vcmp.gt.f32.partialorder %v2258_v8, -inf }
 0x196   :  { %v328_v61 = vpop.f32.mrf.mxu3  ;;  %v422_v45 = vsel %vm5087_vm4, %v2258_v8, -inf  ;;  %vm5089_vm11 = vcmp.gt.f32.partialorder %v2225_v59, %v2469_v41 }
 0x197   :  { %v329_v0 = vadd.f32 %v328_v61, %v294_v53  ;;  %vm414_vm7 = vcmp.gt.f32.partialorder %v2258_v8, %v2295_v23  ;;  %v1107_v53 = vld [vmem:[%s5072_s5 + $0x38] sm:$0xff]  ;;  %v446_v61 = vsel %vm5087_vm4, 1, %v5114_v9  ;;  %vm2525_vm4 = vmor %vm389_vm3, %vm2437_vm8  ;;  %vm5192_vm3 = vcmp.gt.f32.partialorder %v2258_v8, -inf }
 0x198   :  { %v430_v4 = vsel %vm414_vm7, %v2295_v23, %v422_v45  ;;  %1216 = vmatpush.msrb.mxu1 %v1107_v53  ;;  %v454_v24 = vrot.slane %v446_v61, 7  ;;  %vm2483_vm6 = vmxor %vm414_vm7, %vm5095_vm14 }
 0x199   :  { %v2263_v11 = vmax.f32 %v329_v0, 0.0  ;;  %v1793_v0 = vld [vmem:[%s5072_s5 + $0x88] sm:$0xff]  ;;  %v544_v27 = vrot.slane %v430_v4, 7  ;;  %v596_v4 = vsel %vm476_vm2, 1, %v5114_v9 }
 0x19a   :  { %1178 = vmatpush.msrb.mxu0 %v1793_v0  ;;  %1217 = vmatpush.msrb.mxu1 %v1106_v3  ;;  %v1776_v25 = vrot.slane %v596_v4, 9  ;;  %v5291_v0 = vmov 0 }
 0x19b   :  { %v2311_v29 = vrot.slane %v2263_v11, 2  ;;  %v2494_v51 = vrot.slane %v544_v27, 2  ;;  %v573_v27 = vsel %vm5089_vm11, %v2225_v59, %v2469_v41 }
 0x19c   :  { %1179 = vmatpush.msrb.mxu0 %v1792_v19  ;;  %1218 = vmatpush.msrb.mxu1 %v1105_v21 }
 0x19d   :  { %vm391_vm9 = vcmp.gt.f32.partialorder %v2311_v29, -inf  ;;  %v2389_v10 = vrot.slane %v2311_v29, 7  ;;  %vm5090_vm15 = vcmp.gt.f32.partialorder %v2504_v55, %v2494_v51 }
 0x19e   :  { %v331_v26 = vpop.f32.mrf.mxu3  ;;  %v447_v12 = vsel %vm391_vm9, 1, %v5114_v9  ;;  %1352 = vmatpush.msra.mxu0 %v2175_v38  ;;  %v572_v38 = vsel %vm5085_vm12, %v2343_v47, %v2349_v50  ;;  %1219 = vmatpush.msrb.mxu1 %v1104_v28 }
 0x19f   :  { %v332_v30 = vadd.f32 %v331_v26, %v297_v16  ;;  %v486_v26 = vsel %vm414_vm7, %v2258_v8, %v2295_v23  ;;  %vm415_vm0 = vcmp.gt.f32.partialorder %v2311_v29, %v2389_v10  ;;  %v1102_v23 = vld [vmem:[%s5072_s5 + $0x10] sm:$0xff]  ;;  %v2533_v3 = vsel %vm5091_vm5, %v2386_v6, %v572_v38 }
 0x1a0   :  { %v504_v39 = vrot.slane %v486_v26, 7  ;;  %1353 = vmatpush.msra.mxu0 %v2181_v40  ;;  %vm2510_vm7 = vmxor %vm415_vm0, %vm5095_vm14  ;;  %v2518_v40 = vrot.slane %v502_v34, 2  ;;  %1220 = vmatpush.msrb.mxu1 %v1103_v35  ;;  %v2639_v34 = vrot.slane %v2263_v11, 4  ;;  %v2642_v35 = vrot.slane %v2263_v11, 6 }
 0x1a1   :  { %v2333_v43 = vmax.f32 %v332_v30, 0.0  ;;  %v455_v30 = vrot.slane %v447_v12, 7  ;;  %v423_v12 = vsel %vm391_vm9, %v2311_v29, -inf }
 0x1a2   :  { %1354 = vmatpush.msra.mxu0 %v2195_v49  ;;  %1221 = vmatpush.msrb.mxu1 %v1102_v23 }
 0x1a3   :  { %v2372_v63 = vrot.slane %v2333_v43, 6  ;;  %vm5084_vm13 = vcmp.gt.f32.partialorder %v2333_v43, -inf  ;;  %v2497_v53 = vrot.slane %v2333_v43, 7  ;;  %vm2514_vm12 = vcmp.ne.s32.totalorder %v455_v30, 0 }
 0x1a4   :  { %v448_v37 = vsel %vm5084_vm13, 1, %v5114_v9  ;;  %vm2490_vm13 = vcmp.ne.s32.totalorder %v454_v24, 0  ;;  %1355 = vmatpush.msra.mxu0 %v2205_v52  ;;  %v487_v24 = vsel %vm415_vm0, %v2311_v29, %v2389_v10  ;;  %1222 = vmatpush.msrb.mxu1 %v1101_v2  ;;  %v2750_v26 = vrot.slane %v2333_v43, 2 }
 0x1a5   :  { %vm5086_vm1 = vcmp.gt.f32.partialorder %v2372_v63, -inf  ;;  %v456_v61 = vrot.slane %v448_v37, 7  ;;  %vm2552_vm8 = vmor %vm5192_vm3, %vm2490_vm13  ;;  %v401_v19 = vrot.slane %v2372_v63, 7  ;;  %vm5092_vm2 = vcmp.gt.f32.partialorder %v2333_v43, %v2497_v53 }
 0x1a6   :  { %v334_v16 = vpop.f32.mrf.mxu3  ;;  %v449_v45 = vsel %vm5086_vm1, 1, %v5114_v9  ;;  %vm2568_vm13 = vmor %vm391_vm9, %vm2514_vm12  ;;  %vm5093_vm12 = vcmp.gt.f32.partialorder %v2225_v59, %v2518_v40  ;;  %1356 = vmatpush.msra.mxu0 %v2208_v54  ;;  %v5205_v37 = vmov 0 }
 0x1a7   :  { %v335_v33 = vadd.f32 %v334_v16, %v300_v31  ;;  %v457_v13 = vrot.slane %v449_v45, 7  ;;  %v2556_v16 = vrot.slane %v504_v39, 2  ;;  %vm2597_vm3 = vcmp.ne.s32.totalorder %v456_v61, 0 }
 0x1a8   :  { %v506_v31 = vrot.slane %v487_v24, 7  ;;  %1357 = vmatpush.msra.mxu0 %v2227_v60  ;;  %v2656_v60 = vsel %vm5093_vm12, %v2518_v40, %v573_v27  ;;  %vm5212_vm12 = vcmp.gt.f32.partialorder %v2372_v63, %v401_v19  ;;  %v5213_v61 = vmov 0 }
 0x1a9   :  { %v2445_v46 = vmax.f32 %v335_v33, 0.0  ;;  %v431_v33 = vsel %vm415_vm0, %v2389_v10, %v423_v12  ;;  %vm5094_vm9 = vcmp.gt.f32.partialorder %v2504_v55, %v2556_v16  ;;  %v574_v10 = vsel %vm5090_vm15, %v2504_v55, %v2494_v51  ;;  %vm2633_vm0 = vmxor %vm5092_vm2, %vm5095_vm14 }
 0x1aa   :  { %vm5204_vm15 = vcmp.gt.f32.partialorder %v2333_v43, -inf  ;;  %v546_v39 = vrot.slane %v431_v33, 7  ;;  %v2673_v23 = vsel %vm5094_vm9, %v2556_v16, %v574_v10  ;;  %1358 = vmatpush.msra.mxu0 %v2237_v1  ;;  %vm2682_vm11 = vmxor %vm5212_vm12, %vm5095_vm14  ;;  %vm2692_vm9 = vcmp.ne.s32.totalorder %v1776_v25, 0 }
 0x1ab   :  { %v2477_v20 = vrot.slane %v2445_v46, 4  ;;  %vm2648_vm5 = vmor %vm5204_vm15, %vm2597_vm3  ;;  %v5214_v61 = vsel %vm2682_vm11, 4294967295, %v5213_v61  ;;  %v5218_v1 = vmov 0  ;;  %vm5221_vm14 = vcmp.gt.f32.partialorder %v2333_v43, %v2497_v53 }
 0x1ac   :  { %v5206_v37 = vsel %vm2648_vm5, 4294967295, %v5205_v37  ;;  %vm5207_vm2 = vmmov %vm5204_vm15  ;;  %vm5208_vm15 = vcmp.gt.f32.partialorder %v2372_v63, -inf  ;;  %v5219_v1 = vsel %vm2692_vm9, 4294967295, %v5218_v1  ;;  %1359 = vmatpush.msra.mxu0 %v2255_v7  ;;  %v2727_v24 = vrot.slane %v546_v39, 2 }
 0x1ad   :  { %vm5088_vm1 = vcmp.gt.f32.partialorder %v2477_v20, -inf  ;;  %v402_v28 = vrot.slane %v2477_v20, 7  ;;  %v424_v38 = vsel %vm5207_vm2, %v2333_v43, -inf  ;;  %vm5211_vm2 = vmmov %vm5208_vm15  ;;  %vm5230_vm9 = vmmov 1  }
 0x1ae   :  { %v337_v5 = vpop.f32.mrf.mxu3  ;;  %v450_v21 = vsel %vm5088_vm1, 1, %v5114_v9  ;;  %vm2611_vm1 = vcmp.ne.s32.totalorder %v457_v13, 0  ;;  %v425_v58 = vsel %vm5211_vm2, %v2372_v63, -inf  ;;  %vm5220_vm2 = vcmp.gt.f32.partialorder %v2343_v47, %v2386_v6  ;;  %1360 = vmatpush.msra.mxu0 %v2278_v17 }
 0x1af   :  { %v338_v49 = vadd.f32 %v337_v5, %v303_v18  ;;  %v1100_v18 = vld [vmem:[%s5072_s5] sm:$0xff]  ;;  %v458_v14 = vrot.slane %v450_v21, 7  ;;  %vm2665_vm3 = vmor %vm5208_vm15, %vm2611_vm1  ;;  %v2701_v2 = vsel %vm5220_vm2, %v2343_v47, %v2386_v6  ;;  %v488_v13 = vsel %vm5221_vm14, %v2333_v43, %v2497_v53 }
 0x1b0   :  { %1223 = vmatpush.msrb.mxu1 %v1100_v18  ;;  %v5210_v48 = vsel %vm2665_vm3, 4294967295, %v5209_v48  ;;  %vm5222_vm2 = vmmov %vm5221_vm14  ;;  %v489_v18 = vsel %vm5212_vm12, %v2372_v63, %v401_v19  ;;  %vm5223_vm14 = vcmp.gt.f32.partialorder %v2225_v59, %v2518_v40  ;;  %1361 = vmatpush.msra.mxu0 %v2291_v22  ;;  %v2807_v22 = vrot.slane %v2445_v46, 6 }
 0x1b1   :  { %v2591_v52 = vmax.f32 %v338_v49, 0.0  ;;  %vm2688_vm15 = vcmp.ne.s32.totalorder %v458_v14, 0  ;;  %v2713_v49 = vrot.slane %v506_v31, 2  ;;  %v432_v21 = vsel %vm5222_vm2, %v2497_v53, %v424_v38 }
 0x1b2   :  { %v2734_v7 = vsel %vm5223_vm14, %v2225_v59, %v2518_v40  ;;  %vm5224_vm2 = vcmp.gt.f32.partialorder %v2477_v20, -inf  ;;  %v508_v14 = vrot.slane %v488_v13, 7  ;;  %v510_v10 = vrot.slane %v489_v18, 7  ;;  %1362 = vmatpush.msra.mxu0 %v2315_v32 }
 0x1b3   :  { %5197 = vst [vmem:[#allocation9_spill] sm:$0xff] %v2591_v52  ;;  %v367_v54 = vrot.slane %v2591_v52, 2  ;;  %v426_v53 = vsel %vm5224_vm2, %v2477_v20, -inf  ;;  %v548_v31 = vrot.slane %v432_v21, 7  ;;  %v5253_v18 = vmov 0 }
 0x1b4   :  { %v2813_v15 = vrot.slane %v508_v14, 2  ;;  %1363 = vmatpush.msra.mxu0 %v2335_v44 }
 0x1b5   :  { %v403_v45 = vrot.slane %v367_v54, 7  ;;  %vm5215_vm1 = vcmp.gt.f32.partialorder %v367_v54, -inf  ;;  %vm5229_vm14 = vcmp.gt.f32.partialorder %v367_v54, -inf }
 0x1b6   :  { %v451_v4 = vsel %vm5215_vm1, 1, %v5114_v9  ;;  %vm5225_vm1 = vmmov %vm5212_vm12  ;;  %v427_v27 = vsel %vm5229_vm14, %v367_v54, -inf }
 0x1b7   :  { %v459_v12 = vrot.slane %v451_v4, 7  ;;  %v433_v25 = vsel %vm5225_vm1, %v401_v19, %v425_v58  ;;  %vm5226_vm12 = vmmov %vm5224_vm2  ;;  %vm5231_vm2 = vcmp.gt.f32.partialorder %v2477_v20, %v402_v28 }
 0x1b8   :  { %vm2745_vm11 = vmor %vm5226_vm12, %vm2688_vm15  ;;  %v550_v58 = vrot.slane %v433_v25, 7 }
 0x1b9   :  { %vm467_vm3 = vcmp.ne.s32.totalorder %v459_v12, 0  ;;  %vm2756_vm5 = vmxor %vm5231_vm2, %vm5230_vm9  ;;  %v2828_v12 = vrot.slane %v510_v10, 2  ;;  %v2901_v10 = vrot.slane %v2591_v52, 4 }
 0x1ba   :  { %vm5234_vm1 = vmmov %vm5231_vm2  ;;  %v551_v44 = vrot.slane %v550_v58, 2  ;;  %v2928_v58 = vrot.slane %v2333_v43, 4 }
 0x1bb   :  { %v490_v19 = vsel %vm5234_vm1, %v2477_v20, %v402_v28  ;;  %vm5235_vm15 = vmmov %vm5229_vm14  ;;  %v434_v17 = vsel %vm5234_vm1, %v402_v28, %v426_v53  ;;  %v5256_v53 = vmov 0 }
 0x1bc   :  { %vm2765_vm12 = vmor %vm5235_vm15, %vm467_vm3  ;;  %vm5239_vm15 = vcmp.gt.f32.partialorder %v367_v54, %v403_v45  ;;  %v512_v28 = vrot.slane %v490_v19, 7  ;;  %5278 = vst [vmem:[#allocation10_spill] sm:$0xff] %v2928_v58 }
 0x1bd   :  { %vm5238_vm2 = vmand %vm2462_vm10, %vm2525_vm4  ;;  %v491_v38 = vsel %vm5239_vm15, %v367_v54, %v403_v45 }
 0x1be   :  { %v597_v39 = vsel %vm5238_vm2, 1, %v5114_v9  ;;  %vm482_vm3 = vmand %vm2756_vm5, %vm2745_vm11  ;;  %v514_v54 = vrot.slane %v491_v38, 7  ;;  %v2837_v13 = vrot.slane %v512_v28, 2  ;;  %vm5252_vm5 = vcmp.gt.f32.partialorder %v2343_v47, %v2349_v50 }
 0x1bf   :  { %vm5240_vm14 = vmand %vm2483_vm6, %vm2552_vm8  ;;  %v1777_v8 = vrot.slane %v597_v39, 9  ;;  %v602_v32 = vsel %vm482_vm3, 1, %v5114_v9  ;;  %vm5100_vm3 = vcmp.gt.f32.partialorder %v2750_v26, %v2813_v15  ;;  %v692_v38 = vrot.slane %v2533_v3, 7 }
 0x1c0   :  { %v598_v36 = vsel %vm5240_vm14, 1, %v5114_v9  ;;  %vm5241_vm4 = vmmov %vm5239_vm15  ;;  %vm5246_vm14 = vnez %v5206_v37  ;;  %v2868_v50 = vrot.slane %v514_v54, 2  ;;  %v5294_v28 = vmov 0 }
 0x1c1   :  { %v435_v20 = vsel %vm5241_vm4, %v403_v45, %v427_v27  ;;  %vm5242_vm10 = vmmov %vm5241_vm4  ;;  %v552_v45 = vrot.slane %v434_v17, 7  ;;  %v1778_v5 = vrot.slane %v598_v36, 9  ;;  %v5279_v36 = vmov 0 }
 0x1c2   :  { %vm2794_vm2 = vmxor %vm5242_vm10, %vm5230_vm9  ;;  %v554_v30 = vrot.slane %v435_v20, 7  ;;  %vm5255_vm10 = vcmp.gt.f32.partialorder %v2343_v47, %v2386_v6  ;;  %v1782_v6 = vrot.slane %v602_v32, 9  ;;  %v3111_v39 = vrot.slane %v2591_v52, 6 }
 0x1c3   :  { %vm5245_vm6 = vmand %vm2510_vm7, %vm2568_vm13  ;;  %vm5248_vm7 = vnez %v5214_v61  ;;  %vm5249_vm13 = vnez %v5210_v48  ;;  %v549_v61 = vrot.slane %v548_v31, 2  ;;  %v553_v33 = vrot.slane %v552_v45, 2 }
 0x1c4   :  { %v599_v42 = vsel %vm5245_vm6, 1, %v5114_v9  ;;  %vm483_vm8 = vmand %vm2794_vm2, %vm2765_vm12  ;;  %vm2864_vm2 = vcmp.ne.s32.totalorder %v1777_v8, 0  ;;  %vm5260_vm6 = vcmp.gt.f32.partialorder %v2225_v59, %v2518_v40  ;;  %v555_v19 = vrot.slane %v554_v30, 2  ;;  %5324 = vst [vmem:[#allocation12_spill] sm:$0xff] %v3111_v39 }
 0x1c5   :  { %vm5247_vm15 = vmand %vm2633_vm0, %vm5246_vm14  ;;  %v1779_v37 = vrot.slane %v599_v42, 9  ;;  %v603_v48 = vsel %vm483_vm8, 1, %v5114_v9  ;;  %vm5251_vm0 = vnez %v5219_v1  ;;  %vm2878_vm14 = vcmp.ne.s32.totalorder %v1778_v5, 0 }
 0x1c6   :  { %v600_v57 = vsel %vm5247_vm15, 1, %v5114_v9  ;;  %vm5250_vm4 = vmand %vm5248_vm7, %vm5249_vm13  ;;  %vm5265_vm7 = vcmp.gt.f32.partialorder %v2504_v55, %v2556_v16  ;;  %v1783_v40 = vrot.slane %v603_v48, 9  ;;  %v3053_v48 = vrot.slane %v2701_v2, 7 }
 0x1c7   :  { %v601_v4 = vsel %vm5250_vm4, 1, %v5114_v9  ;;  %v1780_v21 = vrot.slane %v600_v57, 9  ;;  %vm2850_vm11 = vmor %vm5252_vm5, %vm5251_vm0  ;;  %vm2892_vm4 = vcmp.ne.s32.totalorder %v1779_v37, 0  ;;  %vm5275_vm0 = vcmp.gt.f32.partialorder %v2225_v59, %v2469_v41 }
 0x1c8   :  { %v5254_v18 = vsel %vm2850_vm11, 4294967295, %v5253_v18  ;;  %vm2860_vm12 = vmxor %vm5255_vm10, %vm5230_vm9  ;;  %v1781_v1 = vrot.slane %v601_v4, 9  ;;  %vm5270_vm10 = vcmp.gt.f32.partialorder %v2639_v34, %v2713_v49  ;;  %vm5286_vm11 = vcmp.gt.f32.partialorder %v2639_v34, %v2727_v24 }
 0x1c9   :  { %v5257_v53 = vsel %vm2860_vm12, 4294967295, %v5256_v53  ;;  %vm2874_vm8 = vmxor %vm5260_vm6, %vm5230_vm9  ;;  %v575_v20 = vsel %vm5286_vm11, %v2639_v34, %v2727_v24  ;;  %vm5287_vm12 = vcmp.gt.f32.partialorder %v2445_v46, %v2828_v12  ;;  %v5299_v24 = vmov 0 }
 0x1ca   :  { %vm2888_vm13 = vmxor %vm5265_vm7, %vm5230_vm9  ;;  %vm2913_vm7 = vcmp.ne.s32.totalorder %v1780_v21, 0  ;;  %v3074_v2 = vrot.slane %v2445_v46, 2  ;;  %v693_v41 = vrot.slane %v2656_v60, 7  ;;  %v5398_v52 = vmov 0 }
 0x1cb   :  { %vm2909_vm6 = vmxor %vm5270_vm10, %vm5230_vm9 }
 0x1cc   :  { %vm2922_vm15 = vmor %vm5275_vm0, %vm2864_vm2  ;;  %vm2940_vm2 = vcmp.ne.s32.totalorder %v1781_v1, 0  ;;  %vm5283_vm0 = vcmp.gt.f32.partialorder %v2504_v55, %v2494_v51  ;;  %v5288_v51 = vmov 0  ;;  %v3067_v1 = vrot.slane %v2734_v7, 7  ;;  %5320 = vst [vmem:[#allocation11_spill] sm:$0xff] %v3074_v2 }
 0x1cd   :  { %vm2936_vm1 = vmxor %vm5100_vm3, %vm5230_vm9  ;;  %vm5293_vm3 = vcmp.gt.f32.partialorder %v2807_v22, %v2837_v13  ;;  %v5400_v2 = vmov 0 }
 0x1ce   :  { %v5280_v36 = vsel %vm2936_vm1, 4294967295, %v5279_v36  ;;  %vm2949_vm10 = vmor %vm5283_vm0, %vm2878_vm14  ;;  %vm626_vm14 = vcmp.ne.s32.totalorder %v1782_v6, 0 }
 0x1cf   :  { %vm2965_vm1 = vmxor %vm5287_vm12, %vm5230_vm9 }
 0x1d0   :  { %v5289_v51 = vsel %vm2965_vm1, 4294967295, %v5288_v51  ;;  %vm5290_vm0 = vmmov %vm5286_vm11  ;;  %vm2987_vm1 = vcmp.ne.s32.totalorder %v1783_v40, 0  ;;  %vm5302_vm11 = vcmp.gt.f32.partialorder %v2639_v34, %v2713_v49 }
 0x1d1   :  { %vm2974_vm5 = vmor %vm5290_vm0, %vm2892_vm4  ;;  %vm5298_vm4 = vcmp.gt.f32.partialorder %v2750_v26, %v549_v61  ;;  %v647_v8 = vsel %vm5302_vm11, %v2639_v34, %v2713_v49  ;;  %vm5308_vm11 = vcmp.gt.f32.partialorder %v2750_v26, %v2813_v15 }
 0x1d2   :  { %v5292_v0 = vsel %vm2974_vm5, 4294967295, %v5291_v0  ;;  %vm2983_vm12 = vmxor %vm5293_vm3, %vm5230_vm9  ;;  %vm5301_vm3 = vcmp.gt.f32.partialorder %v2504_v55, %v2556_v16  ;;  %v648_v4 = vsel %vm5308_vm11, %v2750_v26, %v2813_v15  ;;  %vm5315_vm11 = vcmp.gt.f32.partialorder %v2901_v10, %v2868_v50 }
 0x1d3   :  { %v5295_v28 = vsel %vm2983_vm12, 4294967295, %v5294_v28  ;;  %vm2995_vm0 = vmor %vm5298_vm4, %vm2913_vm7  ;;  %v646_v57 = vsel %vm5301_vm3, %v2504_v55, %v2556_v16  ;;  %vm5304_vm7 = vcmp.gt.f32.partialorder %v2445_v46, %v551_v44  ;;  %vm5310_vm3 = vcmp.gt.f32.partialorder %v2807_v22, %v553_v33 }
 0x1d4   :  { %v5300_v24 = vsel %vm2995_vm0, 4294967295, %v5299_v24  ;;  %vm5303_vm9 = vmmov %vm5298_vm4  ;;  %v577_v45 = vsel %vm5304_vm7, %v2445_v46, %v551_v44  ;;  %v578_v30 = vsel %vm5310_vm3, %v2807_v22, %v553_v33  ;;  %v5318_v44 = vmov 0 }
 0x1d5   :  { %v576_v54 = vsel %vm5303_vm9, %v2750_v26, %v549_v61  ;;  %vm5305_vm4 = vmmov %vm5304_vm7  ;;  %vm5309_vm9 = vcmp.gt.f32.partialorder %v2445_v46, %v2828_v12  ;;  %v651_v61 = vsel %vm5315_vm11, %v2901_v10, %v2868_v50  ;;  %v3069_v25 = vrot.slane %v646_v57, 7 }
 0x1d6   :  { %vm3019_vm12 = vmor %vm5305_vm4, %vm2940_vm2  ;;  %v649_v5 = vsel %vm5309_vm9, %v2445_v46, %v2828_v12  ;;  %vm5314_vm4 = vcmp.gt.f32.partialorder %v2807_v22, %v2837_v13  ;;  %v3071_v33 = vrot.slane %v647_v8, 7  ;;  %v3086_v7 = vrot.slane %v648_v4, 7 }
 0x1d7   :  { %vm5311_vm2 = vmmov %vm5310_vm3  ;;  %v650_v37 = vsel %vm5314_vm4, %v2807_v22, %v2837_v13  ;;  %v3088_v63 = vrot.slane %v649_v5, 7  ;;  %vm5322_vm4 = vcmp.gt.f32.partialorder %v2750_v26, %v2813_v15  ;;  %vm5323_vm11 = vcmp.gt.f32.partialorder %v2445_v46, %v2828_v12 }
 0x1d8   :  { %vm3038_vm7 = vmor %vm5311_vm2, %vm626_vm14  ;;  %vm5316_vm14 = vcmp.gt.f32.partialorder %v2901_v10, %v555_v19  ;;  %vm5321_vm2 = vcmp.gt.f32.partialorder %v2639_v34, %v2713_v49  ;;  %v3106_v40 = vrot.slane %v650_v37, 7  ;;  %v3108_v29 = vrot.slane %v651_v61, 7 }
 0x1d9   :  { %v579_v21 = vsel %vm5316_vm14, %v2901_v10, %v555_v19  ;;  %vm5317_vm9 = vmmov %vm5316_vm14  ;;  %v3080_v6 = vsel %vm5321_vm2, %v2713_v49, %v575_v20  ;;  %v3094_v19 = vsel %vm5322_vm4, %v2813_v15, %v576_v54  ;;  %v3100_v49 = vsel %vm5323_vm11, %v2828_v12, %v577_v45  ;;  %v5452_v45 = vld [vmem:[#allocation10_spill] sm:$0xff] }
 0x1da   :  { %vm3062_vm3 = vmor %vm5317_vm9, %vm2987_vm1  ;;  %vm5325_vm9 = vcmp.gt.f32.partialorder %v2807_v22, %v2837_v13  ;;  %vm5326_vm2 = vcmp.gt.f32.partialorder %v2901_v10, %v2868_v50  ;;  %vm5327_vm14 = vnez %v5280_v36  ;;  %vm5328_vm4 = vnez %v5257_v53 }
 0x1db   :  { %v5319_v44 = vsel %vm3062_vm3, 4294967295, %v5318_v44  ;;  %v3117_v15 = vsel %vm5325_vm9, %v2837_v13, %v578_v30  ;;  %v3123_v12 = vsel %vm5326_vm2, %v2868_v50, %v579_v21  ;;  %vm5329_vm5 = vnez %v5254_v18 }
 0x1dc   :  { %vm5330_vm11 = vmand %vm5328_vm4, %vm5329_vm5  ;;  %vm5331_vm9 = vnez %v5289_v51  ;;  %v694_v20 = vrot.slane %v2673_v23, 7  ;;  %vm5333_vm4 = vnez %v5295_v28  ;;  %v695_v60 = vrot.slane %v3080_v6, 7 }
 0x1dd   :  { %v740_v13 = vsel %vm5330_vm11, 1, %v5114_v9  ;;  %vm641_vm0 = vmand %vm5331_vm9, %vm3019_vm12  ;;  %v696_v23 = vrot.slane %v3094_v19, 7  ;;  %v5116_v53 = vrot.slane %v3100_v49, 7  ;;  %v698_v42 = vrot.slane %v3117_v15, 7 }
 0x1de   :  { %vm5332_vm5 = vmand %vm2874_vm8, %vm2922_vm15  ;;  %vm5335_vm15 = vmmov 1   ;;  %v699_v57 = vrot.slane %v3123_v12, 7  ;;  %v748_v43 = vrot.slane %v740_v13, 7  ;;  %v5342_v50 = vmov 0 }
 0x1df   :  { %v741_v18 = vsel %vm5332_vm5, 1, %v5114_v9  ;;  %vm642_vm11 = vmand %vm5333_vm4, %vm3038_vm7  ;;  %vm3236_vm12 = vcmp.gt.f32.partialorder %v2639_v34, %v695_v60  ;;  %v5352_v16 = vmov 0  ;;  %v5356_v37 = vmov 0 }
 0x1e0   :  { %vm5334_vm8 = vmand %vm2888_vm13, %vm2949_vm10  ;;  %vm5341_vm13 = vnez %v5319_v44  ;;  %v749_v8 = vrot.slane %v741_v18, 7  ;;  %v746_v51 = vsel %vm642_vm11, 1, %v5114_v9  ;;  %vm3253_vm7 = vcmp.ne.s32.totalorder %v748_v43, 0 }
 0x1e1   :  { %v742_v27 = vsel %vm5334_vm8, 1, %v5114_v9  ;;  %vm5336_vm5 = vmmov %vm5326_vm2  ;;  %vm5339_vm2 = vnez %v5292_v0  ;;  %vm3203_vm8 = vcmp.gt.f32.partialorder %v2343_v47, %v692_v38  ;;  %v745_v0 = vsel %vm641_vm0, 1, %v5114_v9 }
 0x1e2   :  { %vm3184_vm1 = vmxor %vm5336_vm5, %vm5335_vm15  ;;  %v5343_v50 = vsel %vm3203_vm8, 4294967295, %v5342_v50  ;;  %vm5344_vm5 = vnez %v5300_v24  ;;  %v750_v24 = vrot.slane %v742_v27, 7  ;;  %vm3241_vm0 = vcmp.gt.f32.partialorder %v2750_v26, %v696_v23 }
 0x1e3   :  { %vm5340_vm3 = vmand %vm2909_vm6, %vm5339_vm2  ;;  %v5353_v16 = vsel %vm3241_vm0, 4294967295, %v5352_v16  ;;  %v753_v32 = vrot.slane %v745_v0, 7  ;;  %v5357_v37 = vsel %vm3253_vm7, 4294967295, %v5356_v37  ;;  %vm3258_vm9 = vcmp.gt.f32.partialorder %v2807_v22, %v698_v42 }
 0x1e4   :  { %v743_v14 = vsel %vm5340_vm3, 1, %v5114_v9  ;;  %vm643_vm10 = vmand %vm3184_vm1, %vm5341_vm13  ;;  %vm3220_vm3 = vcmp.gt.f32.partialorder %v2225_v59, %v693_v41  ;;  %vm3225_vm1 = vcmp.gt.f32.partialorder %v2504_v55, %v694_v20  ;;  %vm3263_vm2 = vcmp.gt.f32.partialorder %v2901_v10, %v699_v57 }
 0x1e5   :  { %vm5345_vm6 = vmand %vm5327_vm14, %vm5344_vm5  ;;  %vm3248_vm14 = vcmp.gt.f32.partialorder %v2445_v46, %v5116_v53  ;;  %v751_v4 = vrot.slane %v743_v14, 7  ;;  %v747_v5 = vsel %vm643_vm10, 1, %v5114_v9  ;;  %v5360_v21 = vmov 0 }
 0x1e6   :  { %v744_v31 = vsel %vm5345_vm6, 1, %v5114_v9  ;;  %v5361_v21 = vsel %vm3263_vm2, 4294967295, %v5360_v21  ;;  %v754_v44 = vrot.slane %v746_v51, 7  ;;  %vm3267_vm4 = vcmp.ne.s32.totalorder %v749_v8, 0 }
 0x1e7   :  { %v752_v30 = vrot.slane %v744_v31, 7  ;;  %v5362_v6 = vmov 0  ;;  %v716_v19 = vsel %vm3203_vm8, %v2343_v47, %v692_v38  ;;  %v717_v15 = vsel %vm3220_vm3, %v2225_v59, %v693_v41 }
 0x1e8   :  { %v5363_v6 = vsel %vm3267_vm4, 4294967295, %v5362_v6  ;;  %vm5364_vm11 = vcmp.gt.f32.partialorder %v2343_v47, %v3053_v48  ;;  %v5365_v12 = vmov 0  ;;  %vm3287_vm10 = vcmp.ne.s32.totalorder %v750_v24, 0 }
 0x1e9   :  { %vm3283_vm13 = vmxor %vm5364_vm11, %vm5335_vm15  ;;  %vm5370_vm6 = vcmp.gt.f32.partialorder %v2225_v59, %v3067_v1  ;;  %v5371_v38 = vmov 0  ;;  %v755_v41 = vrot.slane %v747_v5, 7  ;;  %v5373_v18 = vmov 0 }
 0x1ea   :  { %v5366_v12 = vsel %vm3283_vm13, 4294967295, %v5365_v12  ;;  %vm5369_vm5 = vmmov %vm5364_vm11  ;;  %vm3304_vm11 = vcmp.ne.s32.totalorder %v751_v4, 0  ;;  %v718_v14 = vsel %vm3225_vm1, %v2504_v55, %v694_v20  ;;  %v5378_v43 = vmov 0 }
 0x1eb   :  { %v780_v3 = vsel %vm5369_vm5, %v2343_v47, %v3053_v48  ;;  %vm3300_vm2 = vmxor %vm5370_vm6, %vm5335_vm15  ;;  %v5374_v18 = vsel %vm3304_vm11, 4294967295, %v5373_v18  ;;  %vm3333_vm7 = vcmp.ne.s32.totalorder %v752_v30, 0  ;;  %v5380_v31 = vmov 0 }
 0x1ec   :  { %v5372_v38 = vsel %vm3300_vm2, 4294967295, %v5371_v38  ;;  %vm5375_vm5 = vmmov %vm5370_vm6  ;;  %vm5376_vm6 = vcmp.gt.f32.partialorder %v2504_v55, %v3069_v25  ;;  %v5381_v31 = vsel %vm3333_vm7, 4294967295, %v5380_v31  ;;  %v5382_v0 = vmov 0 }
 0x1ed   :  { %v781_v27 = vsel %vm5375_vm5, %v2225_v59, %v3067_v1  ;;  %v782_v17 = vsel %vm5376_vm6, %v2504_v55, %v3069_v25  ;;  %vm5377_vm13 = vmmov %vm5376_vm6  ;;  %vm3337_vm5 = vcmp.ne.s32.totalorder %v753_v32, 0  ;;  %v5386_v8 = vmov 0 }
 0x1ee   :  { %vm3329_vm2 = vmxor %vm5377_vm13, %vm5335_vm15  ;;  %v5383_v0 = vsel %vm3337_vm5, 4294967295, %v5382_v0  ;;  %vm5384_vm13 = vcmp.gt.f32.partialorder %v2639_v34, %v3071_v33  ;;  %vm3358_vm5 = vcmp.ne.s32.totalorder %v754_v44, 0  ;;  %v796_v5 = vrot.slane %v780_v3, 7 }
 0x1ef   :  { %v5379_v43 = vsel %vm3329_vm2, 4294967295, %v5378_v43  ;;  %v783_v20 = vsel %vm5384_vm13, %v2639_v34, %v3071_v33  ;;  %vm5385_vm2 = vmmov %vm5384_vm13  ;;  %vm5390_vm13 = vcmp.gt.f32.partialorder %v2750_v26, %v3086_v7  ;;  %v5393_v30 = vmov 0 }
 0x1f0   :  { %vm3354_vm8 = vmxor %vm5385_vm2, %vm5335_vm15  ;;  %v784_v24 = vsel %vm5390_vm13, %v2750_v26, %v3086_v7  ;;  %vm5391_vm2 = vcmp.gt.f32.partialorder %v2445_v46, %v3088_v63  ;;  %vm5395_vm6 = vcmp.gt.f32.partialorder %v2807_v22, %v3106_v40  ;;  %v798_v3 = vrot.slane %v781_v27, 7 }
 0x1f1   :  { %v5387_v8 = vsel %vm3354_vm8, 4294967295, %v5386_v8  ;;  %v785_v4 = vsel %vm5391_vm2, %v2445_v46, %v3088_v63  ;;  %vm5392_vm8 = vmmov %vm5390_vm13  ;;  %v786_v32 = vsel %vm5395_vm6, %v2807_v22, %v3106_v40  ;;  %vm5396_vm2 = vcmp.gt.f32.partialorder %v2901_v10, %v3108_v29 }
 0x1f2   :  { %vm3380_vm4 = vmxor %vm5392_vm8, %vm5335_vm15  ;;  %v787_v44 = vsel %vm5396_vm2, %v2901_v10, %v3108_v29  ;;  %v800_v9 = vrot.slane %v782_v17, 7  ;;  %v719_v53 = vsel %vm3236_vm12, %v2639_v34, %v695_v60  ;;  %v720_v39 = vsel %vm3241_vm0, %v2750_v26, %v696_v23 }
 0x1f3   :  { %v5394_v30 = vsel %vm3380_vm4, 4294967295, %v5393_v30  ;;  %vm5397_vm8 = vcmp.gt.f32.partialorder %v2445_v46, %v3088_v63  ;;  %vm3412_vm13 = vcmp.ne.s32.totalorder %v755_v41, 0  ;;  %v802_v60 = vrot.slane %v783_v20, 7 }
 0x1f4   :  { %vm3408_vm6 = vmxor %vm5397_vm8, %vm5335_vm15  ;;  %v5401_v2 = vsel %vm3412_vm13, 4294967295, %v5400_v2  ;;  %v5402_v23 = vrot.slane %v3100_v49, 7  ;;  %v722_v17 = vsel %vm3258_vm9, %v2807_v22, %v698_v42  ;;  %vm5403_vm8 = vnez %v5361_v21 }
 0x1f5   :  { %v5399_v52 = vsel %vm3408_vm6, 4294967295, %v5398_v52  ;;  %v723_v41 = vsel %vm5403_vm8, %v2901_v10, %v699_v57  ;;  %vm5404_vm6 = vcmp.gt.f32.partialorder %v2807_v22, %v3106_v40  ;;  %v5405_v20 = vmov 0 }
 0x1f6   :  { %v721_v27 = vsel %vm3248_vm14, %v2445_v46, %v5402_v23  ;;  %vm3435_vm2 = vmxor %vm5404_vm6, %vm5335_vm15  ;;  %vm5408_vm4 = vnez %v5383_v0  ;;  %v804_v49 = vrot.slane %v784_v24, 7  ;;  %vm5409_vm0 = vcmp.gt.f32.partialorder %v2901_v10, %v3108_v29 }
 0x1f7   :  { %v5406_v20 = vsel %vm3435_vm2, 4294967295, %v5405_v20  ;;  %vm3447_vm11 = vmxor %vm5409_vm0, %vm5335_vm15  ;;  %v5410_v42 = vmov 0  ;;  %v3455_v57 = vrot.slane %v796_v5, 2  ;;  %v806_v23 = vrot.slane %v785_v4, 7 }
 0x1f8   :  { %5407 = vst [vmem:[#allocation13_spill] sm:$0xff] %v5406_v20  ;;  %v5411_v42 = vsel %vm3447_vm11, 4294967295, %v5410_v42  ;;  %v808_v20 = vrot.slane %v786_v32, 7  ;;  %v810_v58 = vrot.slane %v787_v44, 7  ;;  %vm5413_vm7 = vcmp.gt.f32.partialorder %v2343_v47, %v3053_v48 }
 0x1f9   :  { %5412 = vst [vmem:[#allocation14_spill] sm:$0xff] %v5411_v42  ;;  %v724_v24 = vsel %vm5413_vm7, %v3053_v48, %v716_v19  ;;  %vm5414_vm0 = vcmp.gt.f32.partialorder %v2225_v59, %v3067_v1  ;;  %v3469_v5 = vrot.slane %v798_v3, 2  ;;  %v3471_v4 = vrot.slane %v800_v9, 2  ;;  %v5458_v19 = vld [vmem:[#allocation11_spill] sm:$0xff] }
 0x1fa   :  { %v725_v42 = vsel %vm5414_vm0, %v3067_v1, %v717_v15  ;;  %vm5415_vm15 = vcmp.gt.f32.partialorder %v2504_v55, %v3069_v25  ;;  %vm5416_vm7 = vcmp.gt.f32.partialorder %v2639_v34, %v3071_v33  ;;  %vm5417_vm0 = vcmp.gt.f32.partialorder %v2750_v26, %v3086_v7 }
 0x1fb   :  { %v726_v47 = vsel %vm5415_vm15, %v3069_v25, %v718_v14  ;;  %v727_v59 = vsel %vm5416_vm7, %v3071_v33, %v719_v53  ;;  %v728_v48 = vsel %vm5417_vm0, %v3086_v7, %v720_v39  ;;  %vm5418_vm6 = vnez %v5343_v50 }
 0x1fc   :  { %vm5419_vm11 = vnez %v5357_v37  ;;  %vm5421_vm8 = vnez %v5366_v12  ;;  %v3496_v55 = vrot.slane %v802_v60, 2  ;;  %vm5424_vm15 = vcmp.gt.f32.partialorder %v2445_v46, %v3088_v63 }
 0x1fd   :  { %vm5420_vm13 = vmor %vm5418_vm6, %vm5419_vm11  ;;  %v729_v34 = vsel %vm5424_vm15, %v3088_v63, %v721_v27  ;;  %vm5425_vm7 = vcmp.gt.f32.partialorder %v2807_v22, %v3106_v40  ;;  %vm5426_vm11 = vcmp.gt.f32.partialorder %v2901_v10, %v3108_v29  ;;  %vm5429_vm6 = vnez %v5372_v38 }
 0x1fe   :  { %vm3492_vm2 = vmand %vm5421_vm8, %vm5420_vm13  ;;  %v730_v26 = vsel %vm5425_vm7, %v3106_v40, %v722_v17  ;;  %v731_v1 = vsel %vm5426_vm11, %v3108_v29, %v723_v41  ;;  %vm5427_vm13 = vnez %v5363_v6  ;;  %v3521_v25 = vrot.slane %v804_v49, 2 }
 0x1ff   :  { %vm5428_vm8 = vmor %vm3220_vm3, %vm5427_vm13  ;;  %vm5433_vm7 = vnez %v5379_v43  ;;  %v3534_v10 = vrot.slane %v806_v23, 2  ;;  %v3536_v33 = vrot.slane %v808_v20, 2  ;;  %v3538_v7 = vrot.slane %v810_v58, 2  ;;  %v5454_v28 = vld [vmem:[#allocation13_spill] sm:$0xff] }
 0x200   :  { %vm3517_vm0 = vmand %vm5429_vm6, %vm5428_vm8  ;;  %vm5130_vm3 = vcmp.gt.f32.partialorder %v2369_v62, %v3455_v57  ;;  %vm5436_vm13 = vnez %v5374_v18  ;;  %v836_v58 = vrot.slane %v724_v24, 7  ;;  %v5441_v40 = vmov 0   ;;  %v5462_v61 = vld [vmem:[#allocation14_spill] sm:$0xff]  ;;  %v5464_v18 = vld [vmem:[#allocation9_spill] sm:$0xff] }
 0x201   :  { %vm5432_vm15 = vmor %vm3225_vm1, %vm3287_vm10  ;;  %vm5438_vm10 = vnez %v5387_v8  ;;  %v892_v29 = vsel %vm3492_vm2, 1, %v5441_v40  ;;  %v838_v53 = vrot.slane %v725_v42, 7  ;;  %v840_v50 = vrot.slane %v726_v47, 7 }
 0x202   :  { %vm3530_vm11 = vmand %vm5433_vm7, %vm5432_vm15  ;;  %vm5131_vm15 = vcmp.gt.f32.partialorder %v2263_v11, %v3471_v4  ;;  %vm5442_vm7 = vnez %v5353_v16  ;;  %v893_v54 = vsel %vm3517_vm0, 1, %v5441_v40  ;;  %v842_v16 = vrot.slane %v727_v59, 7 }
 0x203   :  { %vm5437_vm1 = vmor %vm3236_vm12, %vm5436_vm13  ;;  %vm5443_vm12 = vnez %v5381_v31  ;;  %v844_v37 = vrot.slane %v728_v48, 7  ;;  %v894_v6 = vsel %vm3530_vm11, 1, %v5441_v40  ;;  %v846_v15 = vrot.slane %v729_v34, 7 }
 0x204   :  { %vm3549_vm8 = vmand %vm5438_vm10, %vm5437_vm1  ;;  %vm5445_vm1 = vnez %v5394_v30  ;;  %v848_v12 = vrot.slane %v730_v26, 7  ;;  %v1784_v38 = vrot.slane %v892_v29, 9  ;;  %vm5459_vm11 = vnez %v5361_v21 }
 0x205   :  { %vm5444_vm13 = vmor %vm5442_vm7, %vm5443_vm12  ;;  %vm5449_vm7 = vnez %v5399_v52  ;;  %v895_v13 = vsel %vm3549_vm8, 1, %v5441_v40  ;;  %v837_v14 = vrot.slane %v836_v58, 2  ;;  %v850_v43 = vrot.slane %v731_v1, 7  ;;  %v5481_v1 = vld [vmem:[#allocation12_spill] sm:$0xff] }
 0x206   :  { %vm3567_vm10 = vmand %vm5445_vm1, %vm5444_vm13  ;;  %v1785_v0 = vrot.slane %v893_v54, 9  ;;  %v839_v8 = vrot.slane %v838_v53, 2  ;;  %v841_v51 = vrot.slane %v840_v50, 2  ;;  %v1786_v21 = vrot.slane %v894_v6, 9 }
 0x207   :  { %vm5448_vm2 = vmor %vm3248_vm14, %vm5408_vm4  ;;  %vm5455_vm4 = vnez %v5454_v28  ;;  %v896_v31 = vsel %vm3567_vm10, 1, %v5441_v40  ;;  %v843_v30 = vrot.slane %v842_v16, 2  ;;  %v845_v32 = vrot.slane %v844_v37, 2  ;;  %v1293_v37 = vpop.permute.xlu0 %1292 }
 0x208   :  { %vm3583_vm12 = vmand %vm5449_vm7, %vm5448_vm2  ;;  %vm5463_vm2 = vnez %v5462_v61  ;;  %v1787_v3 = vrot.slane %v895_v13, 9  ;;  %v847_v60 = vrot.slane %v846_v15, 2  ;;  %v1788_v17 = vrot.slane %v896_v31, 9 }
 0x209   :  { %vm5453_vm14 = vmor %vm3258_vm9, %vm3358_vm5  ;;  %vm5460_vm9 = vnez %v5401_v2  ;;  %v897_v2 = vsel %vm3583_vm12, 1, %v5441_v40  ;;  %vm3627_vm8 = vcmp.ne.s32.totalorder %v1784_v38, 0  ;;  %v849_v20 = vrot.slane %v848_v12, 2 }
 0x20a   :  { %vm3599_vm0 = vmand %vm5455_vm4, %vm5453_vm14  ;;  %v851_v49 = vrot.slane %v850_v43, 2  ;;  %v1789_v42 = vrot.slane %v897_v2, 9  ;;  %vm3631_vm10 = vcmp.ne.s32.totalorder %v1785_v0, 0  ;;  %vm860_vm12 = vcmp.gt.f32.partialorder %v2369_v62, %v837_v14 }
 0x20b   :  { %vm5461_vm5 = vmor %vm5459_vm11, %vm5460_vm9  ;;  %v898_v44 = vsel %vm3599_vm0, 1, %v5441_v40  ;;  %vm861_vm4 = vcmp.gt.f32.partialorder %v2448_v56, %v839_v8  ;;  %vm5469_vm0 = vmmov 1   ;;  %vm3645_vm9 = vcmp.ne.s32.totalorder %v1786_v21, 0 }
 0x20c   :  { %vm779_vm7 = vmand %vm5463_vm2, %vm5461_vm5  ;;  %v1790_v47 = vrot.slane %v898_v44, 9  ;;  %v5482_v46 = vmov 0  ;;  %vm3683_vm6 = vcmp.ne.s32.totalorder %v1788_v17, 0  ;;  %v868_v58 = vsel %vm860_vm12, %v2369_v62, %v837_v14 }
 0x20d   :  { %v899_v27 = vsel %vm779_vm7, 1, %v5441_v40  ;;  %vm3641_vm11 = vmxor %vm5130_vm3, %vm5469_vm0  ;;  %vm5474_vm7 = vcmp.gt.f32.partialorder %v2448_v56, %v3469_v5  ;;  %vm3659_vm3 = vcmp.ne.s32.totalorder %v1787_v3, 0  ;;  %v5489_v29 = vmov 0 }
 0x20e   :  { %vm3655_vm14 = vmxor %vm5474_vm7, %vm5469_vm0  ;;  %v1791_v9 = vrot.slane %v899_v27, 9  ;;  %vm5493_vm2 = vcmp.gt.f32.partialorder %v2263_v11, %v841_v51  ;;  %v869_v50 = vsel %vm861_vm4, %v2448_v56, %v839_v8  ;;  %v5499_v16 = vmov 0 }
 0x20f   :  { %vm3667_vm1 = vmor %vm860_vm12, %vm3627_vm8  ;;  %vm5497_vm12 = vcmp.gt.f32.partialorder %v2642_v35, %v843_v30  ;;  %v5508_v52 = vmov 0  ;;  %v5513_v12 = vmov 0  ;;  %v5520_v43 = vmov 0 }
 0x210   :  { %vm3679_vm5 = vmxor %vm5131_vm15, %vm5469_vm0  ;;  %vm5488_vm15 = vcmp.gt.f32.partialorder %v2642_v35, %v3496_v55  ;;  %v871_v36 = vsel %vm5497_vm12, %v2642_v35, %v843_v30  ;;  %v5531_v30 = vmov 0 }
 0x211   :  { %v5483_v46 = vsel %vm3679_vm5, 4294967295, %v5482_v46  ;;  %vm3691_vm8 = vmor %vm861_vm4, %vm3631_vm10  ;;  %vm3708_vm10 = vcmp.ne.s32.totalorder %v1789_v42, 0  ;;  %vm3760_vm5 = vcmp.ne.s32.totalorder %v1791_v9, 0 }
 0x212   :  { %vm3704_vm7 = vmxor %vm5488_vm15, %vm5469_vm0 }
 0x213   :  { %v5490_v29 = vsel %vm3704_vm7, 4294967295, %v5489_v29  ;;  %vm3716_vm13 = vmor %vm5493_vm2, %vm3645_vm9  ;;  %vm5498_vm7 = vcmp.gt.f32.partialorder %v5452_v45, %v3521_v25 }
 0x214   :  { %vm5496_vm15 = vmmov %vm5493_vm2  ;;  %vm3737_vm2 = vcmp.ne.s32.totalorder %v1790_v47, 0 }
 0x215   :  { %v870_v54 = vsel %vm5496_vm15, %v2263_v11, %v841_v51  ;;  %vm3733_vm9 = vmxor %vm5498_vm7, %vm5469_vm0  ;;  %vm5507_vm7 = vcmp.gt.f32.partialorder %v5458_v19, %v3534_v10 }
 0x216   :  { %v5500_v16 = vsel %vm3733_vm9, 4294967295, %v5499_v16  ;;  %vm5503_vm4 = vmmov %vm5497_vm12  ;;  %vm5506_vm12 = vcmp.gt.f32.partialorder %v5452_v45, %v845_v32 }
 0x217   :  { %vm3745_vm15 = vmor %vm5503_vm4, %vm3659_vm3  ;;  %v872_v28 = vsel %vm5506_vm12, %v5452_v45, %v845_v32  ;;  %v5538_v32 = vmov 0 }
 0x218   :  { %vm3756_vm9 = vmxor %vm5507_vm7, %vm5469_vm0  ;;  %vm5516_vm7 = vcmp.gt.f32.partialorder %v2448_v56, %v3469_v5 }
 0x219   :  { %v5509_v52 = vsel %vm3756_vm9, 4294967295, %v5508_v52  ;;  %vm5512_vm3 = vmmov %vm5506_vm12  ;;  %vm5515_vm12 = vcmp.gt.f32.partialorder %v2369_v62, %v3455_v57  ;;  %v941_v38 = vsel %vm5516_vm7, %v2448_v56, %v3469_v5  ;;  %vm5517_vm9 = vcmp.gt.f32.partialorder %v5458_v19, %v847_v60 }
 0x21a   :  { %vm3768_vm4 = vmor %vm5512_vm3, %vm3683_vm6  ;;  %v940_v13 = vsel %vm5515_vm12, %v2369_v62, %v3455_v57  ;;  %v873_v61 = vsel %vm5517_vm9, %v5458_v19, %v847_v60  ;;  %vm5518_vm6 = vcmp.gt.f32.partialorder %v5464_v18, %v849_v20  ;;  %vm5519_vm3 = vcmp.gt.f32.partialorder %v5464_v18, %v3536_v33 }
 0x21b   :  { %v5514_v12 = vsel %vm3768_vm4, 4294967295, %v5513_v12  ;;  %v874_v14 = vsel %vm5518_vm6, %v5464_v18, %v849_v20  ;;  %vm3792_vm4 = vmxor %vm5519_vm3, %vm5469_vm0  ;;  %vm5526_vm6 = vcmp.gt.f32.partialorder %v2642_v35, %v3496_v55  ;;  %vm5527_vm3 = vcmp.gt.f32.partialorder %v5481_v1, %v851_v49 }
 0x21c   :  { %v5521_v43 = vsel %vm3792_vm4, 4294967295, %v5520_v43  ;;  %vm5522_vm12 = vmmov %vm5517_vm9  ;;  %vm5525_vm9 = vcmp.gt.f32.partialorder %v2263_v11, %v3471_v4  ;;  %v943_v8 = vsel %vm5526_vm6, %v2642_v35, %v3496_v55  ;;  %v875_v51 = vsel %vm5527_vm3, %v5481_v1, %v851_v49 }
 0x21d   :  { %vm3800_vm7 = vmor %vm5522_vm12, %vm3708_vm10  ;;  %v942_v0 = vsel %vm5525_vm9, %v2263_v11, %v3471_v4  ;;  %vm5528_vm10 = vcmp.gt.f32.partialorder %v2369_v62, %v3455_v57  ;;  %vm5529_vm12 = vcmp.gt.f32.partialorder %v2448_v56, %v3469_v5  ;;  %vm5530_vm9 = vcmp.gt.f32.partialorder %v5481_v1, %v3538_v7 }
 0x21e   :  { %v3821_v2 = vsel %vm5528_vm10, %v3455_v57, %v868_v58  ;;  %v3827_v21 = vsel %vm5529_vm12, %v3469_v5, %v869_v50  ;;  %vm3833_vm6 = vmxor %vm5530_vm9, %vm5469_vm0  ;;  %vm5533_vm3 = vcmp.gt.f32.partialorder %v5464_v18, %v849_v20  ;;  %vm5536_vm12 = vcmp.gt.f32.partialorder %v5452_v45, %v3521_v25 }
 0x21f   :  { %v5532_v30 = vsel %vm3833_vm6, 4294967295, %v5531_v30  ;;  %vm3841_vm10 = vmor %vm5533_vm3, %vm3737_vm2  ;;  %v944_v5 = vsel %vm5536_vm12, %v5452_v45, %v3521_v25  ;;  %vm5537_vm9 = vcmp.gt.f32.partialorder %v5481_v1, %v851_v49  ;;  %vm5540_vm2 = vcmp.gt.f32.partialorder %v5458_v19, %v3534_v10 }
 0x220   :  { %vm3854_vm0 = vmor %vm5537_vm9, %vm3760_vm5  ;;  %v945_v44 = vsel %vm5540_vm2, %v5458_v19, %v3534_v10  ;;  %vm5541_vm3 = vcmp.gt.f32.partialorder %v5464_v18, %v3536_v33  ;;  %v3868_v60 = vrot.slane %v940_v13, 7  ;;  %v3870_v27 = vrot.slane %v941_v38, 7  ;;  %v1419_v13 = vld [vmem:[%s5076_s9 + $0x170] sm:$0xff] }
 0x221   :  { %v5539_v32 = vsel %vm3854_vm0, 4294967295, %v5538_v32  ;;  %v946_v3 = vsel %vm5541_vm3, %v5464_v18, %v3536_v33  ;;  %vm5542_vm5 = vcmp.gt.f32.partialorder %v2263_v11, %v3471_v4  ;;  %vm5543_vm9 = vcmp.gt.f32.partialorder %v5481_v1, %v3538_v7  ;;  %vm5545_vm3 = vmmov %vm5536_vm12 }
 0x222   :  { %v3876_v17 = vsel %vm5542_vm5, %v3471_v4, %v870_v54  ;;  %v947_v41 = vsel %vm5543_vm9, %v5481_v1, %v3538_v7  ;;  %v3887_v20 = vrot.slane %v942_v0, 7  ;;  %v3889_v49 = vrot.slane %v943_v8, 7  ;;  %vm5551_vm12 = vmand %vm3641_vm11, %vm3667_vm1  ;;  %v1229_v54 = vld [vmem:[%s5073_s6 + $0x18] sm:$0xff]  ;;  %v1399_v0 = vld [vmem:[%s5076_s9 + $0xd0] sm:$0xff] }
 0x223   :  { %vm5544_vm2 = vcmp.gt.f32.partialorder %v2642_v35, %v3496_v55  ;;  %v3901_v42 = vsel %vm5545_vm3, %v3521_v25, %v872_v28  ;;  %vm5546_vm5 = vcmp.gt.f32.partialorder %v5458_v19, %v3534_v10  ;;  %v3913_v47 = vrot.slane %v944_v5, 7  ;;  %vm5548_vm3 = vmmov %vm5543_vm9 }
 0x224   :  { %v3895_v4 = vsel %vm5544_vm2, %v3496_v55, %v871_v36  ;;  %v3907_v23 = vsel %vm5546_vm5, %v3534_v10, %v873_v61  ;;  %vm5547_vm2 = vcmp.gt.f32.partialorder %v5464_v18, %v3536_v33  ;;  %v3925_v25 = vsel %vm5548_vm3, %v3538_v7, %v875_v51  ;;  %vm5554_vm1 = vmand %vm3655_vm14, %vm3691_vm8  ;;  %v1291_v36 = vpop.permute.xlu2 %1290 }
 0x225   :  { %v3919_v55 = vsel %vm5547_vm2, %v3536_v33, %v874_v14  ;;  %vm5549_vm5 = vnez %v5483_v46  ;;  %v3931_v10 = vrot.slane %v945_v44, 7  ;;  %v3933_v59 = vrot.slane %v946_v3, 7 }
 0x226   :  { %vm5550_vm2 = vnez %v5490_v29  ;;  %v3939_v33 = vrot.slane %v947_v41, 7  ;;  %v1036_v7 = vsel %vm5551_vm12, 1, %v5441_v40  ;;  %vm5552_vm0 = vnez %v5514_v12  ;;  %vm5556_vm3 = vmand %vm5549_vm5, %vm3716_vm13 }
 0x227   :  { %vm5553_vm4 = vnez %v5500_v16  ;;  %v988_v9 = vrot.slane %v3821_v2, 7  ;;  %v1037_v24 = vsel %vm5554_vm1, 1, %v5441_v40  ;;  %vm5555_vm11 = vnez %v5509_v52  ;;  %vm5558_vm6 = vmand %vm5550_vm2, %vm3745_vm15 }
 0x228   :  { %vm936_vm9 = vmand %vm5553_vm4, %vm5552_vm0  ;;  %v989_v34 = vrot.slane %v3827_v21, 7  ;;  %v990_v26 = vrot.slane %v3876_v17, 7  ;;  %v1038_v48 = vsel %vm5556_vm3, 1, %v5441_v40  ;;  %vm5557_vm14 = vnez %v5521_v43 }
 0x229   :  { %vm937_vm12 = vmand %vm5555_vm11, %vm3800_vm7  ;;  %v991_v22 = vrot.slane %v3895_v4, 7  ;;  %v992_v63 = vrot.slane %v3901_v42, 7  ;;  %v1039_v46 = vsel %vm5558_vm6, 1, %v5441_v40  ;;  %v1044_v58 = vrot.slane %v1036_v7, 7 }
 0x22a   :  { %vm938_vm8 = vmand %vm5557_vm14, %vm3841_vm10  ;;  %vm5559_vm13 = vnez %v5539_v32  ;;  %vm5560_vm5 = vnez %v5532_v30  ;;  %v993_v39 = vrot.slane %v3907_v23, 7  ;;  %v994_v53 = vrot.slane %v3919_v55, 7 }
 0x22b   :  { %vm939_vm3 = vmand %vm5560_vm5, %vm5559_vm13  ;;  %v1040_v29 = vsel %vm936_vm9, 1, %v5441_v40  ;;  %v1045_v50 = vrot.slane %v1037_v24, 7  ;;  %v995_v6 = vrot.slane %v3925_v25, 7  ;;  %vm4013_vm15 = vcmp.gt.f32.partialorder %v2369_v62, %v988_v9 }
 0x22c   :  { %v5561_v28 = vmov 0  ;;  %v1041_v16 = vsel %vm937_vm12, 1, %v5441_v40  ;;  %v1046_v15 = vrot.slane %v1038_v48, 7  ;;  %vm5563_vm0 = vcmask 785408   ;;  %v1417_v48 = vld [vmem:[%s5076_s9 + $0x160] sm:$0xff] }
 0x22d   :  { %v5562_v28 = vsel %vm4013_vm15, 4294967295, %v5561_v28  ;;  %1809 = vmatmul.msk.f32.gmra.mxu2 %vm5563_vm0, %v1229_v54  ;;  %vm4025_vm4 = vcmp.gt.f32.partialorder %v2448_v56, %v989_v34  ;;  %v5564_v12 = vmov 0  ;;  %vm4030_vm6 = vcmp.gt.f32.partialorder %v2263_v11, %v990_v26  ;;  %v1404_v54 = vld [vmem:[%s5076_s9 + $0xf8] sm:$0xff] }
 0x22e   :  { %v5565_v12 = vsel %vm4025_vm4, 4294967295, %v5564_v12  ;;  %v1042_v52 = vsel %vm938_vm8, 1, %v5441_v40  ;;  %v1047_v38 = vrot.slane %v1039_v46, 7  ;;  %vm4041_vm7 = vcmp.gt.f32.partialorder %v2642_v35, %v991_v22  ;;  %1448 = vmatpush.msra.mxu2 %v1404_v54 }
 0x22f   :  { %v1043_v14 = vsel %vm939_vm3, 1, %v5441_v40  ;;  %v1048_v31 = vrot.slane %v1040_v29, 7  ;;  %vm4051_vm9 = vcmp.ne.s32.totalorder %v1044_v58, 0  ;;  %v5570_v43 = vmov 0 }
 0x230   :  { %v5571_v43 = vsel %vm4051_vm9, 4294967295, %v5570_v43  ;;  %vm4056_vm10 = vcmp.gt.f32.partialorder %v5452_v45, %v992_v63  ;;  %v1049_v8 = vrot.slane %v1041_v16, 7  ;;  %vm4060_vm2 = vcmp.ne.s32.totalorder %v1045_v50, 0 }
 0x231   :  { %v5574_v51 = vmov 0  ;;  %vm5576_vm11 = vcmask 261120   ;;  %vm4066_vm12 = vcmp.gt.f32.partialorder %v5458_v19, %v993_v39  ;;  %vm4071_vm14 = vcmp.gt.f32.partialorder %v5464_v18, %v994_v53 }
 0x232   :  { %v5575_v51 = vsel %vm4060_vm2, 4294967295, %v5574_v51  ;;  %v1296_v2 = vsel %vm5576_vm11, %v1291_v36, %v1293_v37  ;;  %v5579_v30 = vmov 0  ;;  %vm5581_vm8 = vmmov 1   ;;  %v1403_v36 = vld [vmem:[%s5076_s9 + $0xf0] sm:$0xff] }
 0x233   :  { %v5580_v30 = vsel %vm4071_vm14, 4294967295, %v5579_v30  ;;  %vm5582_vm13 = vcmp.gt.f32.partialorder %v2369_v62, %v3868_v60  ;;  %v5583_v57 = vmov 0  ;;  %v1050_v5 = vrot.slane %v1042_v52, 7  ;;  %1811 = vmatmul.msk.f32.gmra.mxu3 %vm5563_vm0, %v1296_v2  ;;  %1449 = vmatpush.msra.mxu2 %v1403_v36 }
 0x234   :  { %vm4079_vm5 = vmxor %vm5582_vm13, %vm5581_vm8  ;;  %vm4083_vm3 = vcmp.ne.s32.totalorder %v1046_v15, 0  ;;  %vm4089_vm11 = vcmp.gt.f32.partialorder %v5481_v1, %v995_v6  ;;  %v5587_v44 = vmov 0  ;;  %v1012_v3 = vsel %vm4013_vm15, %v2369_v62, %v988_v9 }
 0x235   :  { %v5584_v57 = vsel %vm4079_vm5, 4294967295, %v5583_v57  ;;  %v5588_v44 = vsel %vm4089_vm11, 4294967295, %v5587_v44  ;;  %vm5589_vm13 = vcmp.gt.f32.partialorder %v2448_v56, %v3870_v27  ;;  %v5590_v17 = vmov 0 }
 0x236   :  { %vm4100_vm1 = vmxor %vm5589_vm13, %vm5581_vm8  ;;  %v1051_v41 = vrot.slane %v1043_v14, 7  ;;  %vm4104_vm5 = vcmp.ne.s32.totalorder %v1047_v38, 0  ;;  %v5592_v4 = vmov 0  ;;  %v1013_v42 = vsel %vm4025_vm4, %v2448_v56, %v989_v34  ;;  %v1388_v38 = vld [vmem:[%s5076_s9 + $0x78] sm:$0xff] }
 0x237   :  { %v5591_v17 = vsel %vm4100_vm1, 4294967295, %v5590_v17  ;;  %v5593_v4 = vsel %vm4104_vm5, 4294967295, %v5592_v4  ;;  %v1014_v23 = vsel %vm4030_vm6, %v2263_v11, %v990_v26  ;;  %v1015_v55 = vsel %vm4041_vm7, %v2642_v35, %v991_v22  ;;  %1425 = vmatpush.msra.mxu1 %v1388_v38 }
 0x238   :  { %vm5594_vm13 = vcmp.gt.f32.partialorder %v2263_v11, %v3887_v20  ;;  %v5595_v25 = vmov 0  ;;  %vm4129_vm0 = vcmp.ne.s32.totalorder %v1048_v31, 0  ;;  %v5597_v7 = vmov 0 }
 0x239   :  { %vm4125_vm1 = vmxor %vm5594_vm13, %vm5581_vm8  ;;  %v5598_v7 = vsel %vm4129_vm0, 4294967295, %v5597_v7  ;;  %v1016_v9 = vsel %vm4056_vm10, %v5452_v45, %v992_v63  ;;  %v1017_v24 = vsel %vm4066_vm12, %v5458_v19, %v993_v39  ;;  %v1018_v34 = vsel %vm4071_vm14, %v5464_v18, %v994_v53 }
 0x23a   :  { %v5596_v25 = vsel %vm4125_vm1, 4294967295, %v5595_v25  ;;  %vm5599_vm13 = vcmp.gt.f32.partialorder %v2642_v35, %v3889_v49  ;;  %v5600_v26 = vmov 0  ;;  %vm4154_vm9 = vcmp.ne.s32.totalorder %v1049_v8, 0 }
 0x23b   :  { %vm4150_vm1 = vmxor %vm5599_vm13, %vm5581_vm8  ;;  %v1019_v22 = vsel %vm4089_vm11, %v5481_v1, %v995_v6  ;;  %vm5604_vm13 = vcmp.gt.f32.partialorder %v5452_v45, %v3913_v47  ;;  %v5605_v63 = vmov 0  ;;  %vm4175_vm15 = vcmp.ne.s32.totalorder %v1050_v5, 0 }
 0x23c   :  { %v5601_v26 = vsel %vm4150_vm1, 4294967295, %v5600_v26  ;;  %vm4171_vm1 = vmxor %vm5604_vm13, %vm5581_vm8  ;;  %v5607_v46 = vmov 0  ;;  %vm5609_vm4 = vcmp.gt.f32.partialorder %v2369_v62, %v3868_v60  ;;  %vm5610_vm13 = vcmp.gt.f32.partialorder %v2448_v56, %v3870_v27 }
 0x23d   :  { %v5606_v63 = vsel %vm4171_vm1, 4294967295, %v5605_v63  ;;  %v5608_v46 = vsel %vm4175_vm15, 4294967295, %v5607_v46  ;;  %v4187_v58 = vsel %vm5609_vm4, %v3868_v60, %v1012_v3  ;;  %v4193_v39 = vsel %vm5610_vm13, %v3870_v27, %v1013_v42  ;;  %v1402_v3 = vld [vmem:[%s5076_s9 + $0xe8] sm:$0xff] }
 0x23e   :  { %vm5611_vm1 = vcmp.gt.f32.partialorder %v2263_v11, %v3887_v20  ;;  %vm5612_vm2 = vcmp.gt.f32.partialorder %v5458_v19, %v3931_v10  ;;  %v5613_v29 = vmov 0  ;;  %vm4209_vm4 = vcmp.ne.s32.totalorder %v1051_v41, 0  ;;  %1450 = vmatpush.msra.mxu2 %v1402_v3 }
 0x23f   :  { %v4199_v53 = vsel %vm5611_vm1, %v3887_v20, %v1014_v23  ;;  %vm4205_vm5 = vmxor %vm5612_vm2, %vm5581_vm8  ;;  %v5615_v50 = vmov 0  ;;  %vm5617_vm1 = vcmp.gt.f32.partialorder %v2642_v35, %v3889_v49  ;;  %vm5618_vm2 = vcmp.gt.f32.partialorder %v5452_v45, %v3913_v47 }
 0x240   :  { %v5614_v29 = vsel %vm4205_vm5, 4294967295, %v5613_v29  ;;  %v5616_v50 = vsel %vm4209_vm4, 4294967295, %v5615_v50  ;;  %v4227_v37 = vsel %vm5617_vm1, %v3889_v49, %v1015_v55  ;;  %v4233_v6 = vsel %vm5618_vm2, %v3913_v47, %v1016_v9 }
 0x241   :  { %vm5619_vm13 = vcmp.gt.f32.partialorder %v5458_v19, %v3931_v10  ;;  %vm5620_vm5 = vcmp.gt.f32.partialorder %v5464_v18, %v3933_v59  ;;  %v5622_v52 = vmov 0  ;;  %v5626_v31 = vmov 0 }
 0x242   :  { %v4239_v16 = vsel %vm5619_vm13, %v3931_v10, %v1017_v24  ;;  %v4245_v15 = vsel %vm5620_vm5, %v3933_v59, %v1018_v34  ;;  %vm5621_vm1 = vmmov %vm5620_vm5  ;;  %vm5624_vm5 = vcmp.gt.f32.partialorder %v5481_v1, %v3939_v33  ;;  %vm5158_vm4 = vcmask 1041409  }
 0x243   :  { %vm4251_vm0 = vmxor %vm5621_vm1, %vm5581_vm8  ;;  %v4266_v14 = vsel %vm5624_vm5, %v3939_v33, %v1019_v22  ;;  %vm5157_vm11 = vcmask 1042434   ;;  %vm5155_vm15 = vcmask 1045509   ;;  %v1411_v22 = vld [vmem:[%s5076_s9 + $0x130] sm:$0xff] }
 0x244   :  { %v5623_v52 = vsel %vm4251_vm0, 4294967295, %v5622_v52  ;;  %vm5625_vm2 = vmmov %vm5624_vm5  ;;  %vm5628_vm0 = vcmp.gt.f32.partialorder %v2369_v62, %v3868_v60  ;;  %vm5629_vm5 = vcmp.gt.f32.partialorder %v2448_v56, %v3870_v27 }
 0x245   :  { %vm4272_vm1 = vmxor %vm5625_vm2, %vm5581_vm8  ;;  %v1076_v8 = vsel %vm5628_vm0, %v2369_v62, %v3868_v60  ;;  %v1077_v2 = vsel %vm5629_vm5, %v2448_v56, %v3870_v27  ;;  %vm5630_vm2 = vcmp.gt.f32.partialorder %v2263_v11, %v3887_v20  ;;  %v1387_v62 = vld [vmem:[%s5076_s9 + $0x70] sm:$0xff]  ;;  %vm5631_vm5 = vcmp.gt.f32.partialorder %v2642_v35, %v3889_v49  ;;  %v1401_v27 = vld [vmem:[%s5076_s9 + $0xe0] sm:$0xff] }
 0x246   :  { %v5627_v31 = vsel %vm4272_vm1, 4294967295, %v5626_v31  ;;  %v4295_v5 = vsel %vm5630_vm2, %v2263_v11, %v3887_v20  ;;  %v4312_v11 = vsel %vm5631_vm5, %v2642_v35, %v3889_v49  ;;  %vm5632_vm2 = vcmp.gt.f32.partialorder %v5452_v45, %v3913_v47  ;;  %1426 = vmatpush.msra.mxu1 %v1387_v62  ;;  %1451 = vmatpush.msra.mxu2 %v1401_v27 }
 0x247   :  { %v4319_v56 = vsel %vm5632_vm2, %v5452_v45, %v3913_v47  ;;  %v4326_v60 = vsel %vm5619_vm13, %v5458_v19, %v3931_v10  ;;  %vm5633_vm5 = vcmp.gt.f32.partialorder %v5464_v18, %v3933_v59  ;;  %v1386_v45 = vld [vmem:[%s5076_s9 + $0x68] sm:$0xff]  ;;  %vm5634_vm2 = vnez %v5562_v28  ;;  %v1385_v47 = vld [vmem:[%s5076_s9 + $0x60] sm:$0xff]  ;;  %v1420_v10 = vld [vmem:[%s5076_s9 + $0x178] sm:$0xff] }
 0x248   :  { %v4333_v35 = vsel %vm5633_vm5, %v5464_v18, %v3933_v59  ;;  %vm5635_vm0 = vnez %v5571_v43  ;;  %vm5637_vm13 = vnez %v5584_v57  ;;  %vm5640_vm5 = vcmp.gt.f32.partialorder %v5481_v1, %v3939_v33  ;;  %1427 = vmatpush.msra.mxu1 %v1386_v45  ;;  %1471 = vmatpush.msra.mxu3 %v1420_v10  ;;  %v1396_v45 = vld [vmem:[%s5076_s9 + $0xb8] sm:$0xff]  ;;  %v1413_v43 = vld [vmem:[%s5076_s9 + $0x140] sm:$0xff] }
 0x249   :  { %vm5636_vm8 = vmor %vm5634_vm2, %vm5635_vm0  ;;  %v4354_v18 = vsel %vm5640_vm5, %v5481_v1, %v3939_v33  ;;  %vm5642_vm0 = vnez %v5575_v51  ;;  %vm5156_vm5 = vcmask 1044484  }
 0x24a   :  { %vm4345_vm1 = vmand %vm5637_vm13, %vm5636_vm8  ;;  %vm5641_vm8 = vnez %v5565_v12  ;;  %vm5644_vm13 = vnez %v5591_v17  ;;  %v1400_v12 = vld [vmem:[%s5076_s9 + $0xd8] sm:$0xff]  ;;  %1428 = vmatpush.msra.mxu1 %v1385_v47  ;;  %1472 = vmatpush.msra.mxu3 %v1419_v13  ;;  %v1414_v47 = vld [vmem:[%s5076_s9 + $0x148] sm:$0xff] }
 0x24b   :  { %vm5643_vm2 = vmor %vm5641_vm8, %vm5642_vm0  ;;  %v1092_v1 = vsel %vm4345_vm1, %v4187_v58, %v1076_v8  ;;  %v1084_v49 = vsel %vm4345_vm1, %v1076_v8, %v4187_v58  ;;  %vm5648_vm0 = vnez %v5596_v25  ;;  %vm5154_vm1 = vcmask 1046534   ;;  %v1384_v17 = vld [vmem:[%s5076_s9 + $0x58] sm:$0xff]  ;;  %v1418_v25 = vld [vmem:[%s5076_s9 + $0x168] sm:$0xff]  ;;  %1452 = vmatpush.msra.mxu2 %v1400_v12  ;;  %v1337_v12 = vpop.permute.xlu2 %1336 }
 0x24c   :  { %vm4366_vm14 = vmand %vm5644_vm13, %vm5643_vm2  ;;  %vm5153_vm13 = vcmask 1047559   ;;  %v1141_v57 = vperm.slane %v1092_v1, 1  ;;  %v1192_v23 = vperm.slane %v1084_v49, 1  ;;  %1429 = vmatpush.msra.mxu1 %v1384_v17  ;;  %1473 = vmatpush.msra.mxu3 %v1418_v25  ;;  %v1397_v8 = vld [vmem:[%s5076_s9 + $0xc0] sm:$0xff]  ;;  %v1335_v1 = vpop.permute.xlu1 %1334  ;;  %v1395_v49 = vld [vmem:[%s5076_s9 + $0xb0] sm:$0xff]  ;;  %v1339_v25 = vpop.permute.xlu0 %1338 }
 0x24d   :  { %vm5647_vm8 = vmor %vm4030_vm6, %vm4083_vm3  ;;  %v1093_v33 = vsel %vm4366_vm14, %v4193_v39, %v1077_v2  ;;  %v1085_v28 = vsel %vm4366_vm14, %v1077_v2, %v4193_v39  ;;  %vm5651_vm6 = vnez %v5593_v4  ;;  %1453 = vmatpush.msra.mxu2 %v1399_v0  ;;  %v1394_v13 = vld [vmem:[%s5076_s9 + $0xa8] sm:$0xff] }
 0x24e   :  { %vm4389_vm2 = vmand %vm5648_vm0, %vm5647_vm8  ;;  %vm5653_vm8 = vnez %v5601_v26  ;;  %v1142_v32 = vperm.slane %v1093_v33, 1  ;;  %v1193_v55 = vperm.slane %v1085_v28, 1  ;;  %v1383_v26 = vld [vmem:[%s5076_s9 + $0x50] sm:$0xff]  ;;  %1474 = vmatpush.msra.mxu3 %v1417_v48  ;;  %v1390_v48 = vld [vmem:[%s5076_s9 + $0x88] sm:$0xff] }
 0x24f   :  { %vm5652_vm3 = vmor %vm4041_vm7, %vm5651_vm6  ;;  %v1094_v51 = vsel %vm4389_vm2, %v4199_v53, %v4295_v5  ;;  %v1086_v61 = vsel %vm4389_vm2, %v4295_v5, %v4199_v53  ;;  %vm5656_vm7 = vnez %v5598_v7  ;;  %vm5658_vm6 = vnez %v5606_v63  ;;  %1430 = vmatpush.msra.mxu1 %v1383_v26  ;;  %v1379_v33 = vld [vmem:[%s5076_s9 + $0x30] sm:$0xff]  ;;  %v1376_v26 = vld [vmem:[%s5076_s9 + $0x18] sm:$0xff] }
 0x250   :  { %vm4412_vm0 = vmand %vm5653_vm8, %vm5652_vm3  ;;  %v1143_v42 = vperm.slane %v1094_v51, 1  ;;  %vm5662_vm2 = vnez %v5614_v29  ;;  %v1150_v34 = vsel %vm5158_vm4, %v1142_v32, %v1141_v57  ;;  %v1194_v53 = vperm.slane %v1086_v61, 1  ;;  %v1393_v32 = vld [vmem:[%s5076_s9 + $0xa0] sm:$0xff]  ;;  %v1378_v61 = vld [vmem:[%s5076_s9 + $0x28] sm:$0xff] }
 0x251   :  { %vm5657_vm14 = vmor %vm4056_vm10, %vm5656_vm7  ;;  %v1095_v4 = vsel %vm4412_vm0, %v4227_v37, %v4312_v11  ;;  %v1087_v21 = vsel %vm4412_vm0, %v4312_v11, %v4227_v37  ;;  %vm5671_vm0 = vnez %v5588_v44  ;;  %v1416_v37 = vld [vmem:[%s5076_s9 + $0x158] sm:$0xff]  ;;  %v1200_v27 = vsel %vm5158_vm4, %v1193_v55, %v1192_v23  ;;  %v1377_v23 = vld [vmem:[%s5076_s9 + $0x20] sm:$0xff] }
 0x252   :  { %vm4434_vm3 = vmand %vm5658_vm6, %vm5657_vm14  ;;  %v1144_v24 = vperm.slane %v1095_v4, 1  ;;  %vm5668_vm14 = vnez %v5623_v52  ;;  %v1152_v39 = vsel %vm5157_vm11, %v1143_v42, %v1150_v34  ;;  %v1195_v62 = vperm.slane %v1087_v21, 1  ;;  %1475 = vmatpush.msra.mxu3 %v1416_v37  ;;  %v1412_v4 = vld [vmem:[%s5076_s9 + $0x138] sm:$0xff]  ;;  %v1391_v55 = vld [vmem:[%s5076_s9 + $0x90] sm:$0xff] }
 0x253   :  { %vm5661_vm10 = vmor %vm4066_vm12, %vm4154_vm9  ;;  %v1096_v9 = vsel %vm4434_vm3, %v4233_v6, %v4319_v56  ;;  %vm5665_vm9 = vnez %v5580_v30  ;;  %vm5666_vm12 = vnez %v5608_v46  ;;  %v1398_v30 = vld [vmem:[%s5076_s9 + $0xc8] sm:$0xff]  ;;  %v1088_v44 = vsel %vm4434_vm3, %v4319_v56, %v4233_v6  ;;  %v1392_v42 = vld [vmem:[%s5076_s9 + $0x98] sm:$0xff] }
 0x254   :  { %vm4455_vm8 = vmand %vm5662_vm2, %vm5661_vm10  ;;  %v1145_v58 = vperm.slane %v1096_v9, 1  ;;  %vm5672_vm10 = vnez %v5616_v50  ;;  %v1382_v50 = vld [vmem:[%s5076_s9 + $0x48] sm:$0xff]  ;;  %1454 = vmatpush.msra.mxu2 %v1398_v30  ;;  %v1201_v20 = vsel %vm5157_vm11, %v1194_v53, %v1200_v27  ;;  %v1341_v0 = vpop.permute.xlu1 %1340  ;;  %v1825_v9 = vld [vmem:[%s5075_s8] ss:$0 sm:$0xff] }
 0x255   :  { %vm5667_vm7 = vmor %vm5665_vm9, %vm5666_vm12  ;;  %v1097_v63 = vsel %vm4455_vm8, %v4239_v16, %v4326_v60  ;;  %vm5674_vm9 = vnez %v5627_v31  ;;  %v1089_v6 = vsel %vm4455_vm8, %v4326_v60, %v4239_v16  ;;  %v1381_v16 = vld [vmem:[%s5076_s9 + $0x40] sm:$0xff]  ;;  %v1196_v60 = vperm.slane %v1088_v44, 1  ;;  %1431 = vmatpush.msra.mxu1 %v1382_v50  ;;  %v1410_v30 = vld [vmem:[%s5076_s9 + $0x128] sm:$0xff] }
 0x256   :  { %vm4481_vm6 = vmand %vm5668_vm14, %vm5667_vm7  ;;  %v1146_v54 = vperm.slane %v1097_v63, 1  ;;  %vm5677_vm7 = vcmask 1043459   ;;  %v1197_v19 = vperm.slane %v1089_v6, 1  ;;  %1455 = vmatpush.msra.mxu2 %v1397_v8  ;;  %vm5679_vm8 = vcmask 523264   ;;  %v1270_v63 = vpop.f32.mrf.mxu2  ;;  %v1389_v53 = vld [vmem:[%s5076_s9 + $0x80] sm:$0xff]  ;;  %v1374_v46 = vld [vmem:[%s5076_s9 + $0x8] sm:$0xff] }
 0x257   :  { %vm5673_vm2 = vmor %vm5671_vm0, %vm5672_vm10  ;;  %v1098_v29 = vsel %vm4481_vm6, %v4245_v15, %v4333_v35  ;;  %v1154_v36 = vsel %vm5677_vm7, %v1144_v24, %v1152_v39  ;;  %v1090_v3 = vsel %vm4481_vm6, %v4333_v35, %v4245_v15  ;;  %v1415_v15 = vld [vmem:[%s5076_s9 + $0x150] sm:$0xff]  ;;  %1432 = vmatpush.msra.mxu1 %v1381_v16  ;;  %v1342_v41 = vsel %vm5679_vm8, %v1335_v1, %v1337_v12  ;;  %v1318_v24 = vpop.f32.mrf.mxu3  ;;  %v1408_v44 = vld [vmem:[%s5076_s9 + $0x118] sm:$0xff] }
 0x258   :  { %vm4500_vm12 = vmand %vm5674_vm9, %vm5673_vm2  ;;  %v1147_v38 = vperm.slane %v1098_v29, 1  ;;  %v1156_v31 = vsel %vm5156_vm5, %v1145_v58, %v1154_v36  ;;  %1456 = vmatpush.msra.mxu2 %v1396_v45  ;;  %1476 = vmatpush.msra.mxu3 %v1415_v15  ;;  %vm5680_vm14 = vcmask 785408   ;;  %v1319_v34 = vadd.f32 %v1825_v9, %v1318_v24  ;;  %v1375_v39 = vld [vmem:[%s5076_s9 + $0x10] sm:$0xff]  ;;  %v1409_v29 = vld [vmem:[%s5076_s9 + $0x120] sm:$0xff] }
 0x259   :  { %v1099_v52 = vsel %vm4500_vm12, %v4266_v14, %v4354_v18  ;;  %v1158_v5 = vsel %vm5155_vm15, %v1146_v54, %v1156_v31  ;;  %v1091_v56 = vsel %vm4500_vm12, %v4354_v18, %v4266_v14  ;;  %v1380_v14 = vld [vmem:[%s5076_s9 + $0x38] sm:$0xff]  ;;  %v1198_v18 = vperm.slane %v1090_v3, 1  ;;  %vm5678_vm3 = vmmov %vm5677_vm7  ;;  %v1373_v36 = vld [vmem:[%s5076_s9] sm:$0xff] }
 0x25a   :  { %v1148_v2 = vperm.slane %v1099_v52, 1  ;;  %v1160_v11 = vsel %vm5154_vm1, %v1147_v38, %v1158_v5  ;;  %v1199_v10 = vperm.slane %v1091_v56, 1  ;;  %v1202_v59 = vsel %vm5678_vm3, %v1195_v62, %v1201_v20  ;;  %1433 = vmatpush.msra.mxu1 %v1380_v14  ;;  %1457 = vmatpush.msra.mxu2 %v1395_v49  ;;  %vm5681_vm6 = vmmov %vm5679_vm8  ;;  %v1407_v50 = vld [vmem:[%s5076_s9 + $0x110] sm:$0xff]  ;;  %v1406_v38 = vld [vmem:[%s5076_s9 + $0x108] sm:$0xff] }
 0x25b   :  { %v1203_v28 = vsel %vm5156_vm5, %v1196_v60, %v1202_v59  ;;  %1477 = vmatpush.msra.mxu3 %v1414_v47  ;;  %v1343_v7 = vsel %vm5681_vm6, %v1339_v25, %v1341_v0  ;;  %vm5682_vm0 = vmmov %vm5680_vm14  ;;  %v1324_v21 = vmax.f32 %v1319_v34, 0.0  ;;  %v1271_v58 = vadd.f32 %v1825_v9, %v1270_v63  ;;  %v1405_v8 = vld [vmem:[%s5076_s9 + $0x100] sm:$0xff]  ;;  %v1662_v15 = vld [vmem:[#allocation6 + $0xf8] sm:$0xff] }
 0x25c   :  { %v1162_v35 = vsel %vm5153_vm13, %v1148_v2, %v1160_v11  ;;  %v1204_v51 = vsel %vm5155_vm15, %v1197_v19, %v1203_v28  ;;  %1434 = vmatpush.msra.mxu1 %v1379_v33  ;;  %1458 = vmatpush.msra.mxu2 %v1394_v13  ;;  %v1661_v19 = vld [vmem:[#allocation6 + $0xf0] sm:$0xff]  ;;  %v1660_v14 = vld [vmem:[#allocation6 + $0xe8] sm:$0xff]  ;;  %v1659_v20 = vld [vmem:[#allocation6 + $0xe0] sm:$0xff]  ;;  %vm5683_vm15 = vmmov 1  }
 0x25d   :  { %1180 = vmatmul.f32.vlgmr.msrb.gmra.mxu0 %v1162_v35  ;;  %v1205_v57 = vsel %vm5154_vm1, %v1198_v18, %v1204_v51  ;;  %1478 = vmatpush.msra.mxu3 %v1413_v43  ;;  %v1276_v54 = vmax.f32 %v1271_v58, 0.0  ;;  %v1645_v35 = vld [vmem:[#allocation6 + $0x78] sm:$0xff]  ;;  %v1644_v27 = vld [vmem:[#allocation6 + $0x70] sm:$0xff]  ;;  %v1643_v18 = vld [vmem:[#allocation6 + $0x68] sm:$0xff] }
 0x25e   :  { %v1206_v17 = vsel %vm5153_vm13, %v1199_v10, %v1205_v57  ;;  %1459 = vmatpush.msra.mxu2 %v1393_v32  ;;  %1435 = vmatpush.msra.mxu1 %v1378_v61  ;;  %v1642_v1 = vld [vmem:[#allocation6 + $0x60] sm:$0xff]  ;;  %v1658_v49 = vld [vmem:[#allocation6 + $0xd8] sm:$0xff]  ;;  %v1657_v10 = vld [vmem:[#allocation6 + $0xd0] sm:$0xff] }
 0x25f   :  { %1224 = vmatmul.f32.vlgmr.msrb.gmra.mxu1 %v1206_v17  ;;  %1479 = vmatpush.msra.mxu3 %v1412_v4  ;;  %v1641_v47 = vld [vmem:[#allocation6 + $0x58] sm:$0xff]  ;;  %v1640_v59 = vld [vmem:[#allocation6 + $0x50] sm:$0xff]  ;;  %v1656_v33 = vld [vmem:[#allocation6 + $0xc8] sm:$0xff] }
 0x260   :  { %1460 = vmatpush.msra.mxu2 %v1392_v42  ;;  %1436 = vmatpush.msra.mxu1 %v1377_v23  ;;  %v1639_v28 = vld [vmem:[#allocation6 + $0x48] sm:$0xff]  ;;  %v1655_v12 = vld [vmem:[#allocation6 + $0xc0] sm:$0xff]  ;;  %v1654_v51 = vld [vmem:[#allocation6 + $0xb8] sm:$0xff] }
 0x261   :  { %1480 = vmatpush.msra.mxu3 %v1411_v22  ;;  %1687 = vmatpush.msrb.mxu0 %v1662_v15  ;;  %v1638_v13 = vld [vmem:[#allocation6 + $0x40] sm:$0xff]  ;;  %v1637_v57 = vld [vmem:[#allocation6 + $0x38] sm:$0xff]  ;;  %v1653_v32 = vld [vmem:[#allocation6 + $0xb0] sm:$0xff] }
 0x262   :  { %1461 = vmatpush.msra.mxu2 %v1391_v55  ;;  %1437 = vmatpush.msra.mxu1 %v1376_v26  ;;  %v1636_v61 = vld [vmem:[#allocation6 + $0x30] sm:$0xff]  ;;  %v1652_v17 = vld [vmem:[#allocation6 + $0xa8] sm:$0xff]  ;;  %v1826_v4 = vld [vmem:[%s5077_s10] ss:$0 sm:$0xff] }
 0x263   :  { %1481 = vmatpush.msra.mxu3 %v1410_v30  ;;  %1688 = vmatpush.msrb.mxu0 %v1661_v19  ;;  %v1651_v42 = vld [vmem:[#allocation6 + $0xa0] sm:$0xff]  ;;  %v1650_v0 = vld [vmem:[#allocation6 + $0x98] sm:$0xff]  ;;  %v1632_v24 = vld [vmem:[#allocation6 + $0x10] sm:$0xff] }
 0x264   :  { %1462 = vmatpush.msra.mxu2 %v1390_v48  ;;  %1438 = vmatpush.msra.mxu1 %v1375_v39  ;;  %v1634_v23 = vld [vmem:[#allocation6 + $0x20] sm:$0xff]  ;;  %v1633_v25 = vld [vmem:[#allocation6 + $0x18] sm:$0xff]  ;;  %v1631_v26 = vld [vmem:[#allocation6 + $0x8] sm:$0xff] }
 0x265   :  { %1812 = vmatmul.msk.f32.vlgmr.msra.gmra.mxu0 %vm5680_vm14, %v1342_v41  ;;  %1482 = vmatpush.msra.mxu3 %v1409_v29  ;;  %v1635_v41 = vld [vmem:[#allocation6 + $0x28] sm:$0xff]  ;;  %v1647_v22 = vld [vmem:[#allocation6 + $0x80] sm:$0xff] }
 0x266   :  { %1463 = vmatpush.msra.mxu2 %v1389_v53  ;;  %1439 = vmatpush.msra.mxu1 %v1374_v46  ;;  %v1630_v63 = vld [vmem:[#allocation6] sm:$0xff] }
 0x267   :  { %1464 = vmatmul.f32.vlgmr.msra.gmra.mxu2 %v1324_v21  ;;  %1483 = vmatpush.msra.mxu3 %v1408_v44  ;;  %v1648_v21 = vld [vmem:[#allocation6 + $0x88] sm:$0xff] }
 0x268   :  { %1440 = vmatpush.msra.mxu1 %v1373_v36  ;;  %1689 = vmatpush.msrb.mxu0 %v1660_v14 }
 0x269   :  { %1441 = vmatmul.f32.vlgmr.msra.gmra.mxu1 %v1276_v54  ;;  %1484 = vmatpush.msra.mxu3 %v1407_v50 }
 0x26a   :  { %1731 = vmatpush.msrb.mxu1 %v1645_v35  ;;  %1690 = vmatpush.msrb.mxu0 %v1659_v20 }
 0x26b   :  { %1485 = vmatpush.msra.mxu3 %v1406_v38 }
 0x26c   :  { %1732 = vmatpush.msrb.mxu1 %v1644_v27  ;;  %1691 = vmatpush.msrb.mxu0 %v1658_v49 }
 0x26d   :  { %1813 = vmatmul.msk.f32.gmra.mxu0 %vm5682_vm0, %v1343_v7  ;;  %1486 = vmatpush.msra.mxu3 %v1405_v8 }
 0x26e   :  { %1733 = vmatpush.msrb.mxu1 %v1643_v18  ;;  %1692 = vmatpush.msrb.mxu0 %v1657_v10 }
 0x270   :  { %1734 = vmatpush.msrb.mxu1 %v1642_v1  ;;  %1693 = vmatpush.msrb.mxu0 %v1656_v33 }
 0x272   :  { %1735 = vmatpush.msrb.mxu1 %v1641_v47  ;;  %1694 = vmatpush.msrb.mxu0 %v1655_v12 }
 0x274   :  { %1736 = vmatpush.msrb.mxu1 %v1640_v59  ;;  %1695 = vmatpush.msrb.mxu0 %v1654_v51 }
 0x276   :  { %1737 = vmatpush.msrb.mxu1 %v1639_v28  ;;  %1696 = vmatpush.msrb.mxu0 %v1653_v32 }
 0x278   :  { %1738 = vmatpush.msrb.mxu1 %v1638_v13  ;;  %1697 = vmatpush.msrb.mxu0 %v1652_v17  ;;  %v5694_v17 = vmov 0 }
 0x27a   :  { %1739 = vmatpush.msrb.mxu1 %v1637_v57  ;;  %1698 = vmatpush.msrb.mxu0 %v1651_v42 }
 0x27c   :  { %1740 = vmatpush.msrb.mxu1 %v1636_v61  ;;  %1699 = vmatpush.msrb.mxu0 %v1650_v0 }
 0x27e   :  { %1741 = vmatpush.msrb.mxu1 %v1635_v41 }
 0x280   :  { %1742 = vmatpush.msrb.mxu1 %v1634_v23 }
 0x282   :  { %1743 = vmatpush.msrb.mxu1 %v1633_v25  ;;  %v5704_v25 = vmov 0 }
 0x284   :  { %1744 = vmatpush.msrb.mxu1 %v1632_v24  ;;  %v5708_v24 = vmov 0 }
 0x286   :  { %1745 = vmatpush.msrb.mxu1 %v1631_v26 }
 0x288   :  { %1746 = vmatpush.msrb.mxu1 %v1630_v63  ;;  %v5719_v63 = vmov 0 }
 0x2b0   :  { %v1273_v37 = vpop.f32.mrf.mxu2 }
 0x2b1   :  { %v1274_v52 = vadd.f32 %v1825_v9, %v1273_v37 }
 0x2b3   :  { %v1277_v2 = vmax.f32 %v1274_v52, 0.0 }
 0x2b5   :  { %1444 = vmatmul.f32.gmra.mxu1 %v1277_v2 }
 0x2b6   :  { %v1321_v31 = vpop.f32.mrf.mxu3 }
 0x2b7   :  { %v1322_v6 = vadd.f32 %v1825_v9, %v1321_v31 }
 0x2b9   :  { %v1325_v5 = vmax.f32 %v1322_v6, 0.0 }
 0x2bb   :  { %1467 = vmatmul.f32.gmra.mxu2 %v1325_v5 }
 0x2da   :  { %v4640_v3 = vpop.f32.mrf.mxu0 }
 0x2dc   :  { %v4642_v43 = vpop.f32.mrf.mxu1 }
 0x2e2   :  { %v1365_v62 = vpop.f32.mrf.mxu0 }
 0x2e3   :  { %v1366_v16 = vadd.f32 %v1825_v9, %v1365_v62 }
 0x2e5   :  { %v1371_v11 = vmax.f32 %v1366_v16, 0.0 }
 0x2e6   :  { %v1442_v55 = vpop.f32.mrf.mxu1 }
 0x2e7   :  { %1487 = vmatmul.f32.vlgmr.msra.gmra.mxu3 %v1371_v11  ;;  %v1443_v7 = vadd.f32 %v1826_v4, %v1442_v55  ;;  %v5700_v55 = vmov 0 }
 0x2ea   :  { %v1368_v56 = vpop.f32.mrf.mxu0  ;;  %v1465_v34 = vpop.f32.mrf.mxu2 }
 0x2eb   :  { %v1369_v60 = vadd.f32 %v1825_v9, %v1368_v56  ;;  %v1649_v9 = vld [vmem:[#allocation6 + $0x90] sm:$0xff]  ;;  %v1466_v48 = vadd.f32 %v1465_v34, %v1443_v7 }
 0x2ec   :  { %1700 = vmatpush.msrb.mxu0 %v1649_v9 }
 0x2ed   :  { %v1372_v45 = vmax.f32 %v1369_v60, 0.0 }
 0x2ee   :  { %1701 = vmatpush.msrb.mxu0 %v1648_v21 }
 0x2ef   :  { %1490 = vmatmul.f32.gmra.mxu3 %v1372_v45 }
 0x2f0   :  { %1702 = vmatpush.msrb.mxu0 %v1647_v22 }
 0x332   :  { %v1445_v58 = vpop.f32.mrf.mxu1 }
 0x333   :  { %v1446_v30 = vadd.f32 %v1826_v4, %v1445_v58 }
 0x33e   :  { %v1468_v29 = vpop.f32.mrf.mxu2 }
 0x33f   :  { %v1469_v54 = vadd.f32 %v1468_v29, %v1446_v30 }
 0x36a   :  { %v1488_v39 = vpop.f32.mrf.mxu3 }
 0x36b   :  { %v1489_v53 = vadd.f32 %v1488_v39, %v1466_v48 }
 0x36d   :  { %v4647_v46 = vmax.f32 %v1489_v53, 0.0  ;;  %v5726_v53 = vmov 0 }
 0x36f   :  { %v4650_v36 = vrot.slane %v4647_v46, 2  ;;  %v4653_v44 = vrot.slane %v4647_v46, 4  ;;  %v4656_v37 = vrot.slane %v4647_v46, 6  ;;  %vm1510_vm10 = vcmp.gt.f32.partialorder %v4647_v46, -inf }
 0x370   :  { %v4664_v31 = vrot.slane %v4647_v46, 7  ;;  %v1566_v8 = vsel %vm1510_vm10, 1, %v5441_v40  ;;  %v1542_v42 = vsel %vm1510_vm10, %v4647_v46, -inf }
 0x371   :  { %vm1511_vm2 = vcmp.gt.f32.partialorder %v4650_v36, -inf  ;;  %vm1512_vm9 = vcmp.gt.f32.partialorder %v4653_v44, -inf  ;;  %vm5165_vm12 = vcmp.gt.f32.partialorder %v4656_v37, -inf  ;;  %v4668_v6 = vrot.slane %v4650_v36, 7 }
 0x372   :  { %v1491_v50 = vpop.f32.mrf.mxu3  ;;  %v4683_v16 = vrot.slane %v4653_v44, 7  ;;  %v4687_v11 = vrot.slane %v4656_v37, 7  ;;  %v1567_v56 = vsel %vm1511_vm2, 1, %v5441_v40  ;;  %v1568_v60 = vsel %vm1512_vm9, 1, %v5441_v40 }
 0x373   :  { %v1492_v52 = vadd.f32 %v1491_v50, %v1469_v54  ;;  %vm5162_vm8 = vcmp.gt.f32.partialorder %v4647_v46, %v4664_v31  ;;  %vm5164_vm0 = vcmp.gt.f32.partialorder %v4650_v36, %v4668_v6  ;;  %v1569_v45 = vsel %vm5165_vm12, 1, %v5441_v40 }
 0x374   :  { %v1574_v35 = vrot.slane %v1566_v8, 7  ;;  %v1575_v19 = vrot.slane %v1567_v56, 7  ;;  %v1576_v27 = vrot.slane %v1568_v60, 7  ;;  %vm5166_vm13 = vcmp.gt.f32.partialorder %v4653_v44, %v4683_v16  ;;  %vm4733_vm5 = vmxor %vm5162_vm8, %vm5683_vm15 }
 0x375   :  { %v4659_v38 = vmax.f32 %v1492_v52, 0.0  ;;  %vm5167_vm1 = vcmp.gt.f32.partialorder %v4656_v37, %v4687_v11  ;;  %v1577_v59 = vrot.slane %v1569_v45, 7  ;;  %v1543_v23 = vsel %vm1511_vm2, %v4650_v36, -inf }
 0x376   :  { %vm1582_vm11 = vcmp.ne.s32.totalorder %v1574_v35, 0  ;;  %vm1583_vm4 = vcmp.ne.s32.totalorder %v1575_v19, 0  ;;  %v1544_v7 = vsel %vm1512_vm9, %v4653_v44, -inf }
 0x377   :  { %v4674_v2 = vrot.slane %v4659_v38, 2  ;;  %v4677_v5 = vrot.slane %v4659_v38, 4  ;;  %v4680_v62 = vrot.slane %v4659_v38, 6  ;;  %vm5163_vm7 = vcmp.gt.f32.partialorder %v4659_v38, -inf }
 0x378   :  { %v1570_v15 = vsel %vm5163_vm7, 1, %v5441_v40  ;;  %v4709_v14 = vrot.slane %v4659_v38, 7  ;;  %vm4751_vm8 = vcmp.ne.s32.totalorder %v1577_v59, 0  ;;  %vm4757_vm7 = vmor %vm1510_vm10, %vm1582_vm11 }
 0x379   :  { %vm5161_vm3 = vcmp.gt.f32.partialorder %v4674_v2, -inf  ;;  %vm5159_vm14 = vcmp.gt.f32.partialorder %v4677_v5, -inf  ;;  %vm5160_vm6 = vcmp.gt.f32.partialorder %v4680_v62, -inf  ;;  %v1523_v20 = vrot.slane %v4674_v2, 7  ;;  %vm4776_vm11 = vmor %vm1511_vm2, %vm1583_vm4 }
 0x37a   :  { %v1571_v18 = vsel %vm5161_vm3, 1, %v5441_v40  ;;  %v4720_v1 = vrot.slane %v4677_v5, 7  ;;  %v1572_v49 = vsel %vm5159_vm14, 1, %v5441_v40  ;;  %v1573_v47 = vsel %vm5160_vm6, 1, %v5441_v40  ;;  %vm4747_vm3 = vmxor %vm5164_vm0, %vm5683_vm15 }
 0x37b   :  { %v1525_v10 = vrot.slane %v4680_v62, 7  ;;  %v1578_v33 = vrot.slane %v1570_v15, 7  ;;  %v1579_v28 = vrot.slane %v1571_v18, 7  ;;  %v1580_v13 = vrot.slane %v1572_v49, 7  ;;  %vm4766_vm0 = vmxor %vm5166_vm13, %vm5683_vm15 }
 0x37c   :  { %vm4737_vm14 = vcmp.ne.s32.totalorder %v1576_v27, 0  ;;  %v1581_v57 = vrot.slane %v1573_v47, 7  ;;  %v5695_v17 = vsel %vm4766_vm0, 4294967295, %v5694_v17  ;;  %vm4792_vm13 = vmxor %vm5167_vm1, %vm5683_vm15  ;;  %vm5706_vm1 = vcmp.gt.f32.partialorder %v4656_v37, -inf }
 0x37d   :  { %vm4770_vm12 = vcmp.ne.s32.totalorder %v1578_v33, 0  ;;  %v5701_v55 = vsel %vm4792_vm13, 4294967295, %v5700_v55  ;;  %vm4796_vm4 = vcmp.ne.s32.totalorder %v1579_v28, 0  ;;  %vm4804_vm10 = vmor %vm1512_vm9, %vm4737_vm14  ;;  %v1545_v9 = vsel %vm5706_vm1, %v4656_v37, -inf }
 0x37e   :  { %v5705_v25 = vsel %vm4804_vm10, 4294967295, %v5704_v25  ;;  %vm5707_vm6 = vcmp.gt.f32.partialorder %v4659_v38, %v4709_v14  ;;  %vm4823_vm14 = vcmp.ne.s32.totalorder %v1580_v13, 0  ;;  %vm5712_vm9 = vmmov %vm5706_vm1  ;;  %vm5715_vm1 = vcmp.gt.f32.partialorder %v4659_v38, -inf }
 0x37f   :  { %vm4819_vm13 = vmxor %vm5707_vm6, %vm5683_vm15  ;;  %v1546_v26 = vsel %vm5715_vm1, %v4659_v38, -inf  ;;  %vm5716_vm6 = vcmp.gt.f32.partialorder %v4674_v2, -inf  ;;  %vm5718_vm0 = vcmp.gt.f32.partialorder %v4674_v2, %v1523_v20 }
 0x380   :  { %v5709_v24 = vsel %vm4819_vm13, 4294967295, %v5708_v24  ;;  %vm4831_vm2 = vmor %vm5712_vm9, %vm4751_vm8  ;;  %v1547_v48 = vsel %vm5716_vm6, %v4674_v2, -inf  ;;  %vm5717_vm13 = vcmp.gt.f32.partialorder %v4677_v5, -inf  ;;  %vm1589_vm8 = vcmp.ne.s32.totalorder %v1581_v57, 0 }
 0x381   :  { %v1548_v22 = vsel %vm5717_vm13, %v4677_v5, -inf  ;;  %vm4847_vm10 = vmxor %vm5718_vm0, %vm5683_vm15  ;;  %vm5724_vm6 = vcmp.gt.f32.partialorder %v4680_v62, -inf  ;;  %vm5725_vm13 = vcmp.gt.f32.partialorder %v4677_v5, %v4720_v1 }
 0x382   :  { %v5720_v63 = vsel %vm4847_vm10, 4294967295, %v5719_v63  ;;  %vm5721_vm9 = vmmov %vm5715_vm1  ;;  %v1549_v39 = vsel %vm5724_vm6, %v4680_v62, -inf  ;;  %vm5728_vm10 = vcmp.gt.f32.partialorder %v4674_v2, -inf  ;;  %vm5732_vm6 = vcmp.gt.f32.partialorder %v4650_v36, %v4668_v6 }
 0x383   :  { %vm4855_vm1 = vmor %vm5721_vm9, %vm4770_vm12  ;;  %vm5731_vm9 = vcmp.gt.f32.partialorder %v4647_v46, %v4664_v31  ;;  %v1551_v54 = vsel %vm5732_vm6, %v4668_v6, %v1543_v23  ;;  %vm5740_vm6 = vcmp.gt.f32.partialorder %v4656_v37, %v4687_v11 }
 0x384   :  { %vm4866_vm0 = vmxor %vm5725_vm13, %vm5683_vm15  ;;  %v1550_v29 = vsel %vm5731_vm9, %v4664_v31, %v1542_v42  ;;  %vm5733_vm13 = vcmp.gt.f32.partialorder %v4653_v44, %v4683_v16  ;;  %vm5737_vm9 = vcmp.gt.f32.partialorder %v4677_v5, -inf  ;;  %v1553_v56 = vsel %vm5740_vm6, %v4687_v11, %v1545_v9 }
 0x385   :  { %v5727_v53 = vsel %vm4866_vm0, 4294967295, %v5726_v53  ;;  %vm4874_vm12 = vmor %vm5728_vm10, %vm4796_vm4  ;;  %v1552_v50 = vsel %vm5733_vm13, %v4683_v16, %v1544_v7  ;;  %vm5734_vm4 = vcmp.gt.f32.partialorder %v4680_v62, %v1525_v10  ;;  %vm5742_vm13 = vcmp.gt.f32.partialorder %v4674_v2, %v1523_v20 }
 0x386   :  { %vm4893_vm10 = vmxor %vm5734_vm4, %vm5683_vm15  ;;  %vm5741_vm15 = vcmp.gt.f32.partialorder %v4659_v38, %v4709_v14  ;;  %v1555_v45 = vsel %vm5742_vm13, %v1523_v20, %v1547_v48  ;;  %vm5744_vm4 = vcmp.gt.f32.partialorder %v4680_v62, -inf  ;;  %vm5747_vm6 = vcmp.gt.f32.partialorder %v4680_v62, %v1525_v10 }
 0x387   :  { %vm4901_vm0 = vmor %vm5737_vm9, %vm4823_vm14  ;;  %v1554_v60 = vsel %vm5741_vm15, %v4709_v14, %v1546_v26  ;;  %vm5743_vm14 = vcmp.gt.f32.partialorder %v4677_v5, %v4720_v1  ;;  %v1557_v19 = vsel %vm5747_vm6, %v1525_v10, %v1549_v39  ;;  %vm5748_vm13 = vcmp.gt.f32.partialorder %v4647_v46, %v4664_v31 }
 0x388   :  { %v1556_v15 = vsel %vm5743_vm14, %v4720_v1, %v1548_v22  ;;  %vm4921_vm9 = vmor %vm5744_vm4, %vm1589_vm8  ;;  %v1606_v27 = vsel %vm5748_vm13, %v4647_v46, %v4664_v31  ;;  %vm5749_vm8 = vcmp.gt.f32.partialorder %v4650_v36, %v4668_v6  ;;  %vm5750_vm14 = vcmp.gt.f32.partialorder %v4653_v44, %v4683_v16 }
 0x389   :  { %vm5171_vm15 = vmand %vm4733_vm5, %vm4757_vm7  ;;  %v1607_v18 = vsel %vm5749_vm8, %v4650_v36, %v4668_v6  ;;  %v1608_v49 = vsel %vm5750_vm14, %v4653_v44, %v4683_v16  ;;  %vm5751_vm6 = vcmp.gt.f32.partialorder %v4656_v37, %v4687_v11  ;;  %vm5752_vm13 = vcmp.gt.f32.partialorder %v4659_v38, %v4709_v14 }
 0x38a   :  { %vm1599_vm4 = vmand %vm4747_vm3, %vm4776_vm11  ;;  %v1609_v46 = vsel %vm5751_vm6, %v4656_v37, %v4687_v11  ;;  %v1610_v36 = vsel %vm5752_vm13, %v4659_v38, %v4709_v14  ;;  %vm5753_vm8 = vcmp.gt.f32.partialorder %v4674_v2, %v1523_v20  ;;  %v1622_v31 = vsel %vm5171_vm15, %v1550_v29, %v1606_v27 }
 0x38b   :  { %v1611_v44 = vsel %vm5753_vm8, %v4674_v2, %v1523_v20  ;;  %vm5754_vm3 = vnez %v5705_v25  ;;  %vm5755_vm11 = vnez %v5695_v17  ;;  %vm5756_vm6 = vcmp.gt.f32.partialorder %v4677_v5, %v4720_v1 }
 0x38c   :  { %vm1600_vm14 = vmand %vm5755_vm11, %vm5754_vm3  ;;  %v1612_v37 = vsel %vm5756_vm6, %v4677_v5, %v4720_v1  ;;  %vm5757_vm13 = vcmp.gt.f32.partialorder %v4680_v62, %v1525_v10  ;;  %v1623_v6 = vsel %vm1599_vm4, %v1551_v54, %v1607_v18  ;;  %v1615_v2 = vsel %vm1599_vm4, %v1607_v18, %v1551_v54 }
 0x38d   :  { %v1613_v38 = vsel %vm5757_vm13, %v4680_v62, %v1525_v10  ;;  %vm5758_vm8 = vnez %v5701_v55  ;;  %v1624_v16 = vsel %vm1600_vm14, %v1552_v50, %v1608_v49  ;;  %v1671_v11 = vperm.slane %v1622_v31, 1  ;;  %vm5760_vm4 = vmand %vm4733_vm5, %vm4757_vm7 }
 0x38e   :  { %vm1601_vm15 = vmand %vm5758_vm8, %vm4831_vm2  ;;  %v1672_v14 = vperm.slane %v1623_v6, 1  ;;  %v1616_v20 = vsel %vm1600_vm14, %v1608_v49, %v1552_v50  ;;  %vm5759_vm3 = vnez %v5709_v24  ;;  %v1673_v1 = vperm.slane %v1624_v16, 1 }
 0x38f   :  { %vm1602_vm11 = vmand %vm5759_vm3, %vm4855_vm1  ;;  %v1625_v5 = vsel %vm1601_vm15, %v1553_v56, %v1609_v46  ;;  %v1614_v62 = vsel %vm5760_vm4, %v1606_v27, %v1550_v29  ;;  %v1716_v47 = vperm.slane %v1615_v2, 1  ;;  %vm5761_vm2 = vnez %v5720_v63 }
 0x390   :  { %vm1603_vm6 = vmand %vm5761_vm2, %vm4874_vm12  ;;  %v1626_v10 = vsel %vm1602_vm11, %v1554_v60, %v1610_v36  ;;  %v1674_v59 = vperm.slane %v1625_v5, 1  ;;  %vm5762_vm14 = vcmask 1041409   ;;  %v1617_v28 = vsel %vm1601_vm15, %v1609_v46, %v1553_v56 }
 0x391   :  { %v1679_v33 = vsel %vm5762_vm14, %v1672_v14, %v1671_v11  ;;  %vm5763_vm5 = vnez %v5727_v53  ;;  %v1627_v12 = vsel %vm1603_vm6, %v1555_v45, %v1611_v44  ;;  %v1675_v13 = vperm.slane %v1626_v10, 1  ;;  %vm1605_vm15 = vmand %vm4893_vm10, %vm4921_vm9 }
 0x392   :  { %vm1604_vm7 = vmand %vm5763_vm5, %vm4901_vm0  ;;  %vm5764_vm13 = vcmask 1042434   ;;  %v1717_v40 = vperm.slane %v1616_v20, 1  ;;  %v1676_v32 = vperm.slane %v1627_v12, 1  ;;  %vm5765_vm8 = vcmask 1043459  }
 0x393   :  { %v1680_v51 = vsel %vm5764_vm13, %v1673_v1, %v1679_v33  ;;  %v1628_v57 = vsel %vm1604_vm7, %v1556_v15, %v1612_v37  ;;  %v1618_v17 = vsel %vm1602_vm11, %v1610_v36, %v1554_v60  ;;  %v1629_v41 = vsel %vm1605_vm15, %v1557_v19, %v1613_v38  ;;  %vm5771_vm0 = vmmov %vm5764_vm13 }
 0x394   :  { %v1681_v61 = vsel %vm5765_vm8, %v1674_v59, %v1680_v51  ;;  %v1677_v4 = vperm.slane %v1628_v57, 1  ;;  %vm5766_vm4 = vcmask 1044484   ;;  %v1619_v23 = vsel %vm1603_vm6, %v1611_v44, %v1555_v45  ;;  %vm5772_vm12 = vmmov %vm5765_vm8  ;;  %v1827_v45 = vld [vmem:[%s5079_s12] ss:$0 sm:$0xff] }
 0x395   :  { %v1682_v42 = vsel %vm5766_vm4, %v1675_v13, %v1681_v61  ;;  %v1678_v55 = vperm.slane %v1629_v41, 1  ;;  %vm5767_vm14 = vcmask 1045509   ;;  %v1620_v25 = vsel %vm1604_vm7, %v1612_v37, %v1556_v15  ;;  %vm5773_vm2 = vmmov %vm5766_vm4 }
 0x396   :  { %v1683_v0 = vsel %vm5767_vm14, %v1676_v32, %v1682_v42  ;;  %v1715_v7 = vperm.slane %v1614_v62, 1  ;;  %vm5768_vm1 = vcmask 1046534   ;;  %v1719_v24 = vperm.slane %v1618_v17, 1  ;;  %vm5774_vm6 = vmmov %vm5767_vm14 }
 0x397   :  { %v1684_v9 = vsel %vm5768_vm1, %v1677_v4, %v1683_v0  ;;  %vm5769_vm3 = vcmask 1047559   ;;  %v1718_v21 = vperm.slane %v1617_v28, 1  ;;  %v1720_v26 = vperm.slane %v1619_v23, 1  ;;  %vm5775_vm5 = vmmov %vm5768_vm1 }
 0x398   :  { %v1685_v34 = vsel %vm5769_vm3, %v1678_v55, %v1684_v9  ;;  %vm5770_vm11 = vcmask 1041409   ;;  %v1621_v22 = vsel %vm1605_vm15, %v1613_v38, %v1557_v19  ;;  %v1721_v63 = vperm.slane %v1620_v25, 1  ;;  %vm5776_vm7 = vmmov %vm5769_vm3 }
 0x399   :  { %v1723_v48 = vsel %vm5770_vm11, %v1716_v47, %v1715_v7  ;;  %1703 = vmatmul.f32.vlgmr.msrb.gmra.mxu0 %v1685_v34  ;;  %v1722_v30 = vperm.slane %v1621_v22, 1  ;;  %v1226_v56 = vadd.f32 %v4642_v43, %v4640_v3 }
 0x39a   :  { %v1724_v58 = vsel %vm5771_vm0, %v1717_v40, %v1723_v48 }
 0x39b   :  { %v1725_v39 = vsel %vm5772_vm12, %v1718_v21, %v1724_v58 }
 0x39c   :  { %v1726_v53 = vsel %vm5773_vm2, %v1719_v24, %v1725_v39 }
 0x39d   :  { %v1727_v29 = vsel %vm5774_vm6, %v1720_v26, %v1726_v53 }
 0x39e   :  { %v1728_v54 = vsel %vm5775_vm5, %v1721_v63, %v1727_v29 }
 0x39f   :  { %v1729_v50 = vsel %vm5776_vm7, %v1722_v30, %v1728_v54 }
 0x3a0   :  { %1747 = vmatmul.f32.vlgmr.msrb.gmra.mxu1 %v1729_v50 }
 0x416   :  { %v1704_v52 = vpop.f32.mrf.mxu0 }
 0x41d   :  { %v1748_v8 = vpop.f32.mrf.mxu1 }
 0x41e   :  { %v1749_v60 = vadd.f32 %v1748_v8, %v1704_v52 }
 0x420   :  { %v1751_v15 = vadd.f32 %v1749_v60, %v1226_v56 }
 0x422   :  { %v1756_v35 = vadd.f32 %v1827_v45, %v1751_v15 }
 0x424   :  { %1757 = vst [vmem:[%s5080_s13] sm:$0xff] %v1756_v35 }
 0x425   :  { %1762 = vsyncpa [#allocation3], 1 }
 0x426   :  { %1763 = vsyncpa [#allocation5], 1 }

</bundles_post_ra>
